<compile_context>
chip_gen: v5e
topology: v5e:2x2
jax: 0.10.0
libtpu: 0.0.40
codegen_flags: <defaults>
</compile_context>

<pallas_src>
import functools
import math

import jax
import jax.numpy as jnp
from jax import lax
from jax.experimental import pallas as pl
from jax.experimental.pallas import tpu as pltpu


def _pick_spatial_tile(S, C, itemsize, max_tile_bytes):
    """Spatial tile length: the full extent S (small feature maps) or the largest
    multiple of 128 whose (C, ts) block fits the per-buffer byte budget."""
    cap = (max_tile_bytes // (itemsize * C)) // 128 * 128
    cap = max(cap, 128)
    if S <= cap:
        return S            # single full-extent tile (full-dim block, no (8,128) issue)
    return cap              # multiple of 128; remainder tile handled by masking


def _channel_attention_kernel(x_ref, w1t_ref, w2_ref, o_ref, sum_ref, max_ref,
                              *, spatial_size, needs_mask):
    """Grid = (batch, spatial_tiles).  Native (B, C, S) layout: channels on sublanes,
    spatial on lanes; reduce over the lane axis into (C, 1) accumulators."""
    s = pl.program_id(1)

    @pl.when(s == 0)
    def _init():
        sum_ref[...] = jnp.zeros_like(sum_ref)
        max_ref[...] = jnp.full_like(max_ref, -jnp.inf)

    xt = x_ref[0].astype(jnp.float32)                 # (C, ts) — upcast in-kernel
    if needs_mask:
        ts = xt.shape[-1]
        col = lax.broadcasted_iota(jnp.int32, (1, ts), 1)
        valid = (s * ts + col) < spatial_size         # (1, ts), broadcasts over channels
        xt_sum = jnp.where(valid, xt, 0.0)
        xt_max = jnp.where(valid, xt, -jnp.inf)
    else:
        xt_sum = xt
        xt_max = xt

    # raw running sum (divide once at finalize) + running max; lane-axis reduces
    sum_ref[...] = sum_ref[...] + jnp.sum(xt_sum, axis=-1, keepdims=True)
    max_ref[...] = jnp.maximum(max_ref[...], jnp.max(xt_max, axis=-1, keepdims=True))

    @pl.when(s == pl.num_programs(1) - 1)
    def _finalize():
        avg_col = sum_ref[...] * (1.0 / spatial_size)            # (C, 1)
        max_col = max_ref[...]                                   # (C, 1)

        def mlp(col):
            # fc1: contract over C (sublanes) -> (1, Ch) row, then ReLU
            h = jnp.sum(w1t_ref[...] * col, axis=0, keepdims=True)
            h = jnp.maximum(h, 0.0)
            # fc2: contract over Ch (lanes) -> (C, 1) column
            return jnp.sum(w2_ref[...] * h, axis=1, keepdims=True)

        y = mlp(avg_col) + mlp(max_col)                          # (C, 1)
        o_ref[0] = jax.nn.sigmoid(y)


def channel_attention(x, w1, w2, *, max_tile_bytes=4 * 1024 * 1024):
    """x: (B, C, H, W) (f32 or bf16).  w1: torch Conv2d weight (C//r, C, 1, 1).
    w2: (C, C//r, 1, 1).  Returns sigmoid attention weights (B, C, 1, 1) in f32."""
    B, C, H, W = x.shape
    S = H * W
    Ch = w1.shape[0]
    assert w1.shape[:2] == (Ch, C) and w2.shape[:2] == (C, Ch)

    # Free reshape only — no transpose, no dtype cast; the kernel is the only HBM pass.
    x_r = x.reshape(B, C, S)
    w1_t = jnp.transpose(w1.reshape(Ch, C)).astype(jnp.float32)   # (C, Ch), tiny
    w2_m = w2.reshape(C, Ch).astype(jnp.float32)                  # (C, Ch), tiny

    itemsize = jnp.dtype(x.dtype).itemsize
    ts = _pick_spatial_tile(S, C, itemsize, max_tile_bytes)
    n_s = pl.cdiv(S, ts)
    needs_mask = (S % ts) != 0

    grid_spec = pltpu.PrefetchScalarGridSpec(
        num_scalar_prefetch=0,
        grid=(B, n_s),
        in_specs=[
            pl.BlockSpec((1, C, ts), lambda b, s: (b, 0, s)),     # streamed activations
            pl.BlockSpec((C, Ch), lambda b, s: (0, 0)),           # fc1^T, VMEM-resident
            pl.BlockSpec((C, Ch), lambda b, s: (0, 0)),           # fc2,   VMEM-resident
        ],
        out_specs=pl.BlockSpec((1, C, 1), lambda b, s: (b, 0, 0)),
        scratch_shapes=[pltpu.VMEM((C, 1), jnp.float32),          # running sum
                        pltpu.VMEM((C, 1), jnp.float32)],         # running max
    )

    # Realistic VMEM budget: double-buffered input block + resident weights +
    # lane-padded scratch/output + headroom for in-kernel temporaries.
    block_bytes = C * ts * itemsize
    footprint = (2 * block_bytes
                 + 2 * C * Ch * 4
                 + 4 * C * 128 * 4)
    vmem_limit = int(footprint + 24 * 1024 * 1024)

    out = pl.pallas_call(
        functools.partial(_channel_attention_kernel,
                          spatial_size=S, needs_mask=needs_mask),
        grid_spec=grid_spec,
        out_shape=jax.ShapeDtypeStruct((B, C, 1), jnp.float32),
        compiler_params=pltpu.CompilerParams(
            dimension_semantics=("parallel", "arbitrary"),   # batch across TCs, spatial = reduction
            vmem_limit_bytes=vmem_limit,
        ),
    )(x_r, w1_t, w2_m)

    return out.reshape(B, C, 1, 1)


def channel_attention_ref(x, w1, w2):
    """Pure-JAX reference mirroring the PyTorch module (computed in f32)."""
    B, C, H, W = x.shape
    Ch = w1.shape[0]
    xf = x.astype(jnp.float32)
    w1_m = w1.reshape(Ch, C).astype(jnp.float32)
    w2_m = w2.reshape(C, Ch).astype(jnp.float32)
    avg = jnp.mean(xf, axis=(2, 3))
    mx = jnp.max(xf, axis=(2, 3))

    def mlp(v):
        return jnp.maximum(v @ w1_m.T, 0.0) @ w2_m.T

    return jax.nn.sigmoid(mlp(avg) + mlp(mx)).reshape(B, C, 1, 1)


if __name__ == "__main__":
    key = jax.random.PRNGKey(0)

    def run_case(B, C, H, W, dtype, ratio=16, **kw):
        kx, k1, k2 = jax.random.split(jax.random.fold_in(key, B * 131 + C + H), 3)
        Ch = C // ratio
        x = jax.random.normal(kx, (B, C, H, W), jnp.float32).astype(dtype)
        w1 = jax.random.normal(k1, (Ch, C, 1, 1), jnp.float32) / math.sqrt(C)
        w2 = jax.random.normal(k2, (C, Ch, 1, 1), jnp.float32) / math.sqrt(Ch)

        fwd = jax.jit(functools.partial(channel_attention, **kw))
        out = fwd(x, w1, w2)
        jax.block_until_ready(out)

        ref = channel_attention_ref(x, w1, w2)
        assert out.shape == (B, C, 1, 1) and out.dtype == jnp.float32
        assert bool(jnp.all(jnp.isfinite(out)))
        err = float(jnp.max(jnp.abs(out - ref)))
        assert err < 2e-5, f"mismatch vs reference: {err} for case {(B, C, H, W, dtype)}"

    # Case 1: f32, single full spatial tile, batch axis parallel across cores.
    run_case(2, 256, 16, 16, jnp.float32)
    # Case 2: bf16 streamed natively (upcast in-kernel), multi-tile spatial reduction
    # with a remainder tile (S=400, ts=128 -> masked last tile), B=1.
    run_case(1, 128, 20, 20, jnp.bfloat16, max_tile_bytes=32 * 1024)

    print("KERNEL_OK")
</pallas_src>

<mosaic_0001>
module attributes {stable_mosaic.version = 11 : i64} {
  func.func @_channel_attention_kernel(%arg0: i32, %arg1: i32, %arg2: memref<1x256x256xf32, #tpu.memory_space<vmem>>, %arg3: memref<256x16xf32, #tpu.memory_space<vmem>>, %arg4: memref<256x16xf32, #tpu.memory_space<vmem>>, %arg5: memref<1x256x1xf32, #tpu.memory_space<vmem>>, %arg6: memref<256x1xf32, #tpu.memory_space<vmem>>, %arg7: memref<256x1xf32, #tpu.memory_space<vmem>>) attributes {dimension_semantics = [#tpu.dimension_semantics<parallel>, #tpu.dimension_semantics<arbitrary>], iteration_bounds = array<i64: 2, 1>, scalar_prefetch = 0 : i64, scratch_operands = 2 : i64, tpu.core_type = #tpu.core_type<tc>, window_params = [{transform_indices = @transform_0, window_bounds = array<i64: 1, 256, 256>}, {pipeline_mode = #tpu.pipeline_mode<synchronous>, transform_indices = @transform_1, window_bounds = array<i64: 256, 16>}, {pipeline_mode = #tpu.pipeline_mode<synchronous>, transform_indices = @transform_2, window_bounds = array<i64: 256, 16>}, {transform_indices = @transform_3, window_bounds = array<i64: 1, 256, 1>}]} {
    %c0_i32 = arith.constant 0 : i32
    %0 = arith.cmpi eq, %arg1, %c0_i32 : i32
    %1 = arith.extui %0 : i1 to i32
    %c0_i32_0 = arith.constant 0 : i32
    %2 = arith.cmpi ne, %1, %c0_i32_0 : i32
    scf.if %2 {
      %cst_14 = arith.constant 0.000000e+00 : f32
      %18 = vector.broadcast %cst_14 : f32 to vector<256x1xf32>
      %c0_15 = arith.constant 0 : index
      %c0_16 = arith.constant 0 : index
      %19 = vector.load %arg6[%c0_15, %c0_16] : memref<256x1xf32, #tpu.memory_space<vmem>>, vector<256x1xf32>
      tpu.vector_store %arg6[%c0_15, %c0_16], %18 {strides = array<i32>} : memref<256x1xf32, #tpu.memory_space<vmem>>, vector<256x1xf32>,
      %cst_17 = arith.constant 0xFF800000 : f32
      %20 = vector.broadcast %cst_17 : f32 to vector<256x1xf32>
      %c0_18 = arith.constant 0 : index
      %c0_19 = arith.constant 0 : index
      %21 = vector.load %arg7[%c0_18, %c0_19] : memref<256x1xf32, #tpu.memory_space<vmem>>, vector<256x1xf32>
      tpu.vector_store %arg7[%c0_18, %c0_19], %20 {strides = array<i32>} : memref<256x1xf32, #tpu.memory_space<vmem>>, vector<256x1xf32>,
    } else {
    }
    %c0 = arith.constant 0 : index
    %c0_1 = arith.constant 0 : index
    %c0_2 = arith.constant 0 : index
    %3 = vector.load %arg2[%c0, %c0_1, %c0_2] : memref<1x256x256xf32, #tpu.memory_space<vmem>>, vector<1x256x256xf32>
    %4 = vector.shape_cast %3 : vector<1x256x256xf32> to vector<256x256xf32>
    %c0_3 = arith.constant 0 : index
    %c0_4 = arith.constant 0 : index
    %5 = vector.load %arg6[%c0_3, %c0_4] : memref<256x1xf32, #tpu.memory_space<vmem>>, vector<256x1xf32>
    %cst = arith.constant dense<0.000000e+00> : vector<256xf32>
    %6 = vector.multi_reduction <add>, %4, %cst [1] : vector<256x256xf32> to vector<256xf32>
    %7 = vector.shape_cast %6 : vector<256xf32> to vector<256x1xf32>
    %8 = arith.addf %5, %7 : vector<256x1xf32>
    %c0_5 = arith.constant 0 : index
    %c0_6 = arith.constant 0 : index
    %9 = vector.load %arg6[%c0_5, %c0_6] : memref<256x1xf32, #tpu.memory_space<vmem>>, vector<256x1xf32>
    tpu.vector_store %arg6[%c0_5, %c0_6], %8 {strides = array<i32>} : memref<256x1xf32, #tpu.memory_space<vmem>>, vector<256x1xf32>,
    %c0_7 = arith.constant 0 : index
    %c0_8 = arith.constant 0 : index
    %10 = vector.load %arg7[%c0_7, %c0_8] : memref<256x1xf32, #tpu.memory_space<vmem>>, vector<256x1xf32>
    %cst_9 = arith.constant dense<0xFF800000> : vector<256xf32>
    %11 = vector.multi_reduction <maximumf>, %4, %cst_9 [1] : vector<256x256xf32> to vector<256xf32>
    %12 = vector.shape_cast %11 : vector<256xf32> to vector<256x1xf32>
    %13 = arith.maximumf %10, %12 : vector<256x1xf32>
    %c0_10 = arith.constant 0 : index
    %c0_11 = arith.constant 0 : index
    %14 = vector.load %arg7[%c0_10, %c0_11] : memref<256x1xf32, #tpu.memory_space<vmem>>, vector<256x1xf32>
    tpu.vector_store %arg7[%c0_10, %c0_11], %13 {strides = array<i32>} : memref<256x1xf32, #tpu.memory_space<vmem>>, vector<256x1xf32>,
    %c0_i32_12 = arith.constant 0 : i32
    %15 = arith.cmpi eq, %arg1, %c0_i32_12 : i32
    %16 = arith.extui %15 : i1 to i32
    %c0_i32_13 = arith.constant 0 : i32
    %17 = arith.cmpi ne, %16, %c0_i32_13 : i32
    scf.if %17 {
      %c0_14 = arith.constant 0 : index
      %c0_15 = arith.constant 0 : index
      %18 = vector.load %arg6[%c0_14, %c0_15] : memref<256x1xf32, #tpu.memory_space<vmem>>, vector<256x1xf32>
      %cst_16 = arith.constant 3.906250e-03 : f32
      %19 = vector.broadcast %cst_16 : f32 to vector<256x1xf32>
      %20 = arith.mulf %18, %19 : vector<256x1xf32>
      %c0_17 = arith.constant 0 : index
      %c0_18 = arith.constant 0 : index
      %21 = vector.load %arg7[%c0_17, %c0_18] : memref<256x1xf32, #tpu.memory_space<vmem>>, vector<256x1xf32>
      %c0_19 = arith.constant 0 : index
      %c0_20 = arith.constant 0 : index
      %22 = vector.load %arg3[%c0_19, %c0_20] : memref<256x16xf32, #tpu.memory_space<vmem>>, vector<256x16xf32>
      %23 = vector.broadcast %20 : vector<256x1xf32> to vector<256x16xf32>
      %24 = arith.mulf %22, %23 : vector<256x16xf32>
      %cst_21 = arith.constant dense<0.000000e+00> : vector<16xf32>
      %25 = vector.multi_reduction <add>, %24, %cst_21 [0] : vector<256x16xf32> to vector<16xf32>
      %26 = vector.shape_cast %25 : vector<16xf32> to vector<1x16xf32>
      %cst_22 = arith.constant 0.000000e+00 : f32
      %27 = vector.broadcast %cst_22 : f32 to vector<1x16xf32>
      %28 = arith.maximumf %26, %27 : vector<1x16xf32>
      %c0_23 = arith.constant 0 : index
      %c0_24 = arith.constant 0 : index
      %29 = vector.load %arg4[%c0_23, %c0_24] : memref<256x16xf32, #tpu.memory_space<vmem>>, vector<256x16xf32>
      %30 = vector.broadcast %28 : vector<1x16xf32> to vector<256x16xf32>
      %31 = arith.mulf %29, %30 : vector<256x16xf32>
      %cst_25 = arith.constant dense<0.000000e+00> : vector<256xf32>
      %32 = vector.multi_reduction <add>, %31, %cst_25 [1] : vector<256x16xf32> to vector<256xf32>
      %33 = vector.shape_cast %32 : vector<256xf32> to vector<256x1xf32>
      %c0_26 = arith.constant 0 : index
      %c0_27 = arith.constant 0 : index
      %34 = vector.load %arg3[%c0_26, %c0_27] : memref<256x16xf32, #tpu.memory_space<vmem>>, vector<256x16xf32>
      %35 = vector.broadcast %21 : vector<256x1xf32> to vector<256x16xf32>
      %36 = arith.mulf %34, %35 : vector<256x16xf32>
      %cst_28 = arith.constant dense<0.000000e+00> : vector<16xf32>
      %37 = vector.multi_reduction <add>, %36, %cst_28 [0] : vector<256x16xf32> to vector<16xf32>
      %38 = vector.shape_cast %37 : vector<16xf32> to vector<1x16xf32>
      %cst_29 = arith.constant 0.000000e+00 : f32
      %39 = vector.broadcast %cst_29 : f32 to vector<1x16xf32>
      %40 = arith.maximumf %38, %39 : vector<1x16xf32>
      %c0_30 = arith.constant 0 : index
      %c0_31 = arith.constant 0 : index
      %41 = vector.load %arg4[%c0_30, %c0_31] : memref<256x16xf32, #tpu.memory_space<vmem>>, vector<256x16xf32>
      %42 = vector.broadcast %40 : vector<1x16xf32> to vector<256x16xf32>
      %43 = arith.mulf %41, %42 : vector<256x16xf32>
      %cst_32 = arith.constant dense<0.000000e+00> : vector<256xf32>
      %44 = vector.multi_reduction <add>, %43, %cst_32 [1] : vector<256x16xf32> to vector<256xf32>
      %45 = vector.shape_cast %44 : vector<256xf32> to vector<256x1xf32>
      %46 = arith.addf %33, %45 : vector<256x1xf32>
      %47 = arith.negf %46 : vector<256x1xf32>
      %48 = math.exp %47 : vector<256x1xf32>
      %cst_33 = arith.constant 1.000000e+00 : f32
      %49 = vector.broadcast %cst_33 : f32 to vector<256x1xf32>
      %50 = arith.addf %49, %48 : vector<256x1xf32>
      %51 = arith.divf %49, %50 : vector<256x1xf32>
      %c0_34 = arith.constant 0 : index
      %c0_35 = arith.constant 0 : index
      %c0_36 = arith.constant 0 : index
      %52 = vector.load %arg5[%c0_34, %c0_35, %c0_36] : memref<1x256x1xf32, #tpu.memory_space<vmem>>, vector<1x256x1xf32>
      %53 = vector.shape_cast %52 : vector<1x256x1xf32> to vector<256x1xf32>
      %54 = vector.shape_cast %51 : vector<256x1xf32> to vector<1x256x1xf32>
      tpu.vector_store %arg5[%c0_34, %c0_35, %c0_36], %54 {strides = array<i32>} : memref<1x256x1xf32, #tpu.memory_space<vmem>>, vector<1x256x1xf32>,
    } else {
    }
    return
  }
  func.func @transform_0(%arg0: i32, %arg1: i32) -> (i32, i32, i32) {
    %c0_i32 = arith.constant 0 : i32
    %c0_i32_0 = arith.constant 0 : i32
    return %arg0, %c0_i32, %arg1 : i32, i32, i32
  }
  func.func @transform_1(%arg0: i32, %arg1: i32) -> (i32, i32) {
    %c0_i32 = arith.constant 0 : i32
    %c0_i32_0 = arith.constant 0 : i32
    %c0_i32_1 = arith.constant 0 : i32
    return %c0_i32, %c0_i32_0 : i32, i32
  }
  func.func @transform_2(%arg0: i32, %arg1: i32) -> (i32, i32) {
    %c0_i32 = arith.constant 0 : i32
    %c0_i32_0 = arith.constant 0 : i32
    %c0_i32_1 = arith.constant 0 : i32
    return %c0_i32, %c0_i32_0 : i32, i32
  }
  func.func @transform_3(%arg0: i32, %arg1: i32) -> (i32, i32, i32) {
    %c0_i32 = arith.constant 0 : i32
    %c0_i32_0 = arith.constant 0 : i32
    %c0_i32_1 = arith.constant 0 : i32
    return %arg0, %c0_i32, %c0_i32_0 : i32, i32, i32
  }
}

</mosaic_0001>

<bundles_post_ra>
// kernel: channel_attention.1
= control target key start
LH: loop header
LB: loop body
LE: loop exit
PB: predicated region body
PF: predicated region fallthrough
CT: control target
= control target key end

     0   :  { %s2652_s12 = smov 0   ;;  %s2654_s13 = smov 0   ;;  %s4410_s0 = inlined_call_operand.vmem [shape: f32[2,256,256], index: 0, kind: input, shape index: {}]   ;;  %s4411_s1 = inlined_call_operand.vmem [shape: f32[256,16], index: 1, kind: input, shape index: {}]   ;;  %s4412_s2 = inlined_call_operand.vmem [shape: f32[256,16], index: 2, kind: input, shape index: {}]   ;;  %s4413_s3 = inlined_call_operand.vmem [shape: f32[2,256,1], index: 3, kind: output, shape index: {}]  }
   0x1   :  { %s2656_s14 = smov 0  }
   0x2 LB: > { %s25_s15 = sadd.s32 1, %s2623_s13  ;;  %p2406_p0 = scmp.ge.s32.totalorder %s2627_s14, 1  ;;  %s2627_s14 = sphi %s2656_s14, %s13_s14   ;;  %s2623_s13 = sphi %s2654_s13, %s4575_s13   ;;  %s2619_s12 = sphi %s2652_s12, %s4574_s12  }
   0x3   : > { %p27_p1 = scmp.ge.s32.totalorder %s25_s15, 2  ;;  %p156_p2 = scmp.lt.s32.totalorder %s2627_s14, 3 }
   0x5   : > { %s4577_s15 = smov (%p27_p1, %s25_s15), 0  ;;  %p157_p3 = pnand %p2406_p0, %p156_p2 }
   0x7   : > { %160 = sbr.rel (%p157_p3) target bundleno = 1019 (0x3fb), region = 32 }
   0xc   : > { %p185_p4 = scmp.lt.s32.totalorder %s2619_s12, 1  ;;  %vm203_vm0 = vcmask 7168   ;;  %vm1040_vm1 = vcmask 130048  }
   0xe   : > { %s4579_s12 = smov (!%p185_p4, %s2619_s12), 1 }
   0xf   : > { %s2445_s16 = sshll.u32 %s4579_s12, 9  ;;  %s2446_s6 = sshll.u32 %s4579_s12, 8 }
  0x10   : > { %s2676_s19 = scalar_lea.vmem %s4410_s0, %s2445_s16  ;;  %s3929_s8 = scalar_lea.vmem %s4413_s3, %s2446_s6 }
  0x11   : > { %v2679_v0 = vld [vmem:[%s2676_s19 + $0x40] sm:$0xff]  ;;  %v2682_v1 = vld [vmem:[%s2676_s19 + $0x48] sm:$0xff]  ;;  %v2703_v9 = vld [vmem:[%s2676_s19 + $0x50] sm:$0xff] }
  0x12   : > { %v2685_v2 = vld [vmem:[%s2676_s19 + $0x20] sm:$0xff]  ;;  %v376_v3 = vadd.f32 %v2682_v1, %v2679_v0  ;;  %v2690_v4 = vld [vmem:[%s2676_s19 + $0x28] sm:$0xff]  ;;  %v2706_v10 = vld [vmem:[%s2676_s19 + $0x58] sm:$0xff] }
  0x13   : > { %v2693_v5 = vld [vmem:[%s2676_s19] sm:$0xff]  ;;  %v2696_v6 = vld [vmem:[%s2676_s19 + $0x8] sm:$0xff]  ;;  %v370_v7 = vadd.f32 %v2690_v4, %v2685_v2  ;;  %v2709_v11 = vld [vmem:[%s2676_s19 + $0x30] sm:$0xff]  ;;  %v379_v15 = vadd.f32 %v2706_v10, %v2703_v9 }
  0x14   : > { %v364_v8 = vadd.f32 %v2696_v6, %v2693_v5  ;;  %377 = vadd.xlane.f32.xlu2 %v376_v3  ;;  %v2712_v12 = vld [vmem:[%s2676_s19 + $0x38] sm:$0xff]  ;;  %v2715_v13 = vld [vmem:[%s2676_s19 + $0x10] sm:$0xff]  ;;  %v2727_v18 = vld [vmem:[%s2676_s19 + $0x80] sm:$0xff]  ;;  %v557_v63 = vmax.f32 %v2693_v5, %v2696_v6 }
  0x15   : > { %371 = vadd.xlane.f32.xlu1 %v370_v7  ;;  %v2718_v14 = vld [vmem:[%s2676_s19 + $0x18] sm:$0xff]  ;;  %v373_v16 = vadd.f32 %v2712_v12, %v2709_v11  ;;  %v2730_v19 = vld [vmem:[%s2676_s19 + $0x88] sm:$0xff]  ;;  %v2733_v20 = vld [vmem:[%s2676_s19 + $0x70] sm:$0xff] }
  0x16   : > { %365 = vadd.xlane.f32.xlu0 %v364_v8  ;;  %v367_v17 = vadd.f32 %v2718_v14, %v2715_v13  ;;  %v2736_v21 = vld [vmem:[%s2676_s19 + $0x78] sm:$0xff]  ;;  %v2739_v22 = vld [vmem:[%s2676_s19 + $0x60] sm:$0xff]  ;;  %v2742_v23 = vld [vmem:[%s2676_s19 + $0x68] sm:$0xff]  ;;  %v388_v24 = vadd.f32 %v2730_v19, %v2727_v18 }
  0x17   : > { %v385_v25 = vadd.f32 %v2736_v21, %v2733_v20  ;;  %v382_v26 = vadd.f32 %v2742_v23, %v2739_v22  ;;  %v2751_v27 = vld [vmem:[%s2676_s19 + $0xb0] sm:$0xff]  ;;  %v2754_v28 = vld [vmem:[%s2676_s19 + $0xb8] sm:$0xff]  ;;  %v2757_v29 = vld [vmem:[%s2676_s19 + $0xa0] sm:$0xff] }
  0x18   : > { %v2760_v30 = vld [vmem:[%s2676_s19 + $0xa8] sm:$0xff]  ;;  %v2763_v31 = vld [vmem:[%s2676_s19 + $0x90] sm:$0xff]  ;;  %v2766_v32 = vld [vmem:[%s2676_s19 + $0x98] sm:$0xff]  ;;  %v397_v33 = vadd.f32 %v2754_v28, %v2751_v27 }
  0x19   : > { %v394_v34 = vadd.f32 %v2760_v30, %v2757_v29  ;;  %v391_v35 = vadd.f32 %v2766_v32, %v2763_v31  ;;  %v2775_v36 = vld [vmem:[%s2676_s19 + $0xe0] sm:$0xff]  ;;  %v2778_v37 = vld [vmem:[%s2676_s19 + $0xe8] sm:$0xff]  ;;  %v2781_v38 = vld [vmem:[%s2676_s19 + $0xd0] sm:$0xff] }
  0x1a   : > { %v2784_v39 = vld [vmem:[%s2676_s19 + $0xd8] sm:$0xff]  ;;  %v2787_v40 = vld [vmem:[%s2676_s19 + $0xc0] sm:$0xff]  ;;  %v2790_v41 = vld [vmem:[%s2676_s19 + $0xc8] sm:$0xff]  ;;  %v406_v42 = vadd.f32 %v2778_v37, %v2775_v36 }
  0x1b   : > { %v403_v43 = vadd.f32 %v2784_v39, %v2781_v38  ;;  %v400_v44 = vadd.f32 %v2790_v41, %v2787_v40  ;;  %v2799_v45 = vld [vmem:[%s2676_s19 + $0x110] sm:$0xff]  ;;  %v2802_v46 = vld [vmem:[%s2676_s19 + $0x118] sm:$0xff]  ;;  %v2805_v47 = vld [vmem:[%s2676_s19 + $0x100] sm:$0xff] }
  0x1c   : > { %380 = vadd.xlane.f32.xlu2 %v379_v15  ;;  %v2808_v48 = vld [vmem:[%s2676_s19 + $0x108] sm:$0xff]  ;;  %v2811_v49 = vld [vmem:[%s2676_s19 + $0xf0] sm:$0xff]  ;;  %v2814_v50 = vld [vmem:[%s2676_s19 + $0xf8] sm:$0xff]  ;;  %v415_v51 = vadd.f32 %v2802_v46, %v2799_v45  ;;  %v2629_v15 = vmov 0.0  }
  0x1d   : > { %374 = vadd.xlane.f32.xlu1 %v373_v16  ;;  %v412_v52 = vadd.f32 %v2808_v48, %v2805_v47  ;;  %v409_v53 = vadd.f32 %v2814_v50, %v2811_v49  ;;  %v2823_v54 = vld [vmem:[%s2676_s19 + $0x140] sm:$0xff]  ;;  %v2826_v55 = vld [vmem:[%s2676_s19 + $0x148] sm:$0xff]  ;;  %v2829_v56 = vld [vmem:[%s2676_s19 + $0x130] sm:$0xff]  ;;  %208 = vst.msk [vmem:[#allocation2 + $0x20] sm:$0xff] %vm203_vm0, %v2629_v15 }
  0x1e   : > { %368 = vadd.xlane.f32.xlu0 %v367_v17  ;;  %v2832_v57 = vld [vmem:[%s2676_s19 + $0x138] sm:$0xff]  ;;  %v2835_v58 = vld [vmem:[%s2676_s19 + $0x120] sm:$0xff]  ;;  %v2838_v59 = vld [vmem:[%s2676_s19 + $0x128] sm:$0xff]  ;;  %v424_v60 = vadd.f32 %v2826_v55, %v2823_v54  ;;  %204 = vst.msk [vmem:[#allocation2] sm:$0xff] %vm203_vm0, %v2629_v15 }
  0x1f   : > { %v421_v61 = vadd.f32 %v2832_v57, %v2829_v56  ;;  %v418_v62 = vadd.f32 %v2838_v59, %v2835_v58  ;;  %v2849_v3 = vld [vmem:[%s2676_s19 + $0x170] sm:$0xff]  ;;  %v2852_v7 = vld [vmem:[%s2676_s19 + $0x178] sm:$0xff]  ;;  %v2855_v8 = vld [vmem:[%s2676_s19 + $0x160] sm:$0xff]  ;;  %205 = vst.msk [vmem:[#allocation2 + $0x8] sm:$0xff] %vm203_vm0, %v2629_v15 }
  0x20   : > { %v2860_v16 = vld [vmem:[%s2676_s19 + $0x168] sm:$0xff]  ;;  %v2863_v5 = vld [vmem:[%s2676_s19 + $0x150] sm:$0xff]  ;;  %v2866_v6 = vld [vmem:[%s2676_s19 + $0x158] sm:$0xff]  ;;  %v433_v17 = vadd.f32 %v2852_v7, %v2849_v3  ;;  %206 = vst.msk [vmem:[#allocation2 + $0x10] sm:$0xff] %vm203_vm0, %v2629_v15 }
  0x21   : > { %207 = vst.msk [vmem:[#allocation2 + $0x18] sm:$0xff] %vm203_vm0, %v2629_v15 }
  0x22   : > { %209 = vst.msk [vmem:[#allocation2 + $0x28] sm:$0xff] %vm203_vm0, %v2629_v15 }
  0x23   : > { %210 = vst.msk [vmem:[#allocation2 + $0x30] sm:$0xff] %vm203_vm0, %v2629_v15 }
  0x24   : > { %389 = vadd.xlane.f32.xlu2 %v388_v24  ;;  %v430_v24 = vadd.f32 %v2860_v16, %v2855_v8  ;;  %211 = vst.msk [vmem:[#allocation2 + $0x38] sm:$0xff] %vm203_vm0, %v2629_v15 }
  0x25   : > { %386 = vadd.xlane.f32.xlu1 %v385_v25  ;;  %v427_v25 = vadd.f32 %v2866_v6, %v2863_v5  ;;  %212 = vst.msk [vmem:[#allocation2 + $0x40] sm:$0xff] %vm203_vm0, %v2629_v15 }
  0x26   : > { %383 = vadd.xlane.f32.xlu0 %v382_v26  ;;  %v566_v26 = vmax.f32 %v2709_v11, %v2712_v12  ;;  %v2890_v11 = vld [vmem:[%s2676_s19 + $0x198] sm:$0xff]  ;;  %v2893_v12 = vld [vmem:[%s2676_s19 + $0x180] sm:$0xff]  ;;  %213 = vst.msk [vmem:[#allocation2 + $0x48] sm:$0xff] %vm203_vm0, %v2629_v15 }
  0x27   : > { %214 = vst.msk [vmem:[#allocation2 + $0x50] sm:$0xff] %vm203_vm0, %v2629_v15 }
  0x28   : > { %215 = vst.msk [vmem:[#allocation2 + $0x58] sm:$0xff] %vm203_vm0, %v2629_v15 }
  0x29   : > { %216 = vst.msk [vmem:[#allocation2 + $0x60] sm:$0xff] %vm203_vm0, %v2629_v15 }
  0x2a   : > { %217 = vst.msk [vmem:[#allocation2 + $0x68] sm:$0xff] %vm203_vm0, %v2629_v15 }
  0x2b   : > { %218 = vst.msk [vmem:[#allocation2 + $0x70] sm:$0xff] %vm203_vm0, %v2629_v15 }
  0x2c   : > { %398 = vadd.xlane.f32.xlu2 %v397_v33  ;;  %v560_v33 = vmax.f32 %v2715_v13, %v2718_v14  ;;  %v2896_v13 = vld [vmem:[%s2676_s19 + $0x188] sm:$0xff]  ;;  %219 = vst.msk [vmem:[#allocation2 + $0x78] sm:$0xff] %vm203_vm0, %v2629_v15 }
  0x2d   : > { %395 = vadd.xlane.f32.xlu1 %v394_v34  ;;  %v2879_v34 = vld [vmem:[%s2676_s19 + $0x1a0] sm:$0xff]  ;;  %220 = vst.msk [vmem:[#allocation2 + $0x80] sm:$0xff] %vm203_vm0, %v2629_v15 }
  0x2e   : > { %392 = vadd.xlane.f32.xlu0 %v391_v35  ;;  %v2882_v35 = vld [vmem:[%s2676_s19 + $0x1a8] sm:$0xff]  ;;  %221 = vst.msk [vmem:[#allocation2 + $0x88] sm:$0xff] %vm203_vm0, %v2629_v15 }
  0x2f   : > { %v442_v14 = vadd.f32 %v2882_v35, %v2879_v34  ;;  %222 = vst.msk [vmem:[#allocation2 + $0x90] sm:$0xff] %vm203_vm0, %v2629_v15 }
  0x30   : > { %223 = vst.msk [vmem:[#allocation2 + $0x98] sm:$0xff] %vm203_vm0, %v2629_v15 }
  0x31   : > { %224 = vst.msk [vmem:[#allocation2 + $0xa0] sm:$0xff] %vm203_vm0, %v2629_v15 }
  0x32   : > { %225 = vst.msk [vmem:[#allocation2 + $0xa8] sm:$0xff] %vm203_vm0, %v2629_v15 }
  0x33   : > { %226 = vst.msk [vmem:[#allocation2 + $0xb0] sm:$0xff] %vm203_vm0, %v2629_v15 }
  0x34   : > { %407 = vadd.xlane.f32.xlu2 %v406_v42  ;;  %v2885_v42 = vld [vmem:[%s2676_s19 + $0x190] sm:$0xff]  ;;  %227 = vst.msk [vmem:[#allocation2 + $0xb8] sm:$0xff] %vm203_vm0, %v2629_v15 }
  0x35   : > { %404 = vadd.xlane.f32.xlu1 %v403_v43  ;;  %v572_v43 = vmax.f32 %v2703_v9, %v2706_v10  ;;  %v575_v9 = vmax.f32 %v2739_v22, %v2742_v23  ;;  %v2907_v10 = vld [vmem:[%s2676_s19 + $0x1d0] sm:$0xff]  ;;  %v2924_v22 = vld [vmem:[%s2676_s19 + $0x1b8] sm:$0xff]  ;;  %228 = vst.msk [vmem:[#allocation2 + $0xc0] sm:$0xff] %vm203_vm0, %v2629_v15 }
  0x36   : > { %401 = vadd.xlane.f32.xlu0 %v400_v44  ;;  %v439_v44 = vadd.f32 %v2890_v11, %v2885_v42  ;;  %229 = vst.msk [vmem:[#allocation2 + $0xc8] sm:$0xff] %vm203_vm0, %v2629_v15 }
  0x37   : > { %230 = vst.msk [vmem:[#allocation2 + $0xd0] sm:$0xff] %vm203_vm0, %v2629_v15 }
  0x38   : > { %231 = vst.msk [vmem:[#allocation2 + $0xd8] sm:$0xff] %vm203_vm0, %v2629_v15 }
  0x39   : > { %232 = vst.msk [vmem:[#allocation2 + $0xe0] sm:$0xff] %vm203_vm0, %v2629_v15 }
  0x3a   : > { %233 = vst.msk [vmem:[#allocation2 + $0xe8] sm:$0xff] %vm203_vm0, %v2629_v15 }
  0x3b   : > { %234 = vst.msk [vmem:[#allocation2 + $0xf0] sm:$0xff] %vm203_vm0, %v2629_v15 }
  0x3c   : > { %416 = vadd.xlane.f32.xlu2 %v415_v51  ;;  %v436_v51 = vadd.f32 %v2896_v13, %v2893_v12  ;;  %235 = vst.msk [vmem:[#allocation2 + $0xf8] sm:$0xff] %vm203_vm0, %v2629_v15 }
  0x3d   : > { %413 = vadd.xlane.f32.xlu1 %v412_v52  ;;  %v2910_v52 = vld [vmem:[%s2676_s19 + $0x1d8] sm:$0xff] }
  0x3e   : > { %410 = vadd.xlane.f32.xlu0 %v409_v53  ;;  %v2913_v53 = vld [vmem:[%s2676_s19 + $0x1c0] sm:$0xff]  ;;  %v451_v23 = vadd.f32 %v2910_v52, %v2907_v10 }
  0x44   : > { %425 = vadd.xlane.f32.xlu2 %v424_v60  ;;  %v581_v60 = vmax.f32 %v2727_v18, %v2730_v19  ;;  %v2936_v18 = vld [vmem:[%s2676_s19 + $0x1f8] sm:$0xff]  ;;  %v2939_v19 = vld [vmem:[%s2676_s19 + $0x1e0] sm:$0xff] }
  0x45   : > { %422 = vadd.xlane.f32.xlu1 %v421_v61  ;;  %v2918_v61 = vld [vmem:[%s2676_s19 + $0x1c8] sm:$0xff] }
  0x46   : > { %419 = vadd.xlane.f32.xlu0 %v418_v62  ;;  %v2921_v62 = vld [vmem:[%s2676_s19 + $0x1b0] sm:$0xff] }
  0x4c   : > { %434 = vadd.xlane.f32.xlu2 %v433_v17  ;;  %v448_v17 = vadd.f32 %v2918_v61, %v2913_v53 }
  0x4d   : > { %431 = vadd.xlane.f32.xlu1 %v430_v24  ;;  %v445_v24 = vadd.f32 %v2924_v22, %v2921_v62 }
  0x4e   : > { %428 = vadd.xlane.f32.xlu0 %v427_v25  ;;  %v2933_v25 = vld [vmem:[%s2676_s19 + $0x1f0] sm:$0xff] }
  0x54   : > { %443 = vadd.xlane.f32.xlu2 %v442_v14  ;;  %v2942_v14 = vld [vmem:[%s2676_s19 + $0x1e8] sm:$0xff] }
  0x55   : > { %440 = vadd.xlane.f32.xlu1 %v439_v44  ;;  %v457_v44 = vadd.f32 %v2936_v18, %v2933_v25 }
  0x56   : > { %437 = vadd.xlane.f32.xlu0 %v436_v51  ;;  %v454_v51 = vadd.f32 %v2942_v14, %v2939_v19 }
  0x5c   : > { %452 = vadd.xlane.f32.xlu2 %v451_v23  ;;  %v569_v23 = vmax.f32 %v2679_v0, %v2682_v1  ;;  %v584_v0 = vmax.f32 %v2763_v31, %v2766_v32  ;;  %v578_v1 = vmax.f32 %v2733_v20, %v2736_v21  ;;  %v587_v20 = vmax.f32 %v2757_v29, %v2760_v30  ;;  %v336_v21 = vld [vmem:[#allocation2 + $0x20] sm:$0xff]  ;;  %v334_v31 = vld [vmem:[#allocation2 + $0x10] sm:$0xff]  ;;  %v337_v30 = vld [vmem:[#allocation2 + $0x28] sm:$0xff] }
  0x5d   : > { %449 = vadd.xlane.f32.xlu1 %v448_v17  ;;  %v332_v32 = vld [vmem:[#allocation2] sm:$0xff] }
  0x5e   : > { %446 = vadd.xlane.f32.xlu0 %v445_v24  ;;  %v605_v24 = vmax.f32 %v2805_v47, %v2808_v48  ;;  %v617_v48 = vmax.f32 %v2823_v54, %v2826_v55  ;;  %v629_v54 = vmax.f32 %v2893_v12, %v2896_v13  ;;  %v345_v12 = vld [vmem:[#allocation2 + $0x68] sm:$0xff]  ;;  %v344_v13 = vld [vmem:[#allocation2 + $0x60] sm:$0xff] }
  0x64   : > { %558 = vmax.xlane.f32.xlu2 %v557_v63  ;;  %v4431_v63 = vmax.f32 %v2685_v2, %v2690_v4  ;;  %v593_v2 = vmax.f32 %v2787_v40, %v2790_v41  ;;  %v590_v4 = vmax.f32 %v2751_v27, %v2754_v28  ;;  %v602_v40 = vmax.f32 %v2811_v49, %v2814_v50  ;;  %v335_v49 = vld [vmem:[#allocation2 + $0x18] sm:$0xff]  ;;  %v333_v50 = vld [vmem:[#allocation2 + $0x8] sm:$0xff] }
  0x65   : > { %458 = vadd.xlane.f32.xlu1 %v457_v44  ;;  %v599_v27 = vmax.f32 %v2775_v36, %v2778_v37  ;;  %v596_v28 = vmax.f32 %v2781_v38, %v2784_v39  ;;  %v611_v36 = vmax.f32 %v2835_v58, %v2838_v59  ;;  %v608_v39 = vmax.f32 %v2799_v45, %v2802_v46  ;;  %v339_v58 = vld [vmem:[#allocation2 + $0x38] sm:$0xff]  ;;  %v338_v59 = vld [vmem:[#allocation2 + $0x30] sm:$0xff] }
  0x66   : > { %455 = vadd.xlane.f32.xlu0 %v454_v51  ;;  %v340_v51 = vld [vmem:[#allocation2 + $0x40] sm:$0xff]  ;;  %v620_v45 = vmax.f32 %v2863_v5, %v2866_v6  ;;  %v342_v5 = vld [vmem:[#allocation2 + $0x50] sm:$0xff]  ;;  %v341_v6 = vld [vmem:[#allocation2 + $0x48] sm:$0xff] }
  0x6c   : > { %567 = vmax.xlane.f32.xlu2 %v566_v26 }
  0x6d   : > { %564 = vmax.xlane.f32.xlu1 %v4431_v63 }
  0x6e   : > { %561 = vmax.xlane.f32.xlu0 %v560_v33 }
  0x74   : > { %576 = vmax.xlane.f32.xlu2 %v575_v9 }
  0x75   : > { %573 = vmax.xlane.f32.xlu1 %v572_v43 }
  0x76   : > { %570 = vmax.xlane.f32.xlu0 %v569_v23 }
  0x7c   : > { %585 = vmax.xlane.f32.xlu2 %v584_v0 }
  0x7d   : > { %582 = vmax.xlane.f32.xlu1 %v581_v60 }
  0x7e   : > { %579 = vmax.xlane.f32.xlu0 %v578_v1  ;;  %v614_v1 = vmax.f32 %v2829_v56, %v2832_v57  ;;  %v626_v57 = vmax.f32 %v2849_v3, %v2852_v7  ;;  %v638_v3 = vmax.f32 %v2921_v62, %v2924_v22  ;;  %v349_v62 = vld [vmem:[#allocation2 + $0x88] sm:$0xff]  ;;  %v348_v22 = vld [vmem:[#allocation2 + $0x80] sm:$0xff] }
  0x84   : > { %594 = vmax.xlane.f32.xlu2 %v593_v2 }
  0x85   : > { %591 = vmax.xlane.f32.xlu1 %v590_v4  ;;  %v343_v4 = vld [vmem:[#allocation2 + $0x58] sm:$0xff] }
  0x86   : > { %588 = vmax.xlane.f32.xlu0 %v587_v20 }
  0x87   : > { %v378_v26 = vpop.xlane.xlu2 %377 }
  0x88   : > { %v464_v33 = vadd.f32 %v378_v26, %v336_v21  ;;  %v372_v43 = vpop.xlane.xlu1 %371 }
  0x89   : > { %v366_v41 = vpop.xlane.xlu0 %365  ;;  %v462_v15 = vadd.f32 %v372_v43, %v334_v31 }
  0x8a   : > { %v460_v29 = vadd.f32 %v366_v41, %v332_v32  ;;  %497 = vst.msk [vmem:[#allocation2 + $0x20] sm:$0xff] %vm203_vm0, %v464_v33  ;;  %v623_v32 = vmax.f32 %v2855_v8, %v2860_v16  ;;  %v346_v33 = vld [vmem:[#allocation2 + $0x70] sm:$0xff]  ;;  %v635_v16 = vmax.f32 %v2879_v34, %v2882_v35 }
  0x8b   : > { %495 = vst.msk [vmem:[#allocation2 + $0x10] sm:$0xff] %vm203_vm0, %v462_v15  ;;  %v632_v15 = vmax.f32 %v2885_v42, %v2890_v11  ;;  %v647_v11 = vmax.f32 %v2939_v19, %v2942_v14  ;;  %v351_v19 = vld [vmem:[#allocation2 + $0x98] sm:$0xff]  ;;  %v350_v14 = vld [vmem:[#allocation2 + $0x90] sm:$0xff] }
  0x8c   : > { %603 = vmax.xlane.f32.xlu2 %v602_v40  ;;  %493 = vst.msk [vmem:[#allocation2] sm:$0xff] %vm203_vm0, %v460_v29  ;;  %v347_v29 = vld [vmem:[#allocation2 + $0x78] sm:$0xff] }
  0x8d   : > { %600 = vmax.xlane.f32.xlu1 %v599_v27 }
  0x8e   : > { %597 = vmax.xlane.f32.xlu0 %v596_v28  ;;  %v2630_v28 = vmov 0  }
  0x8f   : > { %v381_v9 = vpop.xlane.xlu2 %380  ;;  %2474 = vset.pattern.permute.xlu1 %v2630_v28  ;;  %2475 = vset.pattern.permute.xlu2 %v2630_v28 }
  0x90   : > { %v465_v60 = vadd.f32 %v381_v9, %v337_v30  ;;  %v375_v17 = vpop.xlane.xlu1 %374  ;;  %2476 = vset.pattern.permute.xlu0 %v2630_v28  ;;  %v641_v9 = vmax.f32 %v2913_v53, %v2918_v61  ;;  %v650_v53 = vmax.f32 %v2933_v25, %v2936_v18 }
  0x91   : > { %v369_v37 = vpop.xlane.xlu0 %368  ;;  %v463_v38 = vadd.f32 %v375_v17, %v335_v49  ;;  %v352_v17 = vld [vmem:[#allocation2 + $0xa0] sm:$0xff] }
  0x92   : > { %v461_v44 = vadd.f32 %v369_v37, %v333_v50  ;;  %498 = vst.msk [vmem:[#allocation2 + $0x28] sm:$0xff] %vm203_vm0, %v465_v60  ;;  %v644_v50 = vmax.f32 %v2907_v10, %v2910_v52 }
  0x93   : > { %496 = vst.msk [vmem:[#allocation2 + $0x18] sm:$0xff] %vm203_vm0, %v463_v38 }
  0x94   : > { %612 = vmax.xlane.f32.xlu2 %v611_v36  ;;  %494 = vst.msk [vmem:[#allocation2 + $0x8] sm:$0xff] %vm203_vm0, %v461_v44  ;;  %v354_v44 = vld [vmem:[#allocation2 + $0xb0] sm:$0xff] }
  0x95   : > { %609 = vmax.xlane.f32.xlu1 %v608_v39  ;;  %v2631_v39 = vmov -inf  }
  0x96   : > { %606 = vmax.xlane.f32.xlu0 %v605_v24  ;;  %236 = vst.msk [vmem:[#allocation3] sm:$0xff] %vm203_vm0, %v2631_v39  ;;  %v355_v24 = vld [vmem:[#allocation2 + $0xb8] sm:$0xff] }
  0x97   : > { %v390_v63 = vpop.xlane.xlu2 %389  ;;  %237 = vst.msk [vmem:[#allocation3 + $0x8] sm:$0xff] %vm203_vm0, %v2631_v39 }
  0x98   : > { %v468_v23 = vadd.f32 %v390_v63, %v340_v51  ;;  %v387_v0 = vpop.xlane.xlu1 %386  ;;  %v353_v51 = vld [vmem:[#allocation2 + $0xa8] sm:$0xff]  ;;  %238 = vst.msk [vmem:[#allocation3 + $0x10] sm:$0xff] %vm203_vm0, %v2631_v39 }
  0x99   : > { %v384_v46 = vpop.xlane.xlu0 %383  ;;  %v467_v47 = vadd.f32 %v387_v0, %v339_v58  ;;  %239 = vst.msk [vmem:[#allocation3 + $0x18] sm:$0xff] %vm203_vm0, %v2631_v39  ;;  %v358_v0 = vld [vmem:[#allocation2 + $0xd0] sm:$0xff]  ;;  %v725_v28 = vld [vmem:[#allocation2 + $0x28] sm:$0xff] }
  0x9a   : > { %v466_v2 = vadd.f32 %v384_v46, %v338_v59  ;;  %501 = vst.msk [vmem:[#allocation2 + $0x40] sm:$0xff] %vm203_vm0, %v468_v23  ;;  %v356_v46 = vld [vmem:[#allocation2 + $0xc0] sm:$0xff] }
  0x9b   : > { %500 = vst.msk [vmem:[#allocation2 + $0x38] sm:$0xff] %vm203_vm0, %v467_v47 }
  0x9c   : > { %621 = vmax.xlane.f32.xlu2 %v620_v45  ;;  %499 = vst.msk [vmem:[#allocation2 + $0x30] sm:$0xff] %vm203_vm0, %v466_v2  ;;  %v357_v45 = vld [vmem:[#allocation2 + $0xc8] sm:$0xff] }
  0x9d   : > { %618 = vmax.xlane.f32.xlu1 %v617_v48  ;;  %240 = vst.msk [vmem:[#allocation3 + $0x20] sm:$0xff] %vm203_vm0, %v2631_v39  ;;  %v721_v48 = vld [vmem:[#allocation2 + $0x8] sm:$0xff] }
  0x9e   : > { %615 = vmax.xlane.f32.xlu0 %v614_v1  ;;  %241 = vst.msk [vmem:[#allocation3 + $0x28] sm:$0xff] %vm203_vm0, %v2631_v39 }
  0x9f   : > { %v399_v20 = vpop.xlane.xlu2 %398  ;;  %242 = vst.msk [vmem:[#allocation3 + $0x30] sm:$0xff] %vm203_vm0, %v2631_v39 }
  0xa0   : > { %v471_v21 = vadd.f32 %v399_v20, %v343_v4  ;;  %v396_v31 = vpop.xlane.xlu1 %395  ;;  %243 = vst.msk [vmem:[#allocation3 + $0x38] sm:$0xff] %vm203_vm0, %v2631_v39 }
  0xa1   : > { %v393_v55 = vpop.xlane.xlu0 %392  ;;  %v470_v56 = vadd.f32 %v396_v31, %v342_v5  ;;  %244 = vst.msk [vmem:[#allocation3 + $0x40] sm:$0xff] %vm203_vm0, %v2631_v39 }
  0xa2   : > { %v469_v26 = vadd.f32 %v393_v55, %v341_v6  ;;  %504 = vst.msk [vmem:[#allocation2 + $0x58] sm:$0xff] %vm203_vm0, %v471_v21  ;;  %v720_v6 = vld [vmem:[#allocation2] sm:$0xff]  ;;  %v753_v21 = vmul.f32 0.00390625, %v721_v48  ;;  %v361_v55 = vld [vmem:[#allocation2 + $0xe8] sm:$0xff] }
  0xa3   : > { %503 = vst.msk [vmem:[#allocation2 + $0x50] sm:$0xff] %vm203_vm0, %v470_v56  ;;  %v752_v31 = vmul.f32 0.00390625, %v720_v6  ;;  %v360_v56 = vld [vmem:[#allocation2 + $0xe0] sm:$0xff] }
  0xa4   : > { %630 = vmax.xlane.f32.xlu2 %v629_v54  ;;  %502 = vst.msk [vmem:[#allocation2 + $0x48] sm:$0xff] %vm203_vm0, %v469_v26  ;;  %v722_v54 = vld [vmem:[#allocation2 + $0x10] sm:$0xff]  ;;  %v723_v26 = vld [vmem:[#allocation2 + $0x18] sm:$0xff] }
  0xa5   : > { %627 = vmax.xlane.f32.xlu1 %v626_v57  ;;  %245 = vst.msk [vmem:[#allocation3 + $0x48] sm:$0xff] %vm203_vm0, %v2631_v39 }
  0xa6   : > { %624 = vmax.xlane.f32.xlu0 %v623_v32  ;;  %246 = vst.msk [vmem:[#allocation3 + $0x50] sm:$0xff] %vm203_vm0, %v2631_v39  ;;  %v754_v32 = vmul.f32 0.00390625, %v722_v54 }
  0xa7   : > { %v408_v43 = vpop.xlane.xlu2 %407  ;;  %247 = vst.msk [vmem:[#allocation3 + $0x58] sm:$0xff] %vm203_vm0, %v2631_v39 }
  0xa8   : > { %v474_v40 = vadd.f32 %v408_v43, %v346_v33  ;;  %v405_v41 = vpop.xlane.xlu1 %404  ;;  %248 = vst.msk [vmem:[#allocation3 + $0x60] sm:$0xff] %vm203_vm0, %v2631_v39 }
  0xa9   : > { %v402_v7 = vpop.xlane.xlu0 %401  ;;  %v473_v8 = vadd.f32 %v405_v41, %v345_v12  ;;  %249 = vst.msk [vmem:[#allocation3 + $0x68] sm:$0xff] %vm203_vm0, %v2631_v39  ;;  %v755_v41 = vmul.f32 0.00390625, %v723_v26 }
  0xaa   : > { %v472_v27 = vadd.f32 %v402_v7, %v344_v13  ;;  %507 = vst.msk [vmem:[#allocation2 + $0x70] sm:$0xff] %vm203_vm0, %v474_v40  ;;  %v724_v40 = vld [vmem:[#allocation2 + $0x20] sm:$0xff] }
  0xab   : > { %506 = vst.msk [vmem:[#allocation2 + $0x68] sm:$0xff] %vm203_vm0, %v473_v8  ;;  %v729_v7 = vld [vmem:[#allocation2 + $0x48] sm:$0xff]  ;;  %v525_v8 = vld [vmem:[#allocation3] sm:$0xff] }
  0xac   : > { %639 = vmax.xlane.f32.xlu2 %v638_v3  ;;  %505 = vst.msk [vmem:[#allocation2 + $0x60] sm:$0xff] %vm203_vm0, %v472_v27  ;;  %v756_v3 = vmul.f32 0.00390625, %v724_v40  ;;  %v761_v27 = vmul.f32 0.00390625, %v729_v7 }
  0xad   : > { %636 = vmax.xlane.f32.xlu1 %v635_v16  ;;  %250 = vst.msk [vmem:[#allocation3 + $0x70] sm:$0xff] %vm203_vm0, %v2631_v39  ;;  %v363_v16 = vld [vmem:[#allocation2 + $0xf8] sm:$0xff] }
  0xae   : > { %633 = vmax.xlane.f32.xlu0 %v632_v15  ;;  %251 = vst.msk [vmem:[#allocation3 + $0x78] sm:$0xff] %vm203_vm0, %v2631_v39  ;;  %v536_v7 = vld [vmem:[#allocation3 + $0x58] sm:$0xff] }
  0xaf   : > { %v417_v34 = vpop.xlane.xlu2 %416  ;;  %252 = vst.msk [vmem:[#allocation3 + $0x80] sm:$0xff] %vm203_vm0, %v2631_v39 }
  0xb0   : > { %v477_v35 = vadd.f32 %v417_v34, %v349_v62  ;;  %v414_v42 = vpop.xlane.xlu1 %413  ;;  %253 = vst.msk [vmem:[#allocation3 + $0x88] sm:$0xff] %vm203_vm0, %v2631_v39 }
  0xb1   : > { %v411_v30 = vpop.xlane.xlu0 %410  ;;  %v476_v49 = vadd.f32 %v414_v42, %v348_v22  ;;  %254 = vst.msk [vmem:[#allocation3 + $0x90] sm:$0xff] %vm203_vm0, %v2631_v39  ;;  %v757_v42 = vmul.f32 0.00390625, %v725_v28 }
  0xb2   : > { %v475_v60 = vadd.f32 %v411_v30, %v347_v29  ;;  %510 = vst.msk [vmem:[#allocation2 + $0x88] sm:$0xff] %vm203_vm0, %v477_v35  ;;  %v726_v35 = vld [vmem:[#allocation2 + $0x30] sm:$0xff] }
  0xb3   : > { %509 = vst.msk [vmem:[#allocation2 + $0x80] sm:$0xff] %vm203_vm0, %v476_v49  ;;  %v732_v30 = vld [vmem:[#allocation2 + $0x60] sm:$0xff]  ;;  %v359_v49 = vld [vmem:[#allocation2 + $0xd8] sm:$0xff] }
  0xb4   : > { %648 = vmax.xlane.f32.xlu2 %v647_v11  ;;  %508 = vst.msk [vmem:[#allocation2 + $0x78] sm:$0xff] %vm203_vm0, %v475_v60  ;;  %v758_v11 = vmul.f32 0.00390625, %v726_v35  ;;  %v727_v60 = vld [vmem:[#allocation2 + $0x38] sm:$0xff] }
  0xb5   : > { %645 = vmax.xlane.f32.xlu1 %v644_v50  ;;  %255 = vst.msk [vmem:[#allocation3 + $0x98] sm:$0xff] %vm203_vm0, %v2631_v39 }
  0xb6   : > { %642 = vmax.xlane.f32.xlu0 %v641_v9  ;;  %256 = vst.msk [vmem:[#allocation3 + $0xa0] sm:$0xff] %vm203_vm0, %v2631_v39  ;;  %v764_v9 = vmul.f32 0.00390625, %v732_v30 }
  0xb7   : > { %v426_v36 = vpop.xlane.xlu2 %425  ;;  %257 = vst.msk [vmem:[#allocation3 + $0xa8] sm:$0xff] %vm203_vm0, %v2631_v39 }
  0xb8   : > { %v480_v37 = vadd.f32 %v426_v36, %v352_v17  ;;  %v423_v38 = vpop.xlane.xlu1 %422  ;;  %258 = vst.msk [vmem:[#allocation3 + $0xb0] sm:$0xff] %vm203_vm0, %v2631_v39  ;;  %v527_v17 = vld [vmem:[#allocation3 + $0x10] sm:$0xff]  ;;  %v528_v36 = vld [vmem:[#allocation3 + $0x18] sm:$0xff] }
  0xb9   : > { %v420_v10 = vpop.xlane.xlu0 %419  ;;  %v479_v52 = vadd.f32 %v423_v38, %v351_v19  ;;  %259 = vst.msk [vmem:[#allocation3 + $0xb8] sm:$0xff] %vm203_vm0, %v2631_v39 }
  0xba   : > { %v478_v61 = vadd.f32 %v420_v10, %v350_v14  ;;  %513 = vst.msk [vmem:[#allocation2 + $0xa0] sm:$0xff] %vm203_vm0, %v480_v37  ;;  %v728_v37 = vld [vmem:[#allocation2 + $0x40] sm:$0xff]  ;;  %v362_v10 = vld [vmem:[#allocation2 + $0xf0] sm:$0xff] }
  0xbb   : > { %512 = vst.msk [vmem:[#allocation2 + $0x98] sm:$0xff] %vm203_vm0, %v479_v52  ;;  %v759_v52 = vmul.f32 0.00390625, %v727_v60 }
  0xbc   : > { %511 = vst.msk [vmem:[#allocation2 + $0x90] sm:$0xff] %vm203_vm0, %v478_v61 }
  0xbd   : > { %260 = vst.msk [vmem:[#allocation3 + $0xc0] sm:$0xff] %vm203_vm0, %v2631_v39 }
  0xbe   : > { %651 = vmax.xlane.f32.xlu0 %v650_v53  ;;  %261 = vst.msk [vmem:[#allocation3 + $0xc8] sm:$0xff] %vm203_vm0, %v2631_v39 }
  0xbf   : > { %v435_v25 = vpop.xlane.xlu2 %434  ;;  %262 = vst.msk [vmem:[#allocation3 + $0xd0] sm:$0xff] %vm203_vm0, %v2631_v39 }
  0xc0   : > { %v483_v18 = vadd.f32 %v435_v25, %v355_v24  ;;  %v432_v58 = vpop.xlane.xlu1 %431  ;;  %263 = vst.msk [vmem:[#allocation3 + $0xd8] sm:$0xff] %vm203_vm0, %v2631_v39  ;;  %v760_v24 = vmul.f32 0.00390625, %v728_v37  ;;  %v531_v25 = vld [vmem:[#allocation3 + $0x30] sm:$0xff] }
  0xc1   : > { %v429_v59 = vpop.xlane.xlu0 %428  ;;  %v482_v63 = vadd.f32 %v432_v58, %v354_v44  ;;  %264 = vst.msk [vmem:[#allocation3 + $0xe0] sm:$0xff] %vm203_vm0, %v2631_v39  ;;  %v735_v44 = vld [vmem:[#allocation2 + $0x78] sm:$0xff]  ;;  %v530_v58 = vld [vmem:[#allocation3 + $0x28] sm:$0xff] }
  0xc2   : > { %v481_v23 = vadd.f32 %v429_v59, %v353_v51  ;;  %516 = vst.msk [vmem:[#allocation2 + $0xb8] sm:$0xff] %vm203_vm0, %v483_v18  ;;  %v526_v18 = vld [vmem:[#allocation3 + $0x8] sm:$0xff]  ;;  %v529_v59 = vld [vmem:[#allocation3 + $0x20] sm:$0xff] }
  0xc3   : > { %515 = vst.msk [vmem:[#allocation2 + $0xb0] sm:$0xff] %vm203_vm0, %v482_v63  ;;  %v738_v6 = vld [vmem:[#allocation2 + $0x90] sm:$0xff] }
  0xc4   : > { %514 = vst.msk [vmem:[#allocation2 + $0xa8] sm:$0xff] %vm203_vm0, %v481_v23  ;;  %v767_v23 = vmul.f32 0.00390625, %v735_v44  ;;  %v543_v44 = vld [vmem:[#allocation3 + $0x90] sm:$0xff] }
  0xc5   : > { %265 = vst.msk [vmem:[#allocation3 + $0xe8] sm:$0xff] %vm203_vm0, %v2631_v39 }
  0xc6   : > { %266 = vst.msk [vmem:[#allocation3 + $0xf0] sm:$0xff] %vm203_vm0, %v2631_v39 }
  0xc7   : > { %v444_v47 = vpop.xlane.xlu2 %443  ;;  %267 = vst.msk [vmem:[#allocation3 + $0xf8] sm:$0xff] %vm203_vm0, %v2631_v39 }
  0xc8   : > { %v486_v1 = vadd.f32 %v444_v47, %v358_v0  ;;  %v441_v2 = vpop.xlane.xlu1 %440  ;;  %v730_v0 = vld [vmem:[#allocation2 + $0x50] sm:$0xff] }
  0xc9   : > { %v438_v4 = vpop.xlane.xlu0 %437  ;;  %v485_v5 = vadd.f32 %v441_v2, %v357_v45 }
  0xca   : > { %v484_v20 = vadd.f32 %v438_v4, %v356_v46  ;;  %519 = vst.msk [vmem:[#allocation2 + $0xd0] sm:$0xff] %vm203_vm0, %v486_v1  ;;  %v731_v1 = vld [vmem:[#allocation2 + $0x58] sm:$0xff]  ;;  %v762_v4 = vmul.f32 0.00390625, %v730_v0 }
  0xcb   : > { %518 = vst.msk [vmem:[#allocation2 + $0xc8] sm:$0xff] %vm203_vm0, %v485_v5  ;;  %v763_v5 = vmul.f32 0.00390625, %v731_v1 }
  0xcc   : > { %855 = vperm.xlu2 %2475, %v753_v21   ;;  %517 = vst.msk [vmem:[#allocation2 + $0xc0] sm:$0xff] %vm203_vm0, %v484_v20  ;;  %v534_v20 = vld [vmem:[#allocation3 + $0x48] sm:$0xff]  ;;  %v533_v21 = vld [vmem:[#allocation3 + $0x40] sm:$0xff] }
  0xce   : > { %850 = vperm.xlu1 %2474, %v752_v31   ;;  %v532_v31 = vld [vmem:[#allocation3 + $0x38] sm:$0xff] }
  0xcf   : > { %v453_v57 = vpop.xlane.xlu2 %452 }
  0xd0   : > { %v489_v33 = vadd.f32 %v453_v57, %v361_v55  ;;  %v450_v12 = vpop.xlane.xlu1 %449  ;;  %v770_v55 = vmul.f32 0.00390625, %v738_v6 }
  0xd1   : > { %v447_v13 = vpop.xlane.xlu0 %446  ;;  %v488_v43 = vadd.f32 %v450_v12, %v360_v56  ;;  %v733_v56 = vld [vmem:[#allocation2 + $0x68] sm:$0xff]  ;;  %v734_v12 = vld [vmem:[#allocation2 + $0x70] sm:$0xff] }
  0xd2   : > { %860 = vperm.xlu0 %2476, %v754_v32   ;;  %522 = vst.msk [vmem:[#allocation2 + $0xe8] sm:$0xff] %vm203_vm0, %v489_v33  ;;  %v487_v38 = vadd.f32 %v447_v13, %v359_v49  ;;  %v766_v40 = vmul.f32 0.00390625, %v734_v12  ;;  %v540_v49 = vld [vmem:[#allocation3 + $0x78] sm:$0xff]  ;;  %v549_v12 = vld [vmem:[#allocation3 + $0xc0] sm:$0xff] }
  0xd3   : > { %521 = vst.msk [vmem:[#allocation2 + $0xe0] sm:$0xff] %vm203_vm0, %v488_v43  ;;  %v765_v43 = vmul.f32 0.00390625, %v733_v56  ;;  %v744_v30 = vld [vmem:[#allocation2 + $0xc0] sm:$0xff] }
  0xd4   : > { %865 = vperm.xlu2 %2475, %v755_v41   ;;  %520 = vst.msk [vmem:[#allocation2 + $0xd8] sm:$0xff] %vm203_vm0, %v487_v38  ;;  %v741_v41 = vld [vmem:[#allocation2 + $0xa8] sm:$0xff] }
  0xd6   : > { %870 = vperm.xlu1 %2474, %v756_v3   ;;  %v537_v3 = vld [vmem:[#allocation3 + $0x60] sm:$0xff] }
  0xd7   : > { %v559_v15 = vpop.xlane.xlu2 %558 }
  0xd8   : > { %v459_v62 = vpop.xlane.xlu1 %458  ;;  %v653_v22 = vmax.f32 %v525_v8, %v559_v15  ;;  %v535_v8 = vld [vmem:[#allocation3 + $0x50] sm:$0xff]  ;;  %v773_v15 = vmul.f32 0.00390625, %v741_v41 }
  0xd9   : > { %v456_v29 = vpop.xlane.xlu0 %455  ;;  %v491_v34 = vadd.f32 %v459_v62, %v363_v16 }
  0xda   : > { %895 = vperm.xlu0 %2476, %v761_v27   ;;  %685 = vst.msk [vmem:[#allocation3] sm:$0xff] %vm203_vm0, %v653_v22  ;;  %v490_v51 = vadd.f32 %v456_v29, %v362_v10  ;;  %v736_v27 = vld [vmem:[#allocation2 + $0x80] sm:$0xff] }
  0xdb   : > { %524 = vst.msk [vmem:[#allocation2 + $0xf8] sm:$0xff] %vm203_vm0, %v491_v34  ;;  %v737_v34 = vld [vmem:[#allocation2 + $0x88] sm:$0xff]  ;;  %v740_v10 = vld [vmem:[#allocation2 + $0xa0] sm:$0xff] }
  0xdc   : > { %875 = vperm.xlu2 %2475, %v757_v42   ;;  %523 = vst.msk [vmem:[#allocation2 + $0xf0] sm:$0xff] %vm203_vm0, %v490_v51  ;;  %v768_v42 = vmul.f32 0.00390625, %v736_v27  ;;  %v542_v51 = vld [vmem:[#allocation3 + $0x88] sm:$0xff]  ;;  %v748_v41 = vld [vmem:[#allocation2 + $0xe0] sm:$0xff] }
  0xde   : > { %880 = vperm.xlu1 %2474, %v758_v11   ;;  %v769_v11 = vmul.f32 0.00390625, %v737_v34  ;;  %v550_v34 = vld [vmem:[#allocation3 + $0xc8] sm:$0xff] }
  0xdf   : > { %v568_v50 = vpop.xlane.xlu2 %567 }
  0xe0   : > { %v565_v19 = vpop.xlane.xlu1 %564  ;;  %v656_v61 = vmax.f32 %v528_v36, %v568_v50  ;;  %v539_v50 = vld [vmem:[#allocation3 + $0x70] sm:$0xff] }
  0xe1   : > { %v562_v14 = vpop.xlane.xlu0 %561  ;;  %v655_v53 = vmax.f32 %v527_v17, %v565_v19  ;;  %v776_v17 = vmul.f32 0.00390625, %v744_v30  ;;  %v739_v19 = vld [vmem:[#allocation2 + $0x98] sm:$0xff] }
  0xe2   : > { %910 = vperm.xlu0 %2476, %v764_v9   ;;  %688 = vst.msk [vmem:[#allocation3 + $0x18] sm:$0xff] %vm203_vm0, %v656_v61  ;;  %v654_v47 = vmax.f32 %v526_v18, %v562_v14  ;;  %v538_v9 = vld [vmem:[#allocation3 + $0x68] sm:$0xff]  ;;  %v772_v61 = vmul.f32 0.00390625, %v740_v10 }
  0xe3   : > { %687 = vst.msk [vmem:[#allocation3 + $0x10] sm:$0xff] %vm203_vm0, %v655_v53  ;;  %v771_v53 = vmul.f32 0.00390625, %v739_v19  ;;  %v750_v1 = vld [vmem:[#allocation2 + $0xf0] sm:$0xff]  ;;  %v554_v19 = vld [vmem:[#allocation3 + $0xe8] sm:$0xff] }
  0xe4   : > { %885 = vperm.xlu2 %2475, %v759_v52   ;;  %686 = vst.msk [vmem:[#allocation3 + $0x8] sm:$0xff] %vm203_vm0, %v654_v47 }
  0xe6   : > { %890 = vperm.xlu1 %2474, %v760_v24   ;;  %v747_v24 = vld [vmem:[#allocation2 + $0xd8] sm:$0xff] }
  0xe7   : > { %v577_v63 = vpop.xlane.xlu2 %576 }
  0xe8   : > { %v574_v45 = vpop.xlane.xlu1 %573  ;;  %v659_v46 = vmax.f32 %v531_v25, %v577_v63  ;;  %v541_v25 = vld [vmem:[#allocation3 + $0x80] sm:$0xff] }
  0xe9   : > { %v571_v48 = vpop.xlane.xlu0 %570  ;;  %v658_v39 = vmax.f32 %v530_v58, %v574_v45  ;;  %v779_v58 = vmul.f32 0.00390625, %v747_v24 }
  0xea   : > { %925 = vperm.xlu0 %2476, %v767_v23   ;;  %v657_v2 = vmax.f32 %v529_v59, %v571_v48  ;;  %691 = vst.msk [vmem:[#allocation3 + $0x30] sm:$0xff] %vm203_vm0, %v659_v46  ;;  %v742_v59 = vld [vmem:[#allocation2 + $0xb0] sm:$0xff]  ;;  %v743_v46 = vld [vmem:[#allocation2 + $0xb8] sm:$0xff] }
  0xeb   : > { %690 = vst.msk [vmem:[#allocation3 + $0x28] sm:$0xff] %vm203_vm0, %v658_v39  ;;  %v774_v48 = vmul.f32 0.00390625, %v742_v59  ;;  %v775_v39 = vmul.f32 0.00390625, %v743_v46 }
  0xec   : > { %900 = vperm.xlu2 %2475, %v762_v4   ;;  %689 = vst.msk [vmem:[#allocation3 + $0x20] sm:$0xff] %vm203_vm0, %v657_v2  ;;  %v546_v2 = vld [vmem:[#allocation3 + $0xa8] sm:$0xff]  ;;  %v545_v4 = vld [vmem:[#allocation3 + $0xa0] sm:$0xff] }
  0xee   : > { %905 = vperm.xlu1 %2474, %v763_v5   ;;  %v544_v5 = vld [vmem:[#allocation3 + $0x98] sm:$0xff] }
  0xef   : > { %v586_v54 = vpop.xlane.xlu2 %585 }
  0xf0   : > { %v583_v57 = vpop.xlane.xlu1 %582  ;;  %v662_v32 = vmax.f32 %v534_v20, %v586_v54  ;;  %v782_v20 = vmul.f32 0.00390625, %v750_v1 }
  0xf1   : > { %v580_v26 = vpop.xlane.xlu0 %579  ;;  %v661_v33 = vmax.f32 %v533_v21, %v583_v57  ;;  %v745_v21 = vld [vmem:[#allocation2 + $0xc8] sm:$0xff]  ;;  %v746_v57 = vld [vmem:[#allocation2 + $0xd0] sm:$0xff] }
  0xf2   : > { %940 = vperm.xlu0 %2476, %v770_v55   ;;  %v660_v13 = vmax.f32 %v532_v31, %v580_v26  ;;  %694 = vst.msk [vmem:[#allocation3 + $0x48] sm:$0xff] %vm203_vm0, %v662_v32  ;;  %v777_v26 = vmul.f32 0.00390625, %v745_v21 }
  0xf3   : > { %693 = vst.msk [vmem:[#allocation3 + $0x40] sm:$0xff] %vm203_vm0, %v661_v33  ;;  %v778_v33 = vmul.f32 0.00390625, %v746_v57  ;;  %v3198_v57 = vld [vmem:[%s4411_s1 + $0x28] sm:$0xff] }
  0xf4   : > { %915 = vperm.xlu2 %2475, %v765_v43   ;;  %692 = vst.msk [vmem:[#allocation3 + $0x38] sm:$0xff] %vm203_vm0, %v660_v13  ;;  %v548_v13 = vld [vmem:[#allocation3 + $0xb8] sm:$0xff]  ;;  %v547_v43 = vld [vmem:[#allocation3 + $0xb0] sm:$0xff] }
  0xf6   : > { %920 = vperm.xlu1 %2474, %v766_v40  }
  0xf7   : > { %v595_v16 = vpop.xlane.xlu2 %594 }
  0xf8   : > { %v592_v28 = vpop.xlane.xlu1 %591  ;;  %v665_v62 = vmax.f32 %v537_v3, %v595_v16 }
  0xf9   : > { %v589_v22 = vpop.xlane.xlu0 %588  ;;  %v664_v29 = vmax.f32 %v536_v7, %v592_v28  ;;  %v780_v28 = vmul.f32 0.00390625, %v748_v41 }
  0xfa   : > { %955 = vperm.xlu0 %2476, %v773_v15   ;;  %v663_v35 = vmax.f32 %v535_v8, %v589_v22  ;;  %697 = vst.msk [vmem:[#allocation3 + $0x60] sm:$0xff] %vm203_vm0, %v665_v62  ;;  %v749_v15 = vld [vmem:[#allocation2 + $0xe8] sm:$0xff]  ;;  %v552_v22 = vld [vmem:[#allocation3 + $0xd8] sm:$0xff] }
  0xfb   : > { %696 = vst.msk [vmem:[#allocation3 + $0x58] sm:$0xff] %vm203_vm0, %v664_v29  ;;  %v781_v62 = vmul.f32 0.00390625, %v749_v15  ;;  %v551_v29 = vld [vmem:[#allocation3 + $0xd0] sm:$0xff] }
  0xfc   : > { %930 = vperm.xlu2 %2475, %v768_v42   ;;  %695 = vst.msk [vmem:[#allocation3 + $0x50] sm:$0xff] %vm203_vm0, %v663_v35  ;;  %v751_v42 = vld [vmem:[#allocation2 + $0xf8] sm:$0xff] }
  0xfe   : > { %935 = vperm.xlu1 %2474, %v769_v11  }
  0xff   : > { %v604_v60 = vpop.xlane.xlu2 %603 }
 0x100   : > { %v601_v14 = vpop.xlane.xlu1 %600  ;;  %v668_v36 = vmax.f32 %v540_v49, %v604_v60  ;;  %v783_v60 = vmul.f32 0.00390625, %v751_v42 }
 0x101   : > { %v598_v37 = vpop.xlane.xlu0 %597  ;;  %v667_v38 = vmax.f32 %v539_v50, %v601_v14  ;;  %v553_v14 = vld [vmem:[#allocation3 + $0xe0] sm:$0xff] }
 0x102   : > { %970 = vperm.xlu0 %2476, %v776_v17   ;;  %v666_v52 = vmax.f32 %v538_v9, %v598_v37  ;;  %700 = vst.msk [vmem:[#allocation3 + $0x78] sm:$0xff] %vm203_vm0, %v668_v36  ;;  %v555_v17 = vld [vmem:[#allocation3 + $0xf0] sm:$0xff] }
 0x103   : > { %699 = vst.msk [vmem:[#allocation3 + $0x70] sm:$0xff] %vm203_vm0, %v667_v38 }
 0x104   : > { %945 = vperm.xlu2 %2475, %v771_v53   ;;  %698 = vst.msk [vmem:[#allocation3 + $0x68] sm:$0xff] %vm203_vm0, %v666_v52 }
 0x106   : > { %950 = vperm.xlu1 %2474, %v772_v61   ;;  %v556_v61 = vld [vmem:[#allocation3 + $0xf8] sm:$0xff] }
 0x107   : > { %v613_v18 = vpop.xlane.xlu2 %612 }
 0x108   : > { %v610_v63 = vpop.xlane.xlu1 %609  ;;  %v671_v23 = vmax.f32 %v543_v44, %v613_v18  ;;  %v3164_v18 = vld [vmem:[%s4411_s1 + $0x8] sm:$0xff] }
 0x109   : > { %v607_v0 = vpop.xlane.xlu0 %606  ;;  %v670_v45 = vmax.f32 %v542_v51, %v610_v63 }
 0x10a   : > { %985 = vperm.xlu0 %2476, %v779_v58   ;;  %v669_v47 = vmax.f32 %v541_v25, %v607_v0  ;;  %703 = vst.msk [vmem:[#allocation3 + $0x90] sm:$0xff] %vm203_vm0, %v671_v23  ;;  %v3169_v58 = vld [vmem:[%s4411_s1] sm:$0xff] }
 0x10b   : > { %702 = vst.msk [vmem:[#allocation3 + $0x88] sm:$0xff] %vm203_vm0, %v670_v45  ;;  %v3176_v45 = vld [vmem:[%s4411_s1 + $0x10] sm:$0xff] }
 0x10c   : > { %960 = vperm.xlu2 %2475, %v774_v48   ;;  %701 = vst.msk [vmem:[#allocation3 + $0x80] sm:$0xff] %vm203_vm0, %v669_v47 }
 0x10e   : > { %965 = vperm.xlu1 %2474, %v775_v39   ;;  %v3183_v39 = vld [vmem:[%s4411_s1 + $0x18] sm:$0xff] }
 0x10f   : > { %v622_v6 = vpop.xlane.xlu2 %621 }
 0x110   : > { %v619_v31 = vpop.xlane.xlu1 %618  ;;  %v674_v54 = vmax.f32 %v546_v2, %v622_v6 }
 0x111   : > { %v616_v55 = vpop.xlane.xlu0 %615  ;;  %v673_v56 = vmax.f32 %v545_v4, %v619_v31 }
 0x112   : > { %1000 = vperm.xlu0 %2476, %v782_v20   ;;  %v672_v32 = vmax.f32 %v544_v5, %v616_v55  ;;  %706 = vst.msk [vmem:[#allocation3 + $0xa8] sm:$0xff] %vm203_vm0, %v674_v54  ;;  %v3190_v5 = vld [vmem:[%s4411_s1 + $0x20] sm:$0xff] }
 0x113   : > { %705 = vst.msk [vmem:[#allocation3 + $0xa0] sm:$0xff] %vm203_vm0, %v673_v56 }
 0x114   : > { %975 = vperm.xlu2 %2475, %v777_v26   ;;  %704 = vst.msk [vmem:[#allocation3 + $0x98] sm:$0xff] %vm203_vm0, %v672_v32 }
 0x116   : > { %980 = vperm.xlu1 %2474, %v778_v33   ;;  %v3204_v33 = vld [vmem:[%s4411_s1 + $0x30] sm:$0xff] }
 0x117   : > { %v631_v40 = vpop.xlane.xlu2 %630 }
 0x118   : > { %v628_v3 = vpop.xlane.xlu1 %627  ;;  %v677_v7 = vmax.f32 %v549_v12, %v631_v40 }
 0x119   : > { %v625_v8 = vpop.xlane.xlu0 %624  ;;  %v676_v16 = vmax.f32 %v548_v13, %v628_v3  ;;  %v3211_v3 = vld [vmem:[%s4411_s1 + $0x38] sm:$0xff] }
 0x11a   : > { %v675_v27 = vmax.f32 %v547_v43, %v625_v8  ;;  %709 = vst.msk [vmem:[#allocation3 + $0xc0] sm:$0xff] %vm203_vm0, %v677_v7 }
 0x11b   : > { %708 = vst.msk [vmem:[#allocation3 + $0xb8] sm:$0xff] %vm203_vm0, %v676_v16 }
 0x11c   : > { %990 = vperm.xlu2 %2475, %v780_v28   ;;  %707 = vst.msk [vmem:[#allocation3 + $0xb0] sm:$0xff] %vm203_vm0, %v675_v27  ;;  %v3219_v28 = vld [vmem:[%s4411_s1 + $0x48] sm:$0xff] }
 0x11e   : > { %995 = vperm.xlu1 %2474, %v781_v62  }
 0x11f   : > { %v640_v35 = vpop.xlane.xlu2 %639 }
 0x120   : > { %v637_v11 = vpop.xlane.xlu1 %636  ;;  %v680_v30 = vmax.f32 %v552_v22, %v640_v35  ;;  %v3224_v22 = vld [vmem:[%s4411_s1 + $0x40] sm:$0xff] }
 0x121   : > { %v634_v49 = vpop.xlane.xlu0 %633  ;;  %v679_v50 = vmax.f32 %v551_v29, %v637_v11 }
 0x122   : > { %v678_v9 = vmax.f32 %v550_v34, %v634_v49  ;;  %712 = vst.msk [vmem:[#allocation3 + $0xd8] sm:$0xff] %vm203_vm0, %v680_v30  ;;  %v3232_v30 = vld [vmem:[%s4411_s1 + $0x50] sm:$0xff] }
 0x123   : > { %711 = vst.msk [vmem:[#allocation3 + $0xd0] sm:$0xff] %vm203_vm0, %v679_v50 }
 0x124   : > { %1005 = vperm.xlu2 %2475, %v783_v60   ;;  %710 = vst.msk [vmem:[#allocation3 + $0xc8] sm:$0xff] %vm203_vm0, %v678_v9 }
 0x127   : > { %v649_v36 = vpop.xlane.xlu2 %648 }
 0x128   : > { %v646_v37 = vpop.xlane.xlu1 %645  ;;  %v683_v38 = vmax.f32 %v555_v17, %v649_v36 }
 0x129   : > { %v643_v10 = vpop.xlane.xlu0 %642  ;;  %v682_v52 = vmax.f32 %v554_v19, %v646_v37  ;;  %v3245_v37 = vld [vmem:[%s4411_s1 + $0x58] sm:$0xff] }
 0x12a   : > { %v681_v53 = vmax.f32 %v553_v14, %v643_v10  ;;  %715 = vst.msk [vmem:[#allocation3 + $0xf0] sm:$0xff] %vm203_vm0, %v683_v38  ;;  %v3240_v14 = vld [vmem:[%s4411_s1 + $0x60] sm:$0xff] }
 0x12b   : > { %714 = vst.msk [vmem:[#allocation3 + $0xe8] sm:$0xff] %vm203_vm0, %v682_v52 }
 0x12c   : > { %713 = vst.msk [vmem:[#allocation3 + $0xe0] sm:$0xff] %vm203_vm0, %v681_v53 }
 0x12f   : > { %v856_v24 = vpop.permute.xlu2 %855 }
 0x130   : > { %v1009_v59 = vmul.f32 %v856_v24, %v3164_v18  ;;  %v3253_v24 = vld [vmem:[%s4411_s1 + $0x68] sm:$0xff] }
 0x131   : > { %v652_v44 = vpop.xlane.xlu0 %651 }
 0x132   : > { %v684_v51 = vmax.f32 %v556_v61, %v652_v44  ;;  %v1042_v46 = vsel %vm1040_vm1, %v1009_v59, 0.0 }
 0x134   : > { %716 = vst.msk [vmem:[#allocation3 + $0xf8] sm:$0xff] %vm203_vm0, %v684_v51 }
 0x137   : > { %v866_v25 = vpop.permute.xlu2 %865 }
 0x138   : > { %v1011_v6 = vmul.f32 %v866_v25, %v3183_v39 }
 0x13a   : > { %v1046_v55 = vsel %vm1040_vm1, %v1011_v6, 0.0 }
 0x13f   : > { %v876_v63 = vpop.permute.xlu2 %875 }
 0x140   : > { %v851_v23 = vpop.permute.xlu1 %850  ;;  %v1013_v12 = vmul.f32 %v876_v63, %v3198_v57 }
 0x141   : > { %v1008_v0 = vmul.f32 %v851_v23, %v3169_v58  ;;  %v3261_v23 = vld [vmem:[%s4411_s1 + $0x78] sm:$0xff] }
 0x142   : > { %v1050_v7 = vsel %vm1040_vm1, %v1013_v12, 0.0  ;;  %v3287_v12 = vld [vmem:[%s4411_s1 + $0x88] sm:$0xff] }
 0x143   : > { %v1041_v47 = vsel %vm1040_vm1, %v1008_v0, 0.0 }
 0x144   : > { %v861_v48 = vpop.permute.xlu0 %860  ;;  %v1043_v1 = vadd.f32 %v1042_v46, %v1041_v47  ;;  %v3266_v47 = vld [vmem:[%s4411_s1 + $0x70] sm:$0xff] }
 0x145   : > { %v1010_v2 = vmul.f32 %v861_v48, %v3176_v45 }
 0x147   : > { %v1044_v4 = vsel %vm1040_vm1, %v1010_v2, 0.0  ;;  %v886_v20 = vpop.permute.xlu2 %885 }
 0x148   : > { %v1045_v21 = vadd.f32 %v1044_v4, %v1043_v1  ;;  %v871_v31 = vpop.permute.xlu1 %870  ;;  %v1015_v27 = vmul.f32 %v886_v20, %v3211_v3  ;;  %v3274_v20 = vld [vmem:[%s4411_s1 + $0x80] sm:$0xff] }
 0x149   : > { %v1012_v54 = vmul.f32 %v871_v31, %v3190_v5 }
 0x14a   : > { %v1047_v32 = vadd.f32 %v1046_v55, %v1045_v21  ;;  %v1054_v35 = vsel %vm1040_vm1, %v1015_v27, 0.0 }
 0x14b   : > { %v1048_v26 = vsel %vm1040_vm1, %v1012_v54, 0.0 }
 0x14c   : > { %v896_v56 = vpop.permute.xlu0 %895  ;;  %v1049_v43 = vadd.f32 %v1048_v26, %v1047_v32  ;;  %v3282_v32 = vld [vmem:[%s4411_s1 + $0x90] sm:$0xff] }
 0x14d   : > { %v1017_v42 = vmul.f32 %v896_v56, %v3219_v28 }
 0x14e   : > { %v1051_v15 = vadd.f32 %v1050_v7, %v1049_v43 }
 0x14f   : > { %v901_v13 = vpop.permute.xlu2 %900  ;;  %v1058_v17 = vsel %vm1040_vm1, %v1017_v42, 0.0 }
 0x150   : > { %v881_v40 = vpop.permute.xlu1 %880  ;;  %v1018_v19 = vmul.f32 %v901_v13, %v3232_v30 }
 0x151   : > { %v1014_v41 = vmul.f32 %v881_v40, %v3204_v33 }
 0x152   : > { %v1060_v52 = vsel %vm1040_vm1, %v1018_v19, 0.0 }
 0x153   : > { %v1052_v8 = vsel %vm1040_vm1, %v1014_v41, 0.0 }
 0x154   : > { %v911_v16 = vpop.permute.xlu0 %910  ;;  %v1053_v62 = vadd.f32 %v1052_v8, %v1051_v15  ;;  %v3295_v8 = vld [vmem:[%s4411_s1 + $0x98] sm:$0xff] }
 0x155   : > { %v1020_v53 = vmul.f32 %v911_v16, %v3240_v14 }
 0x156   : > { %v1055_v49 = vadd.f32 %v1054_v35, %v1053_v62  ;;  %v3303_v35 = vld [vmem:[%s4411_s1 + $0xa8] sm:$0xff] }
 0x157   : > { %v916_v29 = vpop.permute.xlu2 %915  ;;  %v1064_v59 = vsel %vm1040_vm1, %v1020_v53, 0.0 }
 0x158   : > { %v891_v34 = vpop.permute.xlu1 %890  ;;  %v1021_v63 = vmul.f32 %v916_v29, %v3253_v24 }
 0x159   : > { %v1016_v11 = vmul.f32 %v891_v34, %v3224_v22 }
 0x15a   : > { %v1066_v2 = vsel %vm1040_vm1, %v1021_v63, 0.0 }
 0x15b   : > { %v1056_v50 = vsel %vm1040_vm1, %v1016_v11, 0.0  ;;  %v3308_v11 = vld [vmem:[%s4411_s1 + $0xa0] sm:$0xff] }
 0x15c   : > { %v1057_v9 = vadd.f32 %v1056_v50, %v1055_v49  ;;  %v926_v60 = vpop.permute.xlu0 %925 }
 0x15d   : > { %v1023_v4 = vmul.f32 %v926_v60, %v3261_v23 }
 0x15e   : > { %v1059_v36 = vadd.f32 %v1058_v17, %v1057_v9  ;;  %v3316_v17 = vld [vmem:[%s4411_s1 + $0xb0] sm:$0xff] }
 0x15f   : > { %v931_v38 = vpop.permute.xlu2 %930  ;;  %v1070_v55 = vsel %vm1040_vm1, %v1023_v4, 0.0 }
 0x160   : > { %v906_v10 = vpop.permute.xlu1 %905  ;;  %v1061_v44 = vadd.f32 %v1060_v52, %v1059_v36  ;;  %v1024_v56 = vmul.f32 %v931_v38, %v3274_v20 }
 0x161   : > { %v1019_v61 = vmul.f32 %v906_v10, %v3245_v37 }
 0x162   : > { %v1072_v40 = vsel %vm1040_vm1, %v1024_v56, 0.0 }
 0x163   : > { %v1062_v51 = vsel %vm1040_vm1, %v1019_v61, 0.0 }
 0x164   : > { %v1063_v25 = vadd.f32 %v1062_v51, %v1061_v44  ;;  %v941_v46 = vpop.permute.xlu0 %940  ;;  %v3324_v44 = vld [vmem:[%s4411_s1 + $0xc0] sm:$0xff] }
 0x165   : > { %v1026_v41 = vmul.f32 %v941_v46, %v3282_v32 }
 0x166   : > { %v1065_v0 = vadd.f32 %v1064_v59, %v1063_v25  ;;  %v3329_v25 = vld [vmem:[%s4411_s1 + $0xb8] sm:$0xff] }
 0x167   : > { %v946_v48 = vpop.permute.xlu2 %945  ;;  %v1076_v29 = vsel %vm1040_vm1, %v1026_v41, 0.0 }
 0x168   : > { %v921_v1 = vpop.permute.xlu1 %920  ;;  %v1067_v21 = vadd.f32 %v1066_v2, %v1065_v0  ;;  %v1027_v34 = vmul.f32 %v946_v48, %v3295_v8  ;;  %v3337_v48 = vld [vmem:[%s4411_s1 + $0xc8] sm:$0xff] }
 0x169   : > { %v1022_v6 = vmul.f32 %v921_v1, %v3266_v47 }
 0x16a   : > { %v1078_v50 = vsel %vm1040_vm1, %v1027_v34, 0.0  ;;  %v3366_v34 = vld [vmem:[%s4411_s1 + $0xf0] sm:$0xff] }
 0x16b   : > { %v1068_v31 = vsel %vm1040_vm1, %v1022_v6, 0.0 }
 0x16c   : > { %v1069_v54 = vadd.f32 %v1068_v31, %v1067_v21  ;;  %v956_v13 = vpop.permute.xlu0 %955 }
 0x16d   : > { %v1029_v9 = vmul.f32 %v956_v13, %v3303_v35 }
 0x16e   : > { %v1071_v26 = vadd.f32 %v1070_v55, %v1069_v54  ;;  %v3345_v54 = vld [vmem:[%s4411_s1 + $0xd8] sm:$0xff] }
 0x16f   : > { %v961_v16 = vpop.permute.xlu2 %960  ;;  %v1082_v53 = vsel %vm1040_vm1, %v1029_v9, 0.0  ;;  %v3376_v9 = vld [vmem:[%s4411_s1 + $0xf8] sm:$0xff] }
 0x170   : > { %v936_v43 = vpop.permute.xlu1 %935  ;;  %v1073_v15 = vadd.f32 %v1072_v40, %v1071_v26  ;;  %v1030_v61 = vmul.f32 %v961_v16, %v3316_v17  ;;  %v3350_v26 = vld [vmem:[%s4411_s1 + $0xd0] sm:$0xff] }
 0x171   : > { %v1025_v7 = vmul.f32 %v936_v43, %v3287_v12 }
 0x172   : > { %v1084_v63 = vsel %vm1040_vm1, %v1030_v61, 0.0 }
 0x173   : > { %v1074_v27 = vsel %vm1040_vm1, %v1025_v7, 0.0  ;;  %v3358_v7 = vld [vmem:[%s4411_s1 + $0xe0] sm:$0xff] }
 0x174   : > { %v1075_v62 = vadd.f32 %v1074_v27, %v1073_v15  ;;  %v971_v19 = vpop.permute.xlu0 %970 }
 0x175   : > { %v1032_v0 = vmul.f32 %v971_v19, %v3324_v44 }
 0x176   : > { %v1077_v42 = vadd.f32 %v1076_v29, %v1075_v62 }
 0x177   : > { %v976_v10 = vpop.permute.xlu2 %975  ;;  %v1088_v21 = vsel %vm1040_vm1, %v1032_v0, 0.0 }
 0x178   : > { %v951_v49 = vpop.permute.xlu1 %950  ;;  %v1079_v36 = vadd.f32 %v1078_v50, %v1077_v42  ;;  %v1033_v31 = vmul.f32 %v976_v10, %v3337_v48  ;;  %v3371_v50 = vld [vmem:[%s4411_s1 + $0xe8] sm:$0xff] }
 0x179   : > { %v1028_v60 = vmul.f32 %v951_v49, %v3308_v11 }
 0x17a   : > { %v1090_v43 = vsel %vm1040_vm1, %v1033_v31, 0.0 }
 0x17b   : > { %v1080_v38 = vsel %vm1040_vm1, %v1028_v60, 0.0 }
 0x17c   : > { %v1081_v52 = vadd.f32 %v1080_v38, %v1079_v36  ;;  %v986_v4 = vpop.permute.xlu0 %985 }
 0x17d   : > { %v1035_v40 = vmul.f32 %v986_v4, %v3345_v54 }
 0x17e   : > { %v1083_v51 = vadd.f32 %v1082_v53, %v1081_v52 }
 0x17f   : > { %v991_v55 = vpop.permute.xlu2 %990  ;;  %v1094_v62 = vsel %vm1040_vm1, %v1035_v40, 0.0 }
 0x180   : > { %v966_v59 = vpop.permute.xlu1 %965  ;;  %v1085_v1 = vadd.f32 %v1084_v63, %v1083_v51  ;;  %v1036_v29 = vmul.f32 %v991_v55, %v3358_v7  ;;  %v3388_v55 = vld [vmem:[%s4412_s2 + $0x10] sm:$0xff] }
 0x181   : > { %v1031_v46 = vmul.f32 %v966_v59, %v3329_v25 }
 0x182   : > { %v1096_v36 = vsel %vm1040_vm1, %v1036_v29, 0.0  ;;  %v3414_v29 = vld [vmem:[%s4412_s2 + $0x20] sm:$0xff] }
 0x183   : > { %v1086_v2 = vsel %vm1040_vm1, %v1031_v46, 0.0 }
 0x184   : > { %v1087_v6 = vadd.f32 %v1086_v2, %v1085_v1  ;;  %v1001_v42 = vpop.permute.xlu0 %1000 }
 0x185   : > { %v1038_v38 = vmul.f32 %v1001_v42, %v3366_v34  ;;  %v3419_v42 = vld [vmem:[%s4412_s2 + $0x28] sm:$0xff] }
 0x186   : > { %v1089_v56 = vadd.f32 %v1088_v21, %v1087_v6 }
 0x187   : > { %v1006_v60 = vpop.permute.xlu2 %1005  ;;  %v1100_v59 = vsel %vm1040_vm1, %v1038_v38, 0.0 }
 0x188   : > { %v981_v13 = vpop.permute.xlu1 %980  ;;  %v1091_v16 = vadd.f32 %v1090_v43, %v1089_v56  ;;  %v1039_v53 = vmul.f32 %v1006_v60, %v3376_v9  ;;  %v3393_v56 = vld [vmem:[%s4412_s2 + $0x8] sm:$0xff] }
 0x189   : > { %v1034_v41 = vmul.f32 %v981_v13, %v3350_v26  ;;  %v3398_v13 = vld [vmem:[%s4412_s2] sm:$0xff] }
 0x18a   : > { %v1102_v0 = vsel %vm1040_vm1, %v1039_v53, 0.0  ;;  %v3438_v53 = vld [vmem:[%s4412_s2 + $0x38] sm:$0xff] }
 0x18b   : > { %v1092_v15 = vsel %vm1040_vm1, %v1034_v41, 0.0 }
 0x18c   : > { %v1093_v27 = vadd.f32 %v1092_v15, %v1091_v16 }
 0x18e   : > { %v1095_v49 = vadd.f32 %v1094_v62, %v1093_v27 }
 0x190   : > { %v996_v19 = vpop.permute.xlu1 %995  ;;  %v1097_v52 = vadd.f32 %v1096_v36, %v1095_v49  ;;  %v3424_v49 = vld [vmem:[%s4412_s2 + $0x18] sm:$0xff] }
 0x191   : > { %v1037_v10 = vmul.f32 %v996_v19, %v3371_v50 }
 0x193   : > { %v1098_v61 = vsel %vm1040_vm1, %v1037_v10, 0.0 }
 0x194   : > { %v1099_v51 = vadd.f32 %v1098_v61, %v1097_v52  ;;  %v3443_v61 = vld [vmem:[%s4412_s2 + $0x40] sm:$0xff] }
 0x196   : > { %v1101_v63 = vadd.f32 %v1100_v59, %v1099_v51  ;;  %v3448_v51 = vld [vmem:[%s4412_s2 + $0x30] sm:$0xff] }
 0x198   : > { %v1103_v46 = vadd.f32 %v1102_v0, %v1101_v63 }
 0x19a   : > { %v1104_v1 = vrot.slane %v1103_v46, 4 }
 0x19c   : > { %v1105_v2 = vadd.f32 %v1104_v1, %v1103_v46 }
 0x19e   : > { %v1106_v4 = vrot.slane %v1105_v2, 2 }
 0x1a0   : > { %v1107_v6 = vadd.f32 %v1106_v4, %v1105_v2  ;;  %v3462_v4 = vld [vmem:[%s4412_s2 + $0x50] sm:$0xff] }
 0x1a2   : > { %v1108_v21 = vrot.slane %v1107_v6, 1 }
 0x1a4   : > { %v1109_v31 = vadd.f32 %v1108_v21, %v1107_v6  ;;  %v3467_v6 = vld [vmem:[%s4412_s2 + $0x58] sm:$0xff]  ;;  %v3472_v21 = vld [vmem:[%s4412_s2 + $0x48] sm:$0xff] }
 0x1a6   : > { %v3400_v43 = vmax.f32 %v1109_v31, 0.0 }
 0x1a8   : > { %v1145_v40 = vmul.f32 %v3388_v55, %v3400_v43  ;;  %v1144_v41 = vmul.f32 %v3393_v56, %v3400_v43  ;;  %v1143_v16 = vmul.f32 %v3398_v13, %v3400_v43  ;;  %v1147_v60 = vmul.f32 %v3414_v29, %v3400_v43 }
 0x1a9   : > { %v1148_v19 = vmul.f32 %v3419_v42, %v3400_v43  ;;  %v1146_v36 = vmul.f32 %v3424_v49, %v3400_v43  ;;  %v1150_v59 = vmul.f32 %v3438_v53, %v3400_v43  ;;  %v1151_v63 = vmul.f32 %v3443_v61, %v3400_v43 }
 0x1aa   : > { %v1181_v15 = vsel %vm1040_vm1, %v1145_v40, 0.0  ;;  %v1178_v27 = vsel %vm1040_vm1, %v1144_v41, 0.0  ;;  %v1175_v62 = vsel %vm1040_vm1, %v1143_v16, 0.0  ;;  %v1187_v38 = vsel %vm1040_vm1, %v1147_v60, 0.0  ;;  %v3491_v60 = vld [vmem:[%s4412_s2 + $0x70] sm:$0xff] }
 0x1ab   : > { %1182 = vadd.xlane.f32.xlu2 %v1181_v15  ;;  %1179 = vadd.xlane.f32.xlu0 %v1178_v27  ;;  %v1190_v10 = vsel %vm1040_vm1, %v1148_v19, 0.0  ;;  %v1184_v52 = vsel %vm1040_vm1, %v1146_v36, 0.0  ;;  %v1149_v0 = vmul.f32 %v3448_v51, %v3400_v43  ;;  %v1196_v46 = vsel %vm1040_vm1, %v1150_v59, 0.0  ;;  %v3496_v19 = vld [vmem:[%s4412_s2 + $0x60] sm:$0xff] }
 0x1ac   : > { %1176 = vadd.xlane.f32.xlu1 %v1175_v62  ;;  %v1199_v1 = vsel %vm1040_vm1, %v1151_v63, 0.0  ;;  %v1153_v31 = vmul.f32 %v3462_v4, %v3400_v43  ;;  %v1154_v40 = vmul.f32 %v3467_v6, %v3400_v43  ;;  %v1152_v41 = vmul.f32 %v3472_v21, %v3400_v43  ;;  %v3486_v62 = vld [vmem:[%s4412_s2 + $0x68] sm:$0xff] }
 0x1ad   : > { %v1193_v2 = vsel %vm1040_vm1, %v1149_v0, 0.0  ;;  %v1156_v36 = vmul.f32 %v3486_v62, %v3400_v43  ;;  %v3510_v0 = vld [vmem:[%s4412_s2 + $0x80] sm:$0xff] }
 0x1ae   : > { %v1205_v16 = vsel %vm1040_vm1, %v1153_v31, 0.0  ;;  %v1208_v15 = vsel %vm1040_vm1, %v1154_v40, 0.0  ;;  %v1202_v27 = vsel %vm1040_vm1, %v1152_v41, 0.0  ;;  %4432 = vst [vmem:[#allocation4_spill] sm:$0xff] %v3510_v0 }
 0x1b3   : > { %1188 = vadd.xlane.f32.xlu2 %v1187_v38  ;;  %1191 = vadd.xlane.f32.xlu0 %v1190_v10  ;;  %v1157_v38 = vmul.f32 %v3491_v60, %v3400_v43  ;;  %v1155_v10 = vmul.f32 %v3496_v19, %v3400_v43 }
 0x1b4   : > { %1185 = vadd.xlane.f32.xlu1 %v1184_v52  ;;  %v1214_v52 = vsel %vm1040_vm1, %v1156_v36, 0.0  ;;  %v3539_v36 = vld [vmem:[%s4412_s2 + $0xa0] sm:$0xff] }
 0x1b5   : > { %v1217_v59 = vsel %vm1040_vm1, %v1157_v38, 0.0  ;;  %v1211_v63 = vsel %vm1040_vm1, %v1155_v10, 0.0  ;;  %4436 = vst [vmem:[#allocation8_spill] sm:$0xff] %v3539_v36  ;;  %v3544_v38 = vld [vmem:[%s4412_s2 + $0x90] sm:$0xff] }
 0x1b6   : > { %4437 = vst [vmem:[#allocation9_spill] sm:$0xff] %v3544_v38 }
 0x1bb   : > { %1197 = vadd.xlane.f32.xlu2 %v1196_v46  ;;  %1200 = vadd.xlane.f32.xlu0 %v1199_v1  ;;  %v3515_v46 = vld [vmem:[%s4412_s2 + $0x88] sm:$0xff]  ;;  %v3520_v1 = vld [vmem:[%s4412_s2 + $0x78] sm:$0xff] }
 0x1bc   : > { %1194 = vadd.xlane.f32.xlu1 %v1193_v2  ;;  %4433 = vst [vmem:[#allocation5_spill] sm:$0xff] %v3515_v46  ;;  %v1159_v2 = vmul.f32 %v3510_v0, %v3400_v43  ;;  %v1160_v31 = vmul.f32 %v3515_v46, %v3400_v43  ;;  %v1158_v40 = vmul.f32 %v3520_v1, %v3400_v43 }
 0x1bd   : > { %4434 = vst [vmem:[#allocation6_spill] sm:$0xff] %v3520_v1 }
 0x1be   : > { %v1223_v41 = vsel %vm1040_vm1, %v1159_v2, 0.0 }
 0x1c3   : > { %1206 = vadd.xlane.f32.xlu2 %v1205_v16  ;;  %1209 = vadd.xlane.f32.xlu0 %v1208_v15  ;;  %v1226_v16 = vsel %vm1040_vm1, %v1160_v31, 0.0  ;;  %v1220_v15 = vsel %vm1040_vm1, %v1158_v40, 0.0  ;;  %v3558_v40 = vld [vmem:[%s4412_s2 + $0xb0] sm:$0xff] }
 0x1c4   : > { %1203 = vadd.xlane.f32.xlu1 %v1202_v27  ;;  %v3534_v27 = vld [vmem:[%s4412_s2 + $0x98] sm:$0xff]  ;;  %4438 = vst [vmem:[#allocation10_spill] sm:$0xff] %v3558_v40 }
 0x1c5   : > { %4435 = vst [vmem:[#allocation7_spill] sm:$0xff] %v3534_v27  ;;  %v1162_v10 = vmul.f32 %v3534_v27, %v3400_v43  ;;  %v788_v27 = vld [vmem:[#allocation3 + $0x20] sm:$0xff] }
 0x1cb   : > { %1215 = vadd.xlane.f32.xlu2 %v1214_v52  ;;  %1218 = vadd.xlane.f32.xlu0 %v1217_v59  ;;  %v1163_v52 = vmul.f32 %v3539_v36, %v3400_v43  ;;  %v1161_v59 = vmul.f32 %v3544_v38, %v3400_v43  ;;  %v789_v38 = vld [vmem:[#allocation3 + $0x28] sm:$0xff] }
 0x1cc   : > { %1212 = vadd.xlane.f32.xlu1 %v1211_v63  ;;  %v1232_v63 = vsel %vm1040_vm1, %v1162_v10, 0.0 }
 0x1cd   : > { %v1235_v2 = vsel %vm1040_vm1, %v1163_v52, 0.0  ;;  %v1229_v31 = vsel %vm1040_vm1, %v1161_v59, 0.0 }
 0x1d3   : > { %1224 = vadd.xlane.f32.xlu2 %v1223_v41  ;;  %1227 = vadd.xlane.f32.xlu0 %v1226_v16  ;;  %v3563_v41 = vld [vmem:[%s4412_s2 + $0xb8] sm:$0xff]  ;;  %v3568_v16 = vld [vmem:[%s4412_s2 + $0xa8] sm:$0xff] }
 0x1d4   : > { %1221 = vadd.xlane.f32.xlu1 %v1220_v15  ;;  %4439 = vst [vmem:[#allocation11_spill] sm:$0xff] %v3563_v41  ;;  %v1165_v15 = vmul.f32 %v3558_v40, %v3400_v43  ;;  %v1166_v10 = vmul.f32 %v3563_v41, %v3400_v43  ;;  %v1164_v52 = vmul.f32 %v3568_v16, %v3400_v43  ;;  %v3587_v40 = vld [vmem:[%s4412_s2 + $0xd0] sm:$0xff]  ;;  %v3606_v41 = vld [vmem:[%s4412_s2 + $0xe0] sm:$0xff] }
 0x1d5   : > { %4440 = vst [vmem:[#allocation12_spill] sm:$0xff] %v3568_v16 }
 0x1d6   : > { %v1241_v59 = vsel %vm1040_vm1, %v1165_v15, 0.0  ;;  %4442 = vst [vmem:[#allocation14_spill] sm:$0xff] %v3587_v40  ;;  %v3592_v15 = vld [vmem:[%s4412_s2 + $0xc0] sm:$0xff] }
 0x1d7   : > { %4443 = vst [vmem:[#allocation15_spill] sm:$0xff] %v3592_v15 }
 0x1d8   : > { %4444 = vst [vmem:[#allocation16_spill] sm:$0xff] %v3606_v41 }
 0x1db   : > { %1233 = vadd.xlane.f32.xlu2 %v1232_v63  ;;  %1236 = vadd.xlane.f32.xlu0 %v1235_v2  ;;  %v1244_v63 = vsel %vm1040_vm1, %v1166_v10, 0.0  ;;  %v1238_v2 = vsel %vm1040_vm1, %v1164_v52, 0.0  ;;  %v1169_v52 = vmul.f32 %v3587_v40, %v3400_v43  ;;  %v3630_v40 = vld [vmem:[%s4412_s2 + $0xf8] sm:$0xff] }
 0x1dc   : > { %1230 = vadd.xlane.f32.xlu1 %v1229_v31  ;;  %v3582_v31 = vld [vmem:[%s4412_s2 + $0xc8] sm:$0xff]  ;;  %4447 = vst [vmem:[#allocation19_spill] sm:$0xff] %v3630_v40 }
 0x1dd   : > { %4441 = vst [vmem:[#allocation13_spill] sm:$0xff] %v3582_v31  ;;  %v1168_v10 = vmul.f32 %v3582_v31, %v3400_v43  ;;  %v1253_v16 = vsel %vm1040_vm1, %v1169_v52, 0.0  ;;  %v3611_v31 = vld [vmem:[%s4412_s2 + $0xe8] sm:$0xff] }
 0x1de   : > { %4445 = vst [vmem:[#allocation17_spill] sm:$0xff] %v3611_v31  ;;  %v1172_v52 = vmul.f32 %v3611_v31, %v3400_v43  ;;  %v785_v31 = vld [vmem:[#allocation3 + $0x8] sm:$0xff] }
 0x1e3   : > { %1242 = vadd.xlane.f32.xlu2 %v1241_v59  ;;  %1245 = vadd.xlane.f32.xlu0 %v1244_v63  ;;  %v1167_v59 = vmul.f32 %v3592_v15, %v3400_v43  ;;  %v1250_v63 = vsel %vm1040_vm1, %v1168_v10, 0.0  ;;  %v3616_v10 = vld [vmem:[%s4412_s2 + $0xd8] sm:$0xff]  ;;  %v1262_v15 = vsel %vm1040_vm1, %v1172_v52, 0.0 }
 0x1e4   : > { %1239 = vadd.xlane.f32.xlu1 %v1238_v2  ;;  %4446 = vst [vmem:[#allocation18_spill] sm:$0xff] %v3616_v10 }
 0x1e5   : > { %v1247_v2 = vsel %vm1040_vm1, %v1167_v59, 0.0  ;;  %v1170_v59 = vmul.f32 %v3616_v10, %v3400_v43  ;;  %v786_v10 = vld [vmem:[#allocation3 + $0x10] sm:$0xff] }
 0x1eb   : > { %1251 = vadd.xlane.f32.xlu2 %v1250_v63  ;;  %1254 = vadd.xlane.f32.xlu0 %v1253_v16  ;;  %v1171_v16 = vmul.f32 %v3606_v41, %v3400_v43  ;;  %v3635_v41 = vld [vmem:[%s4412_s2 + $0xf0] sm:$0xff] }
 0x1ec   : > { %1248 = vadd.xlane.f32.xlu1 %v1247_v2  ;;  %v1256_v2 = vsel %vm1040_vm1, %v1170_v59, 0.0  ;;  %4448 = vst [vmem:[#allocation20_spill] sm:$0xff] %v3635_v41  ;;  %v1173_v52 = vmul.f32 %v3635_v41, %v3400_v43 }
 0x1ed   : > { %v1259_v63 = vsel %vm1040_vm1, %v1171_v16, 0.0  ;;  %v1174_v16 = vmul.f32 %v3630_v40, %v3400_v43  ;;  %v790_v40 = vld [vmem:[#allocation3 + $0x30] sm:$0xff] }
 0x1ee   : > { %v1265_v59 = vsel %vm1040_vm1, %v1173_v52, 0.0  ;;  %v792_v52 = vld [vmem:[#allocation3 + $0x40] sm:$0xff] }
 0x1f3   : > { %1260 = vadd.xlane.f32.xlu2 %v1259_v63  ;;  %1263 = vadd.xlane.f32.xlu0 %v1262_v15  ;;  %v1268_v15 = vsel %vm1040_vm1, %v1174_v16, 0.0  ;;  %v784_v63 = vld [vmem:[#allocation3] sm:$0xff] }
 0x1f4   : > { %1257 = vadd.xlane.f32.xlu1 %v1256_v2  ;;  %v787_v2 = vld [vmem:[#allocation3 + $0x18] sm:$0xff] }
 0x1fb   : > { %1269 = vadd.xlane.f32.xlu2 %v1268_v15 }
 0x1fc   : > { %1266 = vadd.xlane.f32.xlu1 %v1265_v59  ;;  %v793_v59 = vld [vmem:[#allocation3 + $0x48] sm:$0xff] }
 0x207   : > { %1273 = vperm.xlu0 %2476, %v784_v63   ;;  %v791_v63 = vld [vmem:[#allocation3 + $0x38] sm:$0xff] }
 0x20f   : > { %1288 = vperm.xlu0 %2476, %v787_v2   ;;  %v794_v2 = vld [vmem:[#allocation3 + $0x50] sm:$0xff] }
 0x213   : > { %1283 = vperm.xlu2 %2475, %v786_v10  }
 0x215   : > { %1278 = vperm.xlu1 %2474, %v785_v31  }
 0x217   : > { %1298 = vperm.xlu0 %2476, %v789_v38   ;;  %v795_v38 = vld [vmem:[#allocation3 + $0x58] sm:$0xff] }
 0x21b   : > { %1303 = vperm.xlu2 %2475, %v790_v40  }
 0x21d   : > { %1293 = vperm.xlu1 %2474, %v788_v27   ;;  %v796_v27 = vld [vmem:[#allocation3 + $0x60] sm:$0xff] }
 0x21e   : > { %v3643_v43 = vpop.xlane.xlu2 %1182  ;;  %v3645_v16 = vpop.xlane.xlu0 %1179 }
 0x21f   : > { %4449 = vst [vmem:[#allocation21_spill] sm:$0xff] %v3643_v43  ;;  %v3647_v15 = vpop.xlane.xlu1 %1176  ;;  %1313 = vperm.xlu0 %2476, %v792_v52   ;;  %v798_v52 = vld [vmem:[#allocation3 + $0x70] sm:$0xff] }
 0x220   : > { %4450 = vst [vmem:[#allocation22_spill] sm:$0xff] %v3645_v16 }
 0x221   : > { %4451 = vst [vmem:[#allocation23_spill] sm:$0xff] %v3647_v15 }
 0x223   : > { %1318 = vperm.xlu2 %2475, %v793_v59  }
 0x225   : > { %1308 = vperm.xlu1 %2474, %v791_v63   ;;  %v799_v63 = vld [vmem:[#allocation3 + $0x78] sm:$0xff] }
 0x226   : > { %v3649_v10 = vpop.xlane.xlu2 %1188  ;;  %v3651_v31 = vpop.xlane.xlu0 %1191 }
 0x227   : > { %4452 = vst [vmem:[#allocation24_spill] sm:$0xff] %v3649_v10  ;;  %v3653_v40 = vpop.xlane.xlu1 %1185  ;;  %1328 = vperm.xlu0 %2476, %v795_v38   ;;  %v797_v10 = vld [vmem:[#allocation3 + $0x68] sm:$0xff] }
 0x228   : > { %4453 = vst [vmem:[#allocation25_spill] sm:$0xff] %v3651_v31  ;;  %v801_v38 = vld [vmem:[#allocation3 + $0x88] sm:$0xff] }
 0x229   : > { %4454 = vst [vmem:[#allocation26_spill] sm:$0xff] %v3653_v40 }
 0x22b   : > { %1333 = vperm.xlu2 %2475, %v796_v27  }
 0x22d   : > { %1323 = vperm.xlu1 %2474, %v794_v2   ;;  %v802_v2 = vld [vmem:[#allocation3 + $0x90] sm:$0xff] }
 0x22e   : > { %v3655_v16 = vpop.xlane.xlu2 %1197  ;;  %v3657_v15 = vpop.xlane.xlu0 %1200 }
 0x22f   : > { %4455 = vst [vmem:[#allocation27_spill] sm:$0xff] %v3655_v16  ;;  %v3659_v59 = vpop.xlane.xlu1 %1194  ;;  %1343 = vperm.xlu0 %2476, %v798_v52   ;;  %v800_v16 = vld [vmem:[#allocation3 + $0x80] sm:$0xff] }
 0x230   : > { %4456 = vst [vmem:[#allocation28_spill] sm:$0xff] %v3657_v15 }
 0x231   : > { %4457 = vst [vmem:[#allocation29_spill] sm:$0xff] %v3659_v59  ;;  %v804_v59 = vld [vmem:[#allocation3 + $0xa0] sm:$0xff] }
 0x233   : > { %1348 = vperm.xlu2 %2475, %v799_v63   ;;  %v805_v63 = vld [vmem:[#allocation3 + $0xa8] sm:$0xff] }
 0x235   : > { %1338 = vperm.xlu1 %2474, %v797_v10  }
 0x236   : > { %v3661_v31 = vpop.xlane.xlu2 %1206  ;;  %v3663_v40 = vpop.xlane.xlu0 %1209 }
 0x237   : > { %4458 = vst [vmem:[#allocation30_spill] sm:$0xff] %v3661_v31  ;;  %1358 = vperm.xlu0 %2476, %v801_v38   ;;  %v3665_v27 = vpop.xlane.xlu1 %1203  ;;  %v803_v31 = vld [vmem:[#allocation3 + $0x98] sm:$0xff] }
 0x238   : > { %4459 = vst [vmem:[#allocation31_spill] sm:$0xff] %v3663_v40  ;;  %v807_v38 = vld [vmem:[#allocation3 + $0xb8] sm:$0xff] }
 0x239   : > { %4460 = vst [vmem:[#allocation32_spill] sm:$0xff] %v3665_v27 }
 0x23b   : > { %1363 = vperm.xlu2 %2475, %v802_v2   ;;  %v808_v2 = vld [vmem:[#allocation3 + $0xc0] sm:$0xff] }
 0x23d   : > { %1353 = vperm.xlu1 %2474, %v800_v16   ;;  %v806_v16 = vld [vmem:[#allocation3 + $0xb0] sm:$0xff] }
 0x23e   : > { %v3667_v15 = vpop.xlane.xlu2 %1215  ;;  %v3669_v52 = vpop.xlane.xlu0 %1218 }
 0x23f   : > { %4461 = vst [vmem:[#allocation33_spill] sm:$0xff] %v3667_v15  ;;  %1373 = vperm.xlu0 %2476, %v804_v59   ;;  %v3671_v10 = vpop.xlane.xlu1 %1212  ;;  %v810_v59 = vld [vmem:[#allocation3 + $0xd0] sm:$0xff] }
 0x240   : > { %4462 = vst [vmem:[#allocation34_spill] sm:$0xff] %v3669_v52 }
 0x241   : > { %4463 = vst [vmem:[#allocation35_spill] sm:$0xff] %v3671_v10  ;;  %v811_v10 = vld [vmem:[#allocation3 + $0xd8] sm:$0xff] }
 0x243   : > { %1378 = vperm.xlu2 %2475, %v805_v63  }
 0x245   : > { %1368 = vperm.xlu1 %2474, %v803_v31   ;;  %v809_v31 = vld [vmem:[#allocation3 + $0xc8] sm:$0xff] }
 0x246   : > { %v3673_v40 = vpop.xlane.xlu2 %1224  ;;  %v3675_v27 = vpop.xlane.xlu0 %1227 }
 0x247   : > { %4464 = vst [vmem:[#allocation36_spill] sm:$0xff] %v3673_v40  ;;  %1388 = vperm.xlu0 %2476, %v807_v38   ;;  %v3677_v15 = vpop.xlane.xlu1 %1221  ;;  %v813_v38 = vld [vmem:[#allocation3 + $0xe8] sm:$0xff] }
 0x248   : > { %4465 = vst [vmem:[#allocation37_spill] sm:$0xff] %v3675_v27 }
 0x249   : > { %4466 = vst [vmem:[#allocation38_spill] sm:$0xff] %v3677_v15  ;;  %v812_v15 = vld [vmem:[#allocation3 + $0xe0] sm:$0xff] }
 0x24b   : > { %1393 = vperm.xlu2 %2475, %v808_v2   ;;  %v814_v2 = vld [vmem:[#allocation3 + $0xf0] sm:$0xff] }
 0x24d   : > { %1383 = vperm.xlu1 %2474, %v806_v16  }
 0x24e   : > { %v3679_v52 = vpop.xlane.xlu2 %1233  ;;  %v3681_v63 = vpop.xlane.xlu0 %1236 }
 0x24f   : > { %4467 = vst [vmem:[#allocation39_spill] sm:$0xff] %v3679_v52  ;;  %1403 = vperm.xlu0 %2476, %v810_v59   ;;  %v3685_v27 = vpop.xlane.xlu1 %1230 }
 0x250   : > { %4468 = vst [vmem:[#allocation40_spill] sm:$0xff] %v3681_v63  ;;  %v815_v63 = vld [vmem:[#allocation3 + $0xf8] sm:$0xff] }
 0x251   : > { %4470 = vst [vmem:[#allocation42_spill] sm:$0xff] %v3685_v27 }
 0x253   : > { %1408 = vperm.xlu2 %2475, %v811_v10  }
 0x255   : > { %1398 = vperm.xlu1 %2474, %v809_v31  }
 0x256   : > { %v3683_v40 = vpop.xlane.xlu2 %1242  ;;  %v3687_v16 = vpop.xlane.xlu0 %1245 }
 0x257   : > { %4469 = vst [vmem:[#allocation41_spill] sm:$0xff] %v3683_v40  ;;  %1418 = vperm.xlu0 %2476, %v813_v38   ;;  %v3691_v59 = vpop.xlane.xlu1 %1239 }
 0x258   : > { %4471 = vst [vmem:[#allocation43_spill] sm:$0xff] %v3687_v16 }
 0x259   : > { %4473 = vst [vmem:[#allocation45_spill] sm:$0xff] %v3691_v59 }
 0x25b   : > { %1423 = vperm.xlu2 %2475, %v814_v2  }
 0x25d   : > { %1413 = vperm.xlu1 %2474, %v812_v15  }
 0x25e   : > { %v3689_v52 = vpop.xlane.xlu2 %1251  ;;  %v3695_v31 = vpop.xlane.xlu0 %1254 }
 0x25f   : > { %4472 = vst [vmem:[#allocation44_spill] sm:$0xff] %v3689_v52  ;;  %v3697_v40 = vpop.xlane.xlu1 %1248 }
 0x260   : > { %4475 = vst [vmem:[#allocation47_spill] sm:$0xff] %v3695_v31 }
 0x261   : > { %4476 = vst [vmem:[#allocation48_spill] sm:$0xff] %v3697_v40 }
 0x265   : > { %1428 = vperm.xlu1 %2474, %v815_v63  }
 0x266   : > { %v3693_v10 = vpop.xlane.xlu2 %1260  ;;  %v3701_v38 = vpop.xlane.xlu0 %1263 }
 0x267   : > { %4474 = vst [vmem:[#allocation46_spill] sm:$0xff] %v3693_v10  ;;  %v3703_v2 = vpop.xlane.xlu1 %1257 }
 0x268   : > { %4478 = vst [vmem:[#allocation50_spill] sm:$0xff] %v3701_v38 }
 0x269   : > { %4479 = vst [vmem:[#allocation51_spill] sm:$0xff] %v3703_v2 }
 0x26e   : > { %v3699_v27 = vpop.xlane.xlu2 %1269 }
 0x26f   : > { %4477 = vst [vmem:[#allocation49_spill] sm:$0xff] %v3699_v27  ;;  %v3705_v43 = vpop.xlane.xlu1 %1266 }
 0x270   : > { %4480 = vst [vmem:[#allocation52_spill] sm:$0xff] %v3705_v43 }
 0x276   : > { %v1284_v16 = vpop.permute.xlu2 %1283 }
 0x277   : > { %v1433_v10 = vmul.f32 %v1284_v16, %v3176_v45 }
 0x279   : > { %v1274_v15 = vpop.permute.xlu0 %1273  ;;  %v1466_v1 = vsel %vm1040_vm1, %v1433_v10, 0.0 }
 0x27a   : > { %v1431_v63 = vmul.f32 %v1274_v15, %v3169_v58 }
 0x27c   : > { %v1463_v27 = vsel %vm1040_vm1, %v1431_v63, 0.0 }
 0x27e   : > { %v1304_v52 = vpop.permute.xlu2 %1303 }
 0x281   : > { %v1289_v59 = vpop.permute.xlu0 %1288 }
 0x282   : > { %v1434_v43 = vmul.f32 %v1289_v59, %v3183_v39 }
 0x284   : > { %v1468_v58 = vsel %vm1040_vm1, %v1434_v43, 0.0 }
 0x286   : > { %v1319_v36 = vpop.permute.xlu2 %1318 }
 0x287   : > { %v1279_v41 = vpop.permute.xlu1 %1278  ;;  %v1440_v59 = vmul.f32 %v1319_v36, %v3219_v28 }
 0x288   : > { %v1432_v31 = vmul.f32 %v1279_v41, %v3164_v18 }
 0x289   : > { %v1299_v40 = vpop.permute.xlu0 %1298 }
 0x28a   : > { %v1464_v38 = vsel %vm1040_vm1, %v1432_v31, 0.0  ;;  %v1436_v15 = vmul.f32 %v1299_v40, %v3198_v57  ;;  %v1437_v31 = vmul.f32 %v1304_v52, %v3204_v33 }
 0x28b   : > { %v1465_v2 = vadd.f32 %v1464_v38, %v1463_v27 }
 0x28c   : > { %v1472_v27 = vsel %vm1040_vm1, %v1436_v15, 0.0  ;;  %v1480_v15 = vsel %vm1040_vm1, %v1440_v59, 0.0 }
 0x28d   : > { %v1467_v0 = vadd.f32 %v1466_v1, %v1465_v2  ;;  %v1474_v1 = vsel %vm1040_vm1, %v1437_v31, 0.0 }
 0x28e   : > { %v1334_v10 = vpop.permute.xlu2 %1333 }
 0x28f   : > { %v1294_v46 = vpop.permute.xlu1 %1293  ;;  %v1469_v18 = vadd.f32 %v1468_v58, %v1467_v0 }
 0x290   : > { %v1435_v45 = vmul.f32 %v1294_v46, %v3190_v5 }
 0x291   : > { %v1314_v41 = vpop.permute.xlu0 %1313 }
 0x292   : > { %v1470_v16 = vsel %vm1040_vm1, %v1435_v45, 0.0  ;;  %v1439_v43 = vmul.f32 %v1314_v41, %v3224_v22 }
 0x293   : > { %v1471_v63 = vadd.f32 %v1470_v16, %v1469_v18 }
 0x294   : > { %v1478_v33 = vsel %vm1040_vm1, %v1439_v43, 0.0 }
 0x295   : > { %v1473_v38 = vadd.f32 %v1472_v27, %v1471_v63  ;;  %v1443_v63 = vmul.f32 %v1334_v10, %v3240_v14 }
 0x296   : > { %v1349_v2 = vpop.permute.xlu2 %1348 }
 0x297   : > { %v1309_v39 = vpop.permute.xlu1 %1308  ;;  %v1475_v40 = vadd.f32 %v1474_v1, %v1473_v38  ;;  %v1486_v27 = vsel %vm1040_vm1, %v1443_v63, 0.0 }
 0x298   : > { %v1438_v57 = vmul.f32 %v1309_v39, %v3211_v3 }
 0x299   : > { %v1329_v5 = vpop.permute.xlu0 %1328 }
 0x29a   : > { %v1476_v0 = vsel %vm1040_vm1, %v1438_v57, 0.0  ;;  %v1442_v45 = vmul.f32 %v1329_v5, %v3245_v37 }
 0x29b   : > { %v1477_v46 = vadd.f32 %v1476_v0, %v1475_v40  ;;  %v1446_v40 = vmul.f32 %v1349_v2, %v3261_v23 }
 0x29c   : > { %v1484_v28 = vsel %vm1040_vm1, %v1442_v45, 0.0 }
 0x29d   : > { %v1479_v52 = vadd.f32 %v1478_v33, %v1477_v46  ;;  %v1492_v0 = vsel %vm1040_vm1, %v1446_v40, 0.0 }
 0x29e   : > { %v1364_v37 = vpop.permute.xlu2 %1363 }
 0x29f   : > { %v1324_v58 = vpop.permute.xlu1 %1323  ;;  %v1481_v18 = vadd.f32 %v1480_v15, %v1479_v52  ;;  %v1449_v15 = vmul.f32 %v1364_v37, %v3282_v32 }
 0x2a0   : > { %v1441_v22 = vmul.f32 %v1324_v58, %v3232_v30 }
 0x2a1   : > { %v1344_v3 = vpop.permute.xlu0 %1343 }
 0x2a2   : > { %v1482_v41 = vsel %vm1040_vm1, %v1441_v22, 0.0  ;;  %v1445_v38 = vmul.f32 %v1344_v3, %v3266_v47  ;;  %v1498_v22 = vsel %vm1040_vm1, %v1449_v15, 0.0 }
 0x2a3   : > { %v1483_v16 = vadd.f32 %v1482_v41, %v1481_v18 }
 0x2a4   : > { %v1490_v14 = vsel %vm1040_vm1, %v1445_v38, 0.0 }
 0x2a5   : > { %v1485_v36 = vadd.f32 %v1484_v28, %v1483_v16 }
 0x2a6   : > { %v1379_v52 = vpop.permute.xlu2 %1378 }
 0x2a7   : > { %v1339_v31 = vpop.permute.xlu1 %1338  ;;  %v1487_v1 = vadd.f32 %v1486_v27, %v1485_v36  ;;  %v1452_v63 = vmul.f32 %v1379_v52, %v3303_v35 }
 0x2a8   : > { %v1444_v39 = vmul.f32 %v1339_v31, %v3253_v24 }
 0x2a9   : > { %v1359_v30 = vpop.permute.xlu0 %1358  ;;  %v1504_v27 = vsel %vm1040_vm1, %v1452_v63, 0.0 }
 0x2aa   : > { %v1488_v43 = vsel %vm1040_vm1, %v1444_v39, 0.0  ;;  %v1448_v46 = vmul.f32 %v1359_v30, %v3287_v12 }
 0x2ab   : > { %v1489_v57 = vadd.f32 %v1488_v43, %v1487_v1 }
 0x2ac   : > { %v1496_v23 = vsel %vm1040_vm1, %v1448_v46, 0.0 }
 0x2ad   : > { %v1491_v10 = vadd.f32 %v1490_v14, %v1489_v57 }
 0x2ae   : > { %v1394_v32 = vpop.permute.xlu2 %1393 }
 0x2af   : > { %v1354_v5 = vpop.permute.xlu1 %1353  ;;  %v1493_v59 = vadd.f32 %v1492_v0, %v1491_v10  ;;  %v1455_v30 = vmul.f32 %v1394_v32, %v3324_v44 }
 0x2b0   : > { %v1447_v47 = vmul.f32 %v1354_v5, %v3274_v20 }
 0x2b1   : > { %v1374_v24 = vpop.permute.xlu0 %1373  ;;  %v1510_v14 = vsel %vm1040_vm1, %v1455_v30, 0.0 }
 0x2b2   : > { %v1494_v33 = vsel %vm1040_vm1, %v1447_v47, 0.0  ;;  %v1451_v18 = vmul.f32 %v1374_v24, %v3308_v11 }
 0x2b3   : > { %v1495_v58 = vadd.f32 %v1494_v33, %v1493_v59 }
 0x2b4   : > { %v1502_v28 = vsel %vm1040_vm1, %v1451_v18, 0.0 }
 0x2b5   : > { %v1497_v2 = vadd.f32 %v1496_v23, %v1495_v58 }
 0x2b6   : > { %v1409_v57 = vpop.permute.xlu2 %1408 }
 0x2b7   : > { %v1369_v45 = vpop.permute.xlu1 %1368  ;;  %v1499_v3 = vadd.f32 %v1498_v22, %v1497_v2  ;;  %v1458_v46 = vmul.f32 %v1409_v57, %v3345_v54 }
 0x2b8   : > { %v1450_v12 = vmul.f32 %v1369_v45, %v3295_v8 }
 0x2b9   : > { %v1389_v20 = vpop.permute.xlu0 %1388  ;;  %v1516_v33 = vsel %vm1040_vm1, %v1458_v46, 0.0  ;;  %v4483_v46 = vld [vmem:[#allocation6_spill] sm:$0xff] }
 0x2ba   : > { %v1500_v41 = vsel %vm1040_vm1, %v1450_v12, 0.0  ;;  %v1454_v38 = vmul.f32 %v1389_v20, %v3329_v25 }
 0x2bb   : > { %v1501_v16 = vadd.f32 %v1500_v41, %v1499_v3 }
 0x2bc   : > { %v1508_v35 = vsel %vm1040_vm1, %v1454_v38, 0.0 }
 0x2bd   : > { %v1503_v36 = vadd.f32 %v1502_v28, %v1501_v16 }
 0x2bf   : > { %v1384_v31 = vpop.permute.xlu1 %1383  ;;  %v1505_v39 = vadd.f32 %v1504_v27, %v1503_v36 }
 0x2c0   : > { %v1453_v11 = vmul.f32 %v1384_v31, %v3316_v17 }
 0x2c1   : > { %v1404_v1 = vpop.permute.xlu0 %1403 }
 0x2c2   : > { %v1506_v8 = vsel %vm1040_vm1, %v1453_v11, 0.0  ;;  %v1457_v10 = vmul.f32 %v1404_v1, %v3350_v26  ;;  %v1424_v26 = vpop.permute.xlu2 %1423 }
 0x2c3   : > { %v1507_v37 = vadd.f32 %v1506_v8, %v1505_v39  ;;  %v1461_v2 = vmul.f32 %v1424_v26, %v3366_v34 }
 0x2c4   : > { %v1514_v47 = vsel %vm1040_vm1, %v1457_v10, 0.0 }
 0x2c5   : > { %v1509_v43 = vadd.f32 %v1508_v35, %v1507_v37  ;;  %v1522_v18 = vsel %vm1040_vm1, %v1461_v2, 0.0  ;;  %v4487_v2 = vld [vmem:[#allocation11_spill] sm:$0xff] }
 0x2c7   : > { %v1399_v40 = vpop.permute.xlu1 %1398  ;;  %v1511_v5 = vadd.f32 %v1510_v14, %v1509_v43 }
 0x2c8   : > { %v1456_v25 = vmul.f32 %v1399_v40, %v3337_v48 }
 0x2c9   : > { %v1419_v59 = vpop.permute.xlu0 %1418 }
 0x2ca   : > { %v1512_v17 = vsel %vm1040_vm1, %v1456_v25, 0.0  ;;  %v1460_v52 = vmul.f32 %v1419_v59, %v3371_v50  ;;  %v4484_v59 = vld [vmem:[#allocation8_spill] sm:$0xff] }
 0x2cb   : > { %v1513_v0 = vadd.f32 %v1512_v17, %v1511_v5  ;;  %v4481_v5 = vld [vmem:[#allocation5_spill] sm:$0xff] }
 0x2cc   : > { %v1520_v54 = vsel %vm1040_vm1, %v1460_v52, 0.0 }
 0x2cd   : > { %v1515_v44 = vadd.f32 %v1514_v47, %v1513_v0  ;;  %v4482_v0 = vld [vmem:[#allocation4_spill] sm:$0xff] }
 0x2cf   : > { %v1414_v24 = vpop.permute.xlu1 %1413  ;;  %v1517_v15 = vadd.f32 %v1516_v33, %v1515_v44  ;;  %v4485_v33 = vld [vmem:[#allocation7_spill] sm:$0xff] }
 0x2d0   : > { %v1459_v58 = vmul.f32 %v1414_v24, %v3358_v7 }
 0x2d2   : > { %v1518_v48 = vsel %vm1040_vm1, %v1459_v58, 0.0  ;;  %v4486_v58 = vld [vmem:[#allocation9_spill] sm:$0xff] }
 0x2d3   : > { %v1519_v23 = vadd.f32 %v1518_v48, %v1517_v15 }
 0x2d5   : > { %v1521_v45 = vadd.f32 %v1520_v54, %v1519_v23 }
 0x2d7   : > { %v1429_v22 = vpop.permute.xlu1 %1428  ;;  %v1523_v3 = vadd.f32 %v1522_v18, %v1521_v45  ;;  %v4488_v45 = vld [vmem:[#allocation10_spill] sm:$0xff]  ;;  %v4489_v18 = vld [vmem:[#allocation12_spill] sm:$0xff] }
 0x2d8   : > { %v1462_v12 = vmul.f32 %v1429_v22, %v3376_v9 }
 0x2da   : > { %v1524_v50 = vsel %vm1040_vm1, %v1462_v12, 0.0 }
 0x2db   : > { %v1525_v20 = vadd.f32 %v1524_v50, %v1523_v3 }
 0x2dd   : > { %v1526_v7 = vrot.slane %v1525_v20, 4 }
 0x2df   : > { %v1527_v41 = vadd.f32 %v1526_v7, %v1525_v20  ;;  %v4490_v7 = vld [vmem:[#allocation14_spill] sm:$0xff] }
 0x2e1   : > { %v1528_v16 = vrot.slane %v1527_v41, 2 }
 0x2e3   : > { %v1529_v63 = vadd.f32 %v1528_v16, %v1527_v41  ;;  %v4491_v16 = vld [vmem:[#allocation13_spill] sm:$0xff] }
 0x2e5   : > { %v1530_v28 = vrot.slane %v1529_v63, 1 }
 0x2e7   : > { %v1531_v32 = vadd.f32 %v1530_v28, %v1529_v63  ;;  %v4492_v28 = vld [vmem:[#allocation15_spill] sm:$0xff] }
 0x2e9   : > { %v3771_v36 = vmax.f32 %v1531_v32, 0.0 }
 0x2eb   : > { %v1535_v34 = vmul.f32 %v3771_v36, %v3388_v55  ;;  %v1534_v31 = vmul.f32 %v3771_v36, %v3393_v56  ;;  %v1533_v9 = vmul.f32 %v3771_v36, %v3398_v13  ;;  %v1538_v39 = vmul.f32 %v3771_v36, %v3419_v42 }
 0x2ec   : > { %v1537_v55 = vmul.f32 %v3771_v36, %v3414_v29  ;;  %v1536_v56 = vmul.f32 %v3771_v36, %v3424_v49  ;;  %v1541_v1 = vmul.f32 %v3771_v36, %v3443_v61  ;;  %v1540_v42 = vmul.f32 %v3771_v36, %v3438_v53 }
 0x2ed   : > { %v1571_v27 = vsel %vm1040_vm1, %v1535_v34, 0.0  ;;  %v1568_v38 = vsel %vm1040_vm1, %v1534_v31, 0.0  ;;  %v1565_v11 = vsel %vm1040_vm1, %v1533_v9, 0.0  ;;  %v1580_v13 = vsel %vm1040_vm1, %v1538_v39, 0.0 }
 0x2ee   : > { %1572 = vadd.xlane.f32.xlu1 %v1571_v27  ;;  %1569 = vadd.xlane.f32.xlu2 %v1568_v38  ;;  %v1577_v8 = vsel %vm1040_vm1, %v1537_v55, 0.0  ;;  %v1574_v37 = vsel %vm1040_vm1, %v1536_v56, 0.0  ;;  %v1539_v29 = vmul.f32 %v3771_v36, %v3448_v51  ;;  %v1589_v49 = vsel %vm1040_vm1, %v1541_v1, 0.0  ;;  %v4493_v27 = vld [vmem:[#allocation17_spill] sm:$0xff]  ;;  %v4495_v55 = vld [vmem:[#allocation18_spill] sm:$0xff]  ;;  %v4496_v1 = vld [vmem:[#allocation19_spill] sm:$0xff] }
 0x2ef   : > { %1566 = vadd.xlane.f32.xlu0 %v1565_v11  ;;  %v1586_v30 = vsel %vm1040_vm1, %v1540_v42, 0.0  ;;  %v1544_v43 = vmul.f32 %v3771_v36, %v3467_v6  ;;  %v1543_v61 = vmul.f32 %v3771_v36, %v3462_v4  ;;  %v1542_v53 = vmul.f32 %v3771_v36, %v3472_v21  ;;  %v4494_v11 = vld [vmem:[#allocation16_spill] sm:$0xff] }
 0x2f0   : > { %v1583_v35 = vsel %vm1040_vm1, %v1539_v29, 0.0  ;;  %v1547_v14 = vmul.f32 %v3771_v36, %v3491_v60  ;;  %v1546_v6 = vmul.f32 %v3771_v36, %v3486_v62  ;;  %v1545_v4 = vmul.f32 %v3771_v36, %v3496_v19  ;;  %v4497_v29 = vld [vmem:[#allocation20_spill] sm:$0xff] }
 0x2f1   : > { %v1598_v51 = vsel %vm1040_vm1, %v1544_v43, 0.0  ;;  %v1595_v57 = vsel %vm1040_vm1, %v1543_v61, 0.0  ;;  %v1592_v40 = vsel %vm1040_vm1, %v1542_v53, 0.0  ;;  %v1550_v17 = vmul.f32 %v3771_v36, %v4481_v5  ;;  %v4498_v53 = vld [vmem:[#allocation21_spill] sm:$0xff] }
 0x2f2   : > { %v1607_v21 = vsel %vm1040_vm1, %v1547_v14, 0.0  ;;  %v1604_v10 = vsel %vm1040_vm1, %v1546_v6, 0.0  ;;  %v1601_v25 = vsel %vm1040_vm1, %v1545_v4, 0.0  ;;  %v1549_v60 = vmul.f32 %v3771_v36, %v4482_v0  ;;  %v4500_v6 = vld [vmem:[#allocation23_spill] sm:$0xff] }
 0x2f3   : > { %v1548_v62 = vmul.f32 %v3771_v36, %v4483_v46  ;;  %v1616_v19 = vsel %vm1040_vm1, %v1550_v17, 0.0  ;;  %v1553_v24 = vmul.f32 %v3771_v36, %v4484_v59  ;;  %v1552_v52 = vmul.f32 %v3771_v36, %v4485_v33  ;;  %v4501_v17 = vld [vmem:[#allocation25_spill] sm:$0xff] }
 0x2f4   : > { %v1613_v47 = vsel %vm1040_vm1, %v1549_v60, 0.0  ;;  %v1551_v26 = vmul.f32 %v3771_v36, %v4486_v58  ;;  %v1556_v54 = vmul.f32 %v3771_v36, %v4487_v2  ;;  %v1555_v22 = vmul.f32 %v3771_v36, %v4488_v45  ;;  %v4502_v60 = vld [vmem:[#allocation24_spill] sm:$0xff] }
 0x2f5   : > { %v1610_v44 = vsel %vm1040_vm1, %v1548_v62, 0.0  ;;  %v1625_v15 = vsel %vm1040_vm1, %v1553_v24, 0.0  ;;  %v1622_v48 = vsel %vm1040_vm1, %v1552_v52, 0.0  ;;  %v1554_v12 = vmul.f32 %v3771_v36, %v4489_v18 }
 0x2f6   : > { %1581 = vadd.xlane.f32.xlu1 %v1580_v13  ;;  %1578 = vadd.xlane.f32.xlu2 %v1577_v8  ;;  %v1619_v23 = vsel %vm1040_vm1, %v1551_v26, 0.0  ;;  %v1634_v3 = vsel %vm1040_vm1, %v1556_v54, 0.0  ;;  %v1631_v50 = vsel %vm1040_vm1, %v1555_v22, 0.0  ;;  %v1559_v41 = vmul.f32 %v3771_v36, %v4490_v7  ;;  %v4504_v22 = vld [vmem:[#allocation28_spill] sm:$0xff]  ;;  %v4505_v7 = vld [vmem:[#allocation27_spill] sm:$0xff] }
 0x2f7   : > { %1575 = vadd.xlane.f32.xlu0 %v1574_v37  ;;  %v1628_v20 = vsel %vm1040_vm1, %v1554_v12, 0.0  ;;  %v1558_v63 = vmul.f32 %v3771_v36, %v4491_v16  ;;  %v1557_v32 = vmul.f32 %v3771_v36, %v4492_v28  ;;  %v1562_v38 = vmul.f32 %v3771_v36, %v4493_v27 }
 0x2f8   : > { %v1643_v34 = vsel %vm1040_vm1, %v1559_v41, 0.0  ;;  %v1561_v39 = vmul.f32 %v3771_v36, %v4494_v11  ;;  %v1560_v56 = vmul.f32 %v3771_v36, %v4495_v55  ;;  %v1564_v42 = vmul.f32 %v3771_v36, %v4496_v1 }
 0x2f9   : > { %v1640_v31 = vsel %vm1040_vm1, %v1558_v63, 0.0  ;;  %v1637_v9 = vsel %vm1040_vm1, %v1557_v32, 0.0  ;;  %v1652_v13 = vsel %vm1040_vm1, %v1562_v38, 0.0 }
 0x2fa   : > { %v1649_v8 = vsel %vm1040_vm1, %v1561_v39, 0.0  ;;  %v1646_v37 = vsel %vm1040_vm1, %v1560_v56, 0.0 }
 0x2fe   : > { %1590 = vadd.xlane.f32.xlu1 %v1589_v49  ;;  %1587 = vadd.xlane.f32.xlu2 %v1586_v30  ;;  %v1563_v49 = vmul.f32 %v3771_v36, %v4497_v29  ;;  %v1658_v30 = vsel %vm1040_vm1, %v1564_v42, 0.0 }
 0x2ff   : > { %1584 = vadd.xlane.f32.xlu0 %v1583_v35 }
 0x300   : > { %v1655_v35 = vsel %vm1040_vm1, %v1563_v49, 0.0 }
 0x306   : > { %1599 = vadd.xlane.f32.xlu1 %v1598_v51  ;;  %1596 = vadd.xlane.f32.xlu2 %v1595_v57  ;;  %v4499_v57 = vld [vmem:[#allocation22_spill] sm:$0xff] }
 0x307   : > { %1593 = vadd.xlane.f32.xlu0 %v1592_v40 }
 0x30e   : > { %1608 = vadd.xlane.f32.xlu1 %v1607_v21  ;;  %1605 = vadd.xlane.f32.xlu2 %v1604_v10 }
 0x30f   : > { %1602 = vadd.xlane.f32.xlu0 %v1601_v25 }
 0x316   : > { %1617 = vadd.xlane.f32.xlu1 %v1616_v19  ;;  %1614 = vadd.xlane.f32.xlu2 %v1613_v47  ;;  %v4503_v19 = vld [vmem:[#allocation26_spill] sm:$0xff] }
 0x317   : > { %1611 = vadd.xlane.f32.xlu0 %v1610_v44 }
 0x31e   : > { %1626 = vadd.xlane.f32.xlu1 %v1625_v15  ;;  %1623 = vadd.xlane.f32.xlu2 %v1622_v48 }
 0x31f   : > { %1620 = vadd.xlane.f32.xlu0 %v1619_v23 }
 0x326   : > { %1635 = vadd.xlane.f32.xlu1 %v1634_v3  ;;  %1632 = vadd.xlane.f32.xlu2 %v1631_v50 }
 0x327   : > { %1629 = vadd.xlane.f32.xlu0 %v1628_v20 }
 0x32e   : > { %1644 = vadd.xlane.f32.xlu1 %v1643_v34  ;;  %1641 = vadd.xlane.f32.xlu2 %v1640_v31 }
 0x32f   : > { %1638 = vadd.xlane.f32.xlu0 %v1637_v9 }
 0x336   : > { %1653 = vadd.xlane.f32.xlu1 %v1652_v13  ;;  %1650 = vadd.xlane.f32.xlu2 %v1649_v8 }
 0x337   : > { %1647 = vadd.xlane.f32.xlu0 %v1646_v37 }
 0x33e   : > { %1659 = vadd.xlane.f32.xlu2 %v1658_v30  ;;  %v4510_v30 = vld [vmem:[#allocation29_spill] sm:$0xff] }
 0x33f   : > { %1656 = vadd.xlane.f32.xlu0 %v1655_v35 }
 0x361   : > { %v1573_v43 = vpop.xlane.xlu1 %1572  ;;  %v1570_v61 = vpop.xlane.xlu2 %1569 }
 0x362   : > { %v1663_v51 = vadd.f32 %v1573_v43, %v4498_v53  ;;  %v1662_v40 = vadd.f32 %v1570_v61, %v4499_v57  ;;  %v1567_v14 = vpop.xlane.xlu0 %1566 }
 0x363   : > { %v1661_v4 = vadd.f32 %v1567_v14, %v4500_v6 }
 0x364   : > { %v2413_v21 = vmul.f32 -1.442695, %v1663_v51  ;;  %v2412_v10 = vmul.f32 -1.442695, %v1662_v40 }
 0x365   : > { %v2411_v25 = vmul.f32 -1.442695, %v1661_v4 }
 0x366   : > { %2477 = vpow2.f32 %v2413_v21 }
 0x367   : > { %2479 = vpow2.f32 %v2412_v10 }
 0x368   : > { %2481 = vpow2.f32 %v2411_v25 }
 0x369   : > { %v1582_v36 = vpop.xlane.xlu1 %1581  ;;  %v1579_v5 = vpop.xlane.xlu2 %1578 }
 0x36a   : > { %v1666_v0 = vadd.f32 %v1582_v36, %v4501_v17  ;;  %v1665_v46 = vadd.f32 %v1579_v5, %v4502_v60  ;;  %v1576_v62 = vpop.xlane.xlu0 %1575 }
 0x36b   : > { %v1664_v47 = vadd.f32 %v1576_v62, %v4503_v19 }
 0x36c   : > { %v2478_v44 = vpop.eup %2477  ;;  %v2416_v59 = vmul.f32 -1.442695, %v1666_v0  ;;  %v2415_v52 = vmul.f32 -1.442695, %v1665_v46 }
 0x36d   : > { %v2480_v24 = vpop.eup %2479  ;;  %v3875_v33 = vadd.f32 1.0, %v2478_v44  ;;  %v2414_v15 = vmul.f32 -1.442695, %v1664_v47 }
 0x36e   : > { %v2482_v58 = vpop.eup %2481  ;;  %v3877_v26 = vadd.f32 1.0, %v2480_v24  ;;  %2483 = vpow2.f32 %v2416_v59 }
 0x36f   : > { %2485 = vrcp.f32 %v3875_v33  ;;  %v3881_v48 = vadd.f32 1.0, %v2482_v58  ;;  %v1860_v54 = vand.u32 2147483647, %v3875_v33  ;;  %v1862_v45 = vand.u32 2147483648, %v3875_v33 }
 0x370   : > { %2487 = vrcp.f32 %v3877_v26  ;;  %v1845_v12 = vand.u32 2147483647, %v3877_v26  ;;  %v1847_v3 = vand.u32 2147483648, %v3877_v26  ;;  %vm1856_vm2 = vweird.f32 %v3875_v33 }
 0x371   : > { %2489 = vpow2.f32 %v2415_v52  ;;  %v1591_v23 = vpop.xlane.xlu1 %1590  ;;  %v1588_v2 = vpop.xlane.xlu2 %1587  ;;  %vm1841_vm3 = vweird.f32 %v3877_v26  ;;  %vm3895_vm4 = vcmp.eq.f32.partialorder %v1860_v54, 8.507059e+37  ;;  %v1863_v31 = vor.u32 1.1754944e-38, %v1862_v45 }
 0x372   : > { %2491 = vpow2.f32 %v2414_v15  ;;  %v1669_v18 = vadd.f32 %v1591_v23, %v4504_v22  ;;  %v1668_v41 = vadd.f32 %v1588_v2, %v4505_v7  ;;  %v1585_v27 = vpop.xlane.xlu0 %1584  ;;  %vm3900_vm5 = vcmp.eq.f32.partialorder %v1845_v12, 8.507059e+37 }
 0x373   : > { %2493 = vrcp.f32 %v3881_v48  ;;  %v1848_v55 = vor.u32 1.1754944e-38, %v1847_v3  ;;  %v1830_v56 = vand.u32 2147483647, %v3881_v48  ;;  %vm1826_vm6 = vweird.f32 %v3881_v48 }
 0x374   : > { %v2484_v50 = vpop.eup %2483  ;;  %v2419_v20 = vmul.f32 -1.442695, %v1669_v18  ;;  %v2418_v9 = vmul.f32 -1.442695, %v1668_v41  ;;  %v1832_v37 = vand.u32 2147483648, %v3881_v48  ;;  %v1667_v35 = vadd.f32 %v1585_v27, %v4510_v30 }
 0x375   : > { %v2486_v16 = vpop.eup %2485  ;;  %v3892_v63 = vadd.f32 1.0, %v2484_v50  ;;  %vm3922_vm9 = vcmp.eq.f32.partialorder %v1830_v56, 8.507059e+37 }
 0x376   : > { %v2488_v28 = vpop.eup %2487  ;;  %v1852_v32 = vmul.f32 %v2486_v16, %v3875_v33  ;;  %vm1857_vm7 = vweird.f32 %v2486_v16  ;;  %v1833_v10 = vor.u32 1.1754944e-38, %v1832_v37  ;;  %v2417_v5 = vmul.f32 -1.442695, %v1667_v35  ;;  %v4520_v35 = vld [vmem:[#allocation30_spill] sm:$0xff] }
 0x377   : > { %v2490_v38 = vpop.eup %2489  ;;  %v1837_v11 = vmul.f32 %v2488_v28, %v3877_v26  ;;  %2495 = vrcp.f32 %v3892_v63  ;;  %vm1842_vm8 = vweird.f32 %v2488_v28  ;;  %v1905_v57 = vand.u32 2147483647, %v3892_v63  ;;  %vm1858_vm10 = vmor %vm1856_vm2, %vm1857_vm7 }
 0x378   : > { %v2492_v13 = vpop.eup %2491  ;;  %v1853_v8 = vsub.f32 1.0, %v1852_v32  ;;  %v3908_v1 = vadd.f32 1.0, %v2490_v38  ;;  %2497 = vpow2.f32 %v2419_v20  ;;  %v1907_v40 = vand.u32 2147483648, %v3892_v63  ;;  %vm1843_vm12 = vmor %vm1841_vm3, %vm1842_vm8 }
 0x379   : > { %v2494_v42 = vpop.eup %2493  ;;  %v1838_v29 = vsub.f32 1.0, %v1837_v11  ;;  %v3910_v49 = vadd.f32 1.0, %v2492_v13  ;;  %2499 = vpow2.f32 %v2418_v9  ;;  %v3913_v43 = vpop.xlane.xlu1 %1599  ;;  %vm1901_vm11 = vweird.f32 %v3892_v63 }
 0x37a   : > { %v1854_v61 = vmul.f32 %v2486_v16, %v1853_v8  ;;  %v1822_v53 = vmul.f32 %v2494_v42, %v3881_v48  ;;  %2501 = vrcp.f32 %v3908_v1  ;;  %v3920_v14 = vpop.xlane.xlu2 %1596  ;;  %vm1827_vm13 = vweird.f32 %v2494_v42  ;;  %v1594_v54 = vpop.xlane.xlu0 %1593 }
 0x37b   : > { %v1839_v51 = vmul.f32 %v2488_v28, %v1838_v29  ;;  %2503 = vrcp.f32 %v3910_v49  ;;  %vm3941_vm14 = vcmp.eq.f32.partialorder %v1905_v57, 8.507059e+37  ;;  %v1908_v59 = vor.u32 1.1754944e-38, %v1907_v40  ;;  %vm1828_vm15 = vmor %vm1826_vm6, %vm1827_vm13  ;;  %v4519_v29 = vld [vmem:[#allocation31_spill] sm:$0xff]  ;;  %v4521_v40 = vld [vmem:[#allocation32_spill] sm:$0xff] }
 0x37c   : > { %v1855_v6 = vadd.f32 %v2486_v16, %v1854_v61  ;;  %v1823_v4 = vsub.f32 1.0, %v1822_v53  ;;  %v1890_v58 = vand.u32 2147483647, %v3908_v1  ;;  %v1892_v15 = vand.u32 2147483648, %v3908_v1 }
 0x37d   : > { %v2496_v25 = vpop.eup %2495  ;;  %v1840_v36 = vadd.f32 %v2488_v28, %v1839_v51  ;;  %2505 = vpow2.f32 %v2417_v5  ;;  %v1875_v50 = vand.u32 2147483647, %v3910_v49  ;;  %v1877_v20 = vand.u32 2147483648, %v3910_v49 }
 0x37e   : > { %v2498_v17 = vpop.eup %2497  ;;  %v1859_v0 = vsel %vm1858_vm10, %v2486_v16, %v1855_v6  ;;  %v1824_v60 = vmul.f32 %v2494_v42, %v1823_v4  ;;  %v1897_v46 = vmul.f32 %v2496_v25, %v3892_v63  ;;  %vm1902_vm1 = vweird.f32 %v2496_v25 }
 0x37f   : > { %v2500_v62 = vpop.eup %2499  ;;  %v1864_v19 = vsel %vm3895_vm4, %v1863_v31, %v1859_v0  ;;  %v1844_v47 = vsel %vm1843_vm12, %v2488_v28, %v1840_v36  ;;  %v3955_v23 = vadd.f32 1.0, %v2498_v17  ;;  %vm1886_vm2 = vweird.f32 %v3908_v1  ;;  %vm1903_vm3 = vmor %vm1901_vm11, %vm1902_vm1  ;;  %v4531_v36 = vld [vmem:[#allocation39_spill] sm:$0xff] }
 0x380   : > { %2303 = vst.msk [vmem:[%s3929_s8 + $0x10] sm:$0xff] %vm203_vm0, %v1864_v19  ;;  %v1849_v24 = vsel %vm3900_vm5, %v1848_v55, %v1844_v47  ;;  %v1825_v33 = vadd.f32 %v2494_v42, %v1824_v60  ;;  %v1898_v52 = vsub.f32 1.0, %v1897_v46  ;;  %v2502_v26 = vpop.eup %2501  ;;  %v3957_v2 = vadd.f32 1.0, %v2500_v62  ;;  %v4524_v47 = vld [vmem:[#allocation34_spill] sm:$0xff] }
 0x381   : > { %2302 = vst.msk [vmem:[%s3929_s8 + $0x8] sm:$0xff] %vm203_vm0, %v1849_v24  ;;  %v3959_v45 = vpop.xlane.xlu1 %1608  ;;  %v1882_v12 = vmul.f32 %v2502_v26, %v3908_v1  ;;  %v2504_v3 = vpop.eup %2503  ;;  %2507 = vrcp.f32 %v3955_v23  ;;  %vm3973_vm4 = vcmp.eq.f32.partialorder %v1890_v58, 8.507059e+37  ;;  %v1893_v32 = vor.u32 1.1754944e-38, %v1892_v15 }
 0x382   : > { %v1829_v22 = vsel %vm1828_vm15, %v2494_v42, %v1825_v33  ;;  %v1899_v18 = vmul.f32 %v2496_v25, %v1898_v52  ;;  %v1867_v16 = vmul.f32 %v2504_v3, %v3910_v49  ;;  %vm1871_vm5 = vweird.f32 %v3910_v49  ;;  %v1606_v34 = vpop.xlane.xlu2 %1605 }
 0x383   : > { %v1834_v48 = vsel %vm3922_vm9, %v1833_v10, %v1829_v22  ;;  %v1883_v41 = vsub.f32 1.0, %v1882_v12  ;;  %2509 = vrcp.f32 %v3957_v2  ;;  %vm1887_vm6 = vweird.f32 %v2502_v26  ;;  %v2506_v38 = vpop.eup %2505 }
 0x384   : > { %2301 = vst.msk [vmem:[%s3929_s8] sm:$0xff] %vm203_vm0, %v1834_v48  ;;  %v1900_v7 = vadd.f32 %v2496_v25, %v1899_v18  ;;  %v1868_v27 = vsub.f32 1.0, %v1867_v16  ;;  %vm1872_vm7 = vweird.f32 %v2504_v3  ;;  %vm3981_vm8 = vcmp.eq.f32.partialorder %v1875_v50, 8.507059e+37  ;;  %vm1888_vm9 = vmor %vm1886_vm2, %vm1887_vm6  ;;  %v4527_v50 = vld [vmem:[#allocation37_spill] sm:$0xff] }
 0x385   : > { %v1884_v9 = vmul.f32 %v2502_v26, %v1883_v41  ;;  %v1878_v39 = vor.u32 1.1754944e-38, %v1877_v20  ;;  %v1950_v13 = vand.u32 2147483647, %v3955_v23  ;;  %v3988_v8 = vadd.f32 1.0, %v2506_v38  ;;  %vm1873_vm11 = vmor %vm1871_vm5, %vm1872_vm7 }
 0x386   : > { %v1904_v31 = vsel %vm1903_vm3, %v2496_v25, %v1900_v7  ;;  %v1869_v56 = vmul.f32 %v2504_v3, %v1868_v27  ;;  %vm1946_vm10 = vweird.f32 %v3955_v23  ;;  %v1952_v42 = vand.u32 2147483648, %v3955_v23 }
 0x387   : > { %v1909_v63 = vsel %vm3941_vm14, %v1908_v59, %v1904_v31  ;;  %v1885_v55 = vadd.f32 %v2502_v26, %v1884_v9  ;;  %v2508_v37 = vpop.eup %2507  ;;  %v1672_v30 = vadd.f32 %v3913_v43, %v4519_v29  ;;  %v1671_v61 = vadd.f32 %v3920_v14, %v4520_v35  ;;  %v1603_v14 = vpop.xlane.xlu0 %1602  ;;  %v4525_v59 = vld [vmem:[#allocation33_spill] sm:$0xff]  ;;  %v4529_v29 = vld [vmem:[#allocation38_spill] sm:$0xff]  ;;  %v4530_v35 = vld [vmem:[#allocation40_spill] sm:$0xff] }
 0x388   : > { %2306 = vst.msk [vmem:[%s3929_s8 + $0x28] sm:$0xff] %vm203_vm0, %v1909_v63  ;;  %v1870_v51 = vadd.f32 %v2504_v3, %v1869_v56  ;;  %v1942_v57 = vmul.f32 %v2508_v37, %v3955_v23  ;;  %v1670_v6 = vadd.f32 %v1594_v54, %v4521_v40  ;;  %vm1931_vm12 = vweird.f32 %v3957_v2 }
 0x389   : > { %v1889_v53 = vsel %vm1888_vm9, %v2502_v26, %v1885_v55  ;;  %v2510_v4 = vpop.eup %2509  ;;  %v1935_v43 = vand.u32 2147483647, %v3957_v2  ;;  %2511 = vrcp.f32 %v3988_v8  ;;  %v1618_v21 = vpop.xlane.xlu1 %1617  ;;  %vm4010_vm13 = vcmp.eq.f32.partialorder %v1950_v13, 8.507059e+37  ;;  %v4526_v26 = vld [vmem:[#allocation35_spill] sm:$0xff]  ;;  %v4528_v13 = vld [vmem:[#allocation36_spill] sm:$0xff] }
 0x38a   : > { %v1894_v1 = vsel %vm3973_vm4, %v1893_v32, %v1889_v53  ;;  %v1874_v10 = vsel %vm1873_vm11, %v2504_v3, %v1870_v51  ;;  %v1943_v25 = vsub.f32 1.0, %v1942_v57  ;;  %v1927_v49 = vmul.f32 %v2510_v4, %v3957_v2  ;;  %v1615_v33 = vpop.xlane.xlu2 %1614 }
 0x38b   : > { %2305 = vst.msk [vmem:[%s3929_s8 + $0x20] sm:$0xff] %vm203_vm0, %v1894_v1  ;;  %v1879_v5 = vsel %vm3981_vm8, %v1878_v39, %v1874_v10  ;;  %vm1947_vm14 = vweird.f32 %v2508_v37  ;;  %v1937_v17 = vand.u32 2147483648, %v3957_v2  ;;  %v2422_v0 = vmul.f32 -1.442695, %v1672_v30 }
 0x38c   : > { %2304 = vst.msk [vmem:[%s3929_s8 + $0x18] sm:$0xff] %vm203_vm0, %v1879_v5  ;;  %v1944_v60 = vmul.f32 %v2508_v37, %v1943_v25  ;;  %v1928_v46 = vsub.f32 1.0, %v1927_v49  ;;  %v2421_v62 = vmul.f32 -1.442695, %v1671_v61  ;;  %v2420_v19 = vmul.f32 -1.442695, %v1670_v6  ;;  %vm1948_vm1 = vmor %vm1946_vm10, %vm1947_vm14 }
 0x38d   : > { %vm1932_vm15 = vweird.f32 %v2510_v4  ;;  %2513 = vpow2.f32 %v2422_v0  ;;  %v1675_v44 = vadd.f32 %v3959_v45, %v4524_v47  ;;  %v1674_v24 = vadd.f32 %v1606_v34, %v4525_v59 }
 0x38e   : > { %v1945_v52 = vadd.f32 %v2508_v37, %v1944_v60  ;;  %v1929_v58 = vmul.f32 %v2510_v4, %v1928_v46  ;;  %2515 = vpow2.f32 %v2421_v62  ;;  %v1673_v15 = vadd.f32 %v1603_v14, %v4526_v26  ;;  %vm1933_vm2 = vmor %vm1931_vm12, %vm1932_vm15 }
 0x38f   : > { %v2512_v54 = vpop.eup %2511  ;;  %v1953_v22 = vor.u32 1.1754944e-38, %v1952_v42  ;;  %2517 = vpow2.f32 %v2420_v19  ;;  %v2425_v18 = vmul.f32 -1.442695, %v1675_v44  ;;  %v2424_v12 = vmul.f32 -1.442695, %v1674_v24  ;;  %v1612_v27 = vpop.xlane.xlu0 %1611 }
 0x390   : > { %v1949_v3 = vsel %vm1948_vm1, %v2508_v37, %v1945_v52  ;;  %v1930_v45 = vadd.f32 %v2510_v4, %v1929_v58  ;;  %v1912_v48 = vmul.f32 %v2512_v54, %v3988_v8  ;;  %v1678_v20 = vadd.f32 %v1618_v21, %v4527_v50 }
 0x391   : > { %v1954_v7 = vsel %vm4010_vm13, %v1953_v22, %v1949_v3  ;;  %v1938_v41 = vor.u32 1.1754944e-38, %v1937_v17  ;;  %2519 = vpow2.f32 %v2425_v18  ;;  %v2423_v23 = vmul.f32 -1.442695, %v1673_v15  ;;  %v1627_v2 = vpop.xlane.xlu1 %1626 }
 0x392   : > { %2309 = vst.msk [vmem:[%s3929_s8 + $0x40] sm:$0xff] %vm203_vm0, %v1954_v7  ;;  %v1934_v16 = vsel %vm1933_vm2, %v2510_v4, %v1930_v45  ;;  %vm1936_vm3 = vcmp.eq.f32.partialorder %v1935_v43, 8.507059e+37  ;;  %v1913_v28 = vsub.f32 1.0, %v1912_v48  ;;  %2521 = vpow2.f32 %v2424_v12  ;;  %v1624_v57 = vpop.xlane.xlu2 %1623 }
 0x393   : > { %v2514_v32 = vpop.eup %2513  ;;  %v1939_v34 = vsel %vm1936_vm3, %v1938_v41, %v1934_v16  ;;  %v1920_v31 = vand.u32 2147483647, %v3988_v8  ;;  %v1922_v9 = vand.u32 2147483648, %v3988_v8  ;;  %2523 = vpow2.f32 %v2423_v23 }
 0x394   : > { %v2516_v38 = vpop.eup %2515  ;;  %2308 = vst.msk [vmem:[%s3929_s8 + $0x38] sm:$0xff] %vm203_vm0, %v1939_v34  ;;  %v1914_v63 = vmul.f32 %v2512_v54, %v1913_v28  ;;  %vm1917_vm4 = vweird.f32 %v2512_v54  ;;  %v4040_v11 = vadd.f32 1.0, %v2514_v32  ;;  %v2428_v39 = vmul.f32 -1.442695, %v1678_v20 }
 0x395   : > { %v2518_v55 = vpop.eup %2517  ;;  %vm1916_vm5 = vweird.f32 %v3988_v8  ;;  %v4043_v56 = vadd.f32 1.0, %v2516_v38  ;;  %v1677_v37 = vadd.f32 %v1615_v33, %v4528_v13  ;;  %v1676_v30 = vadd.f32 %v1612_v27, %v4529_v29 }
 0x396   : > { %v1915_v42 = vadd.f32 %v2512_v54, %v1914_v63  ;;  %2525 = vrcp.f32 %v4040_v11  ;;  %v1681_v61 = vadd.f32 %v1627_v2, %v4530_v35  ;;  %vm1918_vm6 = vmor %vm1916_vm5, %vm1917_vm4  ;;  %v1923_v51 = vor.u32 1.1754944e-38, %v1922_v9 }
 0x397   : > { %v2520_v53 = vpop.eup %2519  ;;  %2527 = vrcp.f32 %v4043_v56  ;;  %vm1921_vm7 = vcmp.eq.f32.partialorder %v1920_v31, 8.507059e+37  ;;  %v4050_v6 = vadd.f32 1.0, %v2518_v55  ;;  %v1995_v43 = vand.u32 2147483647, %v4040_v11 }
 0x398   : > { %v2522_v40 = vpop.eup %2521  ;;  %v1919_v8 = vsel %vm1918_vm6, %v2512_v54, %v1915_v42  ;;  %2529 = vpow2.f32 %v2428_v39  ;;  %v4053_v14 = vadd.f32 1.0, %v2520_v53  ;;  %v2427_v21 = vmul.f32 -1.442695, %v1677_v37  ;;  %v1621_v53 = vpop.xlane.xlu0 %1620 }
 0x399   : > { %v2524_v4 = vpop.eup %2523  ;;  %v1924_v1 = vsel %vm1921_vm7, %v1923_v51, %v1919_v8  ;;  %2531 = vrcp.f32 %v4050_v6  ;;  %v4058_v10 = vmul.f32 -1.442695, %v1676_v30  ;;  %v4060_v25 = vmul.f32 -1.442695, %v1681_v61 }
 0x39a   : > { %2307 = vst.msk [vmem:[%s3929_s8 + $0x30] sm:$0xff] %vm203_vm0, %v1924_v1  ;;  %v4063_v49 = vadd.f32 %v1624_v57, %v4531_v36  ;;  %v1997_v5 = vand.u32 2147483648, %v4040_v11  ;;  %v1980_v17 = vand.u32 2147483647, %v4043_v56  ;;  %v1982_v0 = vand.u32 2147483648, %v4043_v56 }
 0x39b   : > { %2533 = vrcp.f32 %v4053_v14  ;;  %vm1991_vm8 = vweird.f32 %v4040_v11  ;;  %vm1976_vm9 = vweird.f32 %v4043_v56  ;;  %v4071_v46 = vadd.f32 1.0, %v2522_v40 }
 0x39c   : > { %v2526_v60 = vpop.eup %2525  ;;  %v4073_v62 = vadd.f32 1.0, %v2524_v4  ;;  %vm4076_vm10 = vcmp.eq.f32.partialorder %v1995_v43, 8.507059e+37  ;;  %v1965_v59 = vand.u32 2147483647, %v4050_v6  ;;  %v1967_v24 = vand.u32 2147483648, %v4050_v6 }
 0x39d   : > { %v2528_v19 = vpop.eup %2527  ;;  %v1987_v47 = vmul.f32 %v2526_v60, %v4040_v11  ;;  %v2040_v58 = vand.u32 2147483647, %v4053_v14  ;;  %v2042_v26 = vand.u32 2147483648, %v4053_v14  ;;  %2535 = vrcp.f32 %v4071_v46 }
 0x39e   : > { %v2530_v33 = vpop.eup %2529  ;;  %v1972_v52 = vmul.f32 %v2528_v19, %v4043_v56  ;;  %v1998_v54 = vor.u32 1.1754944e-38, %v1997_v5  ;;  %vm4086_vm11 = vcmp.eq.f32.partialorder %v1980_v17, 8.507059e+37  ;;  %v1983_v18 = vor.u32 1.1754944e-38, %v1982_v0  ;;  %v1636_v5 = vpop.xlane.xlu1 %1635 }
 0x39f   : > { %v1988_v15 = vsub.f32 1.0, %v1987_v47  ;;  %v2532_v12 = vpop.eup %2531  ;;  %vm1961_vm12 = vweird.f32 %v4050_v6  ;;  %vm2036_vm13 = vweird.f32 %v4053_v14  ;;  %2537 = vrcp.f32 %v4073_v62 }
 0x3a0   : > { %v1973_v3 = vsub.f32 1.0, %v1972_v52  ;;  %vm1992_vm14 = vweird.f32 %v2526_v60  ;;  %v1957_v50 = vmul.f32 %v2532_v12, %v4050_v6  ;;  %vm4094_vm15 = vcmp.eq.f32.partialorder %v1965_v59, 8.507059e+37  ;;  %v4542_v59 = vld [vmem:[#allocation42_spill] sm:$0xff] }
 0x3a1   : > { %v2534_v45 = vpop.eup %2533  ;;  %v1989_v48 = vmul.f32 %v2526_v60, %v1988_v15  ;;  %v1968_v7 = vor.u32 1.1754944e-38, %v1967_v24  ;;  %vm1977_vm1 = vweird.f32 %v2528_v19  ;;  %vm4099_vm2 = vcmp.eq.f32.partialorder %v2040_v58, 8.507059e+37  ;;  %vm1993_vm4 = vmor %vm1991_vm8, %vm1992_vm14 }
 0x3a2   : > { %v1974_v41 = vmul.f32 %v2528_v19, %v1973_v3  ;;  %v2032_v23 = vmul.f32 %v2534_v45, %v4053_v14  ;;  %v2043_v28 = vor.u32 1.1754944e-38, %v2042_v26  ;;  %v1958_v34 = vsub.f32 1.0, %v1957_v50  ;;  %vm1978_vm5 = vmor %vm1976_vm9, %vm1977_vm1  ;;  %v1630_v50 = vpop.xlane.xlu0 %1629 }
 0x3a3   : > { %v1990_v32 = vadd.f32 %v2526_v60, %v1989_v48  ;;  %vm2021_vm3 = vweird.f32 %v4071_v46  ;;  %v2025_v31 = vand.u32 2147483647, %v4071_v46  ;;  %v2027_v9 = vand.u32 2147483648, %v4071_v46  ;;  %v2536_v27 = vpop.eup %2535 }
 0x3a4   : > { %v1975_v2 = vadd.f32 %v2528_v19, %v1974_v41  ;;  %v2033_v38 = vsub.f32 1.0, %v2032_v23  ;;  %v4109_v63 = vadd.f32 1.0, %v2530_v33  ;;  %2539 = vpow2.f32 %v2427_v21  ;;  %v4543_v33 = vld [vmem:[#allocation43_spill] sm:$0xff]  ;;  %v4544_v23 = vld [vmem:[#allocation41_spill] sm:$0xff] }
 0x3a5   : > { %v1994_v39 = vsel %vm1993_vm4, %v2526_v60, %v1990_v32  ;;  %v1959_v55 = vmul.f32 %v2532_v12, %v1958_v34  ;;  %vm1962_vm6 = vweird.f32 %v2532_v12  ;;  %v2017_v13 = vmul.f32 %v2536_v27, %v4071_v46  ;;  %v2538_v11 = vpop.eup %2537 }
 0x3a6   : > { %vm2006_vm7 = vweird.f32 %v4073_v62  ;;  %v1999_v37 = vsel %vm4076_vm10, %v1998_v54, %v1994_v39  ;;  %v1979_v42 = vsel %vm1978_vm5, %v2528_v19, %v1975_v2  ;;  %v2034_v29 = vmul.f32 %v2534_v45, %v2033_v38  ;;  %vm1963_vm9 = vmor %vm1961_vm12, %vm1962_vm6  ;;  %v1633_v54 = vpop.xlane.xlu2 %1632  ;;  %v1645_v38 = vpop.xlane.xlu1 %1644 }
 0x3a7   : > { %vm2037_vm8 = vweird.f32 %v2534_v45  ;;  %2312 = vst.msk [vmem:[%s3929_s8 + $0x58] sm:$0xff] %vm203_vm0, %v1999_v37  ;;  %v1984_v56 = vsel %vm4086_vm11, %v1983_v18, %v1979_v42  ;;  %v1960_v30 = vadd.f32 %v2532_v12, %v1959_v55  ;;  %v2018_v35 = vsub.f32 1.0, %v2017_v13 }
 0x3a8   : > { %v2002_v61 = vmul.f32 %v2538_v11, %v4073_v62  ;;  %2311 = vst.msk [vmem:[%s3929_s8 + $0x50] sm:$0xff] %vm203_vm0, %v1984_v56  ;;  %v2035_v51 = vadd.f32 %v2534_v45, %v2034_v29  ;;  %vm4128_vm10 = vcmp.eq.f32.partialorder %v2025_v31, 8.507059e+37  ;;  %v2010_v40 = vand.u32 2147483647, %v4073_v62  ;;  %vm2038_vm11 = vmor %vm2036_vm13, %vm2037_vm8 }
 0x3a9   : > { %2541 = vrcp.f32 %v4109_v63  ;;  %v1964_v8 = vsel %vm1963_vm9, %v2532_v12, %v1960_v30  ;;  %v2019_v4 = vmul.f32 %v2536_v27, %v2018_v35  ;;  %vm2022_vm14 = vweird.f32 %v2536_v27 }
 0x3aa   : > { %v2003_v1 = vsub.f32 1.0, %v2002_v61  ;;  %v2540_v6 = vpop.eup %2539  ;;  %v1969_v43 = vsel %vm4094_vm15, %v1968_v7, %v1964_v8  ;;  %v2039_v21 = vsel %vm2038_vm11, %v2534_v45, %v2035_v51  ;;  %v2012_v36 = vand.u32 2147483648, %v4073_v62  ;;  %vm2023_vm13 = vmor %vm2021_vm3, %vm2022_vm14  ;;  %v4550_v61 = vld [vmem:[#allocation47_spill] sm:$0xff] }
 0x3ab   : > { %2543 = vpow2.f32 %v4058_v10  ;;  %2310 = vst.msk [vmem:[%s3929_s8 + $0x48] sm:$0xff] %vm203_vm0, %v1969_v43  ;;  %v2044_v14 = vsel %vm4099_vm2, %v2043_v28, %v2039_v21  ;;  %v2020_v17 = vadd.f32 %v2536_v27, %v2019_v4  ;;  %vm2007_vm12 = vweird.f32 %v2538_v11 }
 0x3ac   : > { %v2004_v0 = vmul.f32 %v2538_v11, %v2003_v1  ;;  %2315 = vst.msk [vmem:[%s3929_s8 + $0x70] sm:$0xff] %vm203_vm0, %v2044_v14  ;;  %v2028_v60 = vor.u32 1.1754944e-38, %v2027_v9  ;;  %v4148_v19 = vadd.f32 1.0, %v2540_v6  ;;  %2545 = vpow2.f32 %v4060_v25  ;;  %vm2008_vm15 = vmor %vm2006_vm7, %vm2007_vm12 }
 0x3ad   : > { %v2430_v10 = vmul.f32 -1.442695, %v4063_v49  ;;  %v2024_v47 = vsel %vm2023_vm13, %v2536_v27, %v2020_v17  ;;  %v1679_v24 = vadd.f32 %v1621_v53, %v4542_v59  ;;  %v1684_v52 = vadd.f32 %v1636_v5, %v4543_v33  ;;  %v4547_v27 = vld [vmem:[#allocation45_spill] sm:$0xff] }
 0x3ae   : > { %v2005_v44 = vadd.f32 %v2538_v11, %v2004_v0  ;;  %v2029_v26 = vsel %vm4128_vm10, %v2028_v60, %v2024_v47  ;;  %v2013_v46 = vor.u32 1.1754944e-38, %v2012_v36  ;;  %2547 = vrcp.f32 %v4148_v19  ;;  %v4207_v5 = vpop.xlane.xlu2 %1641 }
 0x3af   : > { %v2542_v58 = vpop.eup %2541  ;;  %2314 = vst.msk [vmem:[%s3929_s8 + $0x68] sm:$0xff] %vm203_vm0, %v2029_v26  ;;  %vm2011_vm1 = vcmp.eq.f32.partialorder %v2010_v40, 8.507059e+37  ;;  %v2085_v15 = vand.u32 2147483647, %v4109_v63  ;;  %vm2081_vm2 = vweird.f32 %v4109_v63  ;;  %2549 = vpow2.f32 %v2430_v10 }
 0x3b0   : > { %v2009_v25 = vsel %vm2008_vm15, %v2538_v11, %v2005_v44  ;;  %v2077_v49 = vmul.f32 %v2542_v58, %v4109_v63  ;;  %v2429_v12 = vmul.f32 -1.442695, %v1679_v24  ;;  %v2087_v3 = vand.u32 2147483648, %v4109_v63 }
 0x3b1   : > { %v2544_v22 = vpop.eup %2543  ;;  %v2014_v18 = vsel %vm2011_vm1, %v2013_v46, %v2009_v25  ;;  %v2434_v48 = vmul.f32 -1.442695, %v1684_v52  ;;  %v2070_v7 = vand.u32 2147483647, %v4148_v19  ;;  %v2072_v41 = vand.u32 2147483648, %v4148_v19 }
 0x3b2   : > { %2313 = vst.msk [vmem:[%s3929_s8 + $0x60] sm:$0xff] %vm203_vm0, %v2014_v18  ;;  %v2078_v62 = vsub.f32 1.0, %v2077_v49  ;;  %v4167_v45 = vadd.f32 1.0, %v2544_v22  ;;  %v2546_v20 = vpop.eup %2545  ;;  %2551 = vpow2.f32 %v2429_v12  ;;  %v1683_v16 = vadd.f32 %v1633_v54, %v4544_v23 }
 0x3b3   : > { %vm2082_vm3 = vweird.f32 %v2542_v58  ;;  %vm4172_vm4 = vcmp.eq.f32.partialorder %v2085_v15, 8.507059e+37  ;;  %v4177_v31 = vadd.f32 1.0, %v2546_v20  ;;  %v1682_v2 = vadd.f32 %v1630_v50, %v4547_v27  ;;  %v1639_v50 = vpop.xlane.xlu0 %1638 }
 0x3b4   : > { %v2079_v28 = vmul.f32 %v2542_v58, %v2078_v62  ;;  %2553 = vrcp.f32 %v4167_v45  ;;  %v2548_v34 = vpop.eup %2547  ;;  %v2433_v9 = vmul.f32 -1.442695, %v1683_v16  ;;  %v2088_v55 = vor.u32 1.1754944e-38, %v2087_v3  ;;  %vm2083_vm6 = vmor %vm2081_vm2, %vm2082_vm3 }
 0x3b5   : > { %2555 = vpow2.f32 %v2434_v48  ;;  %v2062_v13 = vmul.f32 %v2548_v34, %v4148_v19  ;;  %vm2066_vm5 = vweird.f32 %v4148_v19  ;;  %v2550_v11 = vpop.eup %2549  ;;  %vm4184_vm7 = vcmp.eq.f32.partialorder %v2070_v7, 8.507059e+37 }
 0x3b6   : > { %v2080_v39 = vadd.f32 %v2542_v58, %v2079_v28  ;;  %v2073_v42 = vor.u32 1.1754944e-38, %v2072_v41  ;;  %v2055_v29 = vand.u32 2147483647, %v4167_v45  ;;  %2557 = vrcp.f32 %v4177_v31 }
 0x3b7   : > { %v2063_v30 = vsub.f32 1.0, %v2062_v13  ;;  %v4190_v35 = vadd.f32 1.0, %v2550_v11  ;;  %v1687_v53 = vadd.f32 %v1645_v38, %v4550_v61  ;;  %v2057_v57 = vand.u32 2147483648, %v4167_v45 }
 0x3b8   : > { %v2084_v56 = vsel %vm2083_vm6, %v2542_v58, %v2080_v39  ;;  %v2552_v51 = vpop.eup %2551  ;;  %2559 = vpow2.f32 %v2433_v9  ;;  %v2432_v40 = vmul.f32 -1.442695, %v1682_v2  ;;  %vm2067_vm8 = vweird.f32 %v2548_v34  ;;  %v1651_v2 = vpop.xlane.xlu2 %1650 }
 0x3b9   : > { %v2089_v63 = vsel %vm4172_vm4, %v2088_v55, %v2084_v56  ;;  %v2064_v4 = vmul.f32 %v2548_v34, %v2063_v30  ;;  %vm2051_vm9 = vweird.f32 %v4167_v45  ;;  %2561 = vrcp.f32 %v4190_v35  ;;  %vm2068_vm11 = vmor %vm2066_vm5, %vm2067_vm8  ;;  %v4567_v56 = vld [vmem:[#allocation52_spill] sm:$0xff] }
 0x3ba   : > { %v2554_v8 = vpop.eup %2553  ;;  %2318 = vst.msk [vmem:[%s3929_s8 + $0x88] sm:$0xff] %vm203_vm0, %v2089_v63  ;;  %vm4201_vm10 = vcmp.eq.f32.partialorder %v2055_v29, 8.507059e+37  ;;  %v2130_v21 = vand.u32 2147483647, %v4177_v31  ;;  %v2132_v36 = vand.u32 2147483648, %v4177_v31  ;;  %v4209_v17 = vadd.f32 1.0, %v2552_v51 }
 0x3bb   : > { %v2556_v1 = vpop.eup %2555  ;;  %v2047_v6 = vmul.f32 %v2554_v8, %v4167_v45  ;;  %v2065_v14 = vadd.f32 %v2548_v34, %v2064_v4  ;;  %2563 = vpow2.f32 %v2432_v40  ;;  %v2058_v47 = vor.u32 1.1754944e-38, %v2057_v57  ;;  %v4561_v4 = vld [vmem:[#allocation44_spill] sm:$0xff] }
 0x3bc   : > { %v4211_v0 = vadd.f32 1.0, %v2556_v1  ;;  %v2558_v60 = vpop.eup %2557  ;;  %v2115_v44 = vand.u32 2147483647, %v4190_v35  ;;  %v2117_v59 = vand.u32 2147483648, %v4190_v35  ;;  %vm2126_vm14 = vweird.f32 %v4177_v31 }
 0x3bd   : > { %v2048_v10 = vsub.f32 1.0, %v2047_v6  ;;  %v2069_v24 = vsel %vm2068_vm11, %v2548_v34, %v2065_v14  ;;  %v2122_v33 = vmul.f32 %v2558_v60, %v4177_v31  ;;  %2565 = vrcp.f32 %v4209_v17  ;;  %v4562_v6 = vld [vmem:[#allocation48_spill] sm:$0xff] }
 0x3be   : > { %v2560_v52 = vpop.eup %2559  ;;  %v2074_v58 = vsel %vm4184_vm7, %v2073_v42, %v2069_v24  ;;  %vm2052_vm12 = vweird.f32 %v2554_v8  ;;  %vm4222_vm13 = vcmp.eq.f32.partialorder %v2130_v21, 8.507059e+37  ;;  %v2133_v49 = vor.u32 1.1754944e-38, %v2132_v36  ;;  %v1654_v21 = vpop.xlane.xlu1 %1653 }
 0x3bf   : > { %v2049_v19 = vmul.f32 %v2554_v8, %v2048_v10  ;;  %v2562_v46 = vpop.eup %2561  ;;  %2317 = vst.msk [vmem:[%s3929_s8 + $0x80] sm:$0xff] %vm203_vm0, %v2074_v58  ;;  %v2123_v25 = vsub.f32 1.0, %v2122_v33  ;;  %vm2111_vm15 = vweird.f32 %v4190_v35  ;;  %2567 = vrcp.f32 %v4211_v0  ;;  %vm2053_vm2 = vmor %vm2051_vm9, %vm2052_vm12  ;;  %v1648_v10 = vpop.xlane.xlu0 %1647 }
 0x3c0   : > { %v2107_v54 = vmul.f32 %v2562_v46, %v4190_v35  ;;  %vm4231_vm1 = vcmp.eq.f32.partialorder %v2115_v44, 8.507059e+37  ;;  %v2118_v18 = vor.u32 1.1754944e-38, %v2117_v59  ;;  %vm2127_vm3 = vweird.f32 %v2558_v60 }
 0x3c1   : > { %v2050_v15 = vadd.f32 %v2554_v8, %v2049_v19  ;;  %v2564_v12 = vpop.eup %2563  ;;  %v2124_v62 = vmul.f32 %v2558_v60, %v2123_v25  ;;  %v2100_v3 = vand.u32 2147483647, %v4209_v17  ;;  %v2437_v48 = vmul.f32 -1.442695, %v1687_v53  ;;  %vm2128_vm5 = vmor %vm2126_vm14, %vm2127_vm3  ;;  %v4564_v19 = vld [vmem:[#allocation46_spill] sm:$0xff] }
 0x3c2   : > { %v2108_v7 = vsub.f32 1.0, %v2107_v54  ;;  %vm2096_vm4 = vweird.f32 %v4209_v17  ;;  %v2102_v41 = vand.u32 2147483648, %v4209_v17  ;;  %v4240_v23 = vadd.f32 1.0, %v2560_v52  ;;  %v4563_v52 = vld [vmem:[#allocation50_spill] sm:$0xff] }
 0x3c3   : > { %v2054_v20 = vsel %vm2053_vm2, %v2554_v8, %v2050_v15  ;;  %v2566_v16 = vpop.eup %2565  ;;  %v2125_v28 = vadd.f32 %v2558_v60, %v2124_v62  ;;  %v2175_v32 = vand.u32 2147483647, %v4211_v0  ;;  %v4245_v34 = vadd.f32 1.0, %v2564_v12 }
 0x3c4   : > { %v2059_v45 = vsel %vm4201_vm10, %v2058_v47, %v2054_v20  ;;  %v2109_v9 = vmul.f32 %v2562_v46, %v2108_v7  ;;  %vm2112_vm6 = vweird.f32 %v2562_v46  ;;  %v2092_v27 = vmul.f32 %v2566_v16, %v4209_v17  ;;  %v4566_v7 = vld [vmem:[#allocation49_spill] sm:$0xff] }
 0x3c5   : > { %2316 = vst.msk [vmem:[%s3929_s8 + $0x78] sm:$0xff] %vm203_vm0, %v2059_v45  ;;  %2569 = vrcp.f32 %v4240_v23  ;;  %v2568_v38 = vpop.eup %2567  ;;  %v2129_v39 = vsel %vm2128_vm5, %v2558_v60, %v2125_v28  ;;  %vm4254_vm7 = vcmp.eq.f32.partialorder %v2100_v3, 8.507059e+37  ;;  %vm2171_vm8 = vweird.f32 %v4211_v0  ;;  %vm2113_vm9 = vmor %vm2111_vm15, %vm2112_vm6  ;;  %v4565_v3 = vld [vmem:[#allocation51_spill] sm:$0xff] }
 0x3c6   : > { %v2177_v13 = vand.u32 2147483648, %v4211_v0  ;;  %v2134_v31 = vsel %vm4222_vm13, %v2133_v49, %v2129_v39  ;;  %v2110_v11 = vadd.f32 %v2562_v46, %v2109_v9  ;;  %v2093_v37 = vsub.f32 1.0, %v2092_v27  ;;  %v1660_v49 = vpop.xlane.xlu2 %1659 }
 0x3c7   : > { %v2167_v42 = vmul.f32 %v2568_v38, %v4211_v0  ;;  %2321 = vst.msk [vmem:[%s3929_s8 + $0xa0] sm:$0xff] %vm203_vm0, %v2134_v31  ;;  %v2103_v29 = vor.u32 1.1754944e-38, %v2102_v41  ;;  %vm4267_vm10 = vcmp.eq.f32.partialorder %v2175_v32, 8.507059e+37  ;;  %v2162_v30 = vand.u32 2147483648, %v4240_v23 }
 0x3c8   : > { %2571 = vrcp.f32 %v4245_v34  ;;  %v2114_v61 = vsel %vm2113_vm9, %v2562_v46, %v2110_v11  ;;  %v2094_v53 = vmul.f32 %v2566_v16, %v2093_v37  ;;  %vm2097_vm11 = vweird.f32 %v2566_v16 }
 0x3c9   : > { %v2168_v51 = vsub.f32 1.0, %v2167_v42  ;;  %v2119_v63 = vsel %vm4231_vm1, %v2118_v18, %v2114_v61  ;;  %vm2172_vm14 = vweird.f32 %v2568_v38  ;;  %v2178_v57 = vor.u32 1.1754944e-38, %v2177_v13  ;;  %vm2098_vm12 = vmor %vm2096_vm4, %vm2097_vm11  ;;  %v1657_v13 = vpop.xlane.xlu0 %1656 }
 0x3ca   : > { %2573 = vpow2.f32 %v2437_v48  ;;  %2320 = vst.msk [vmem:[%s3929_s8 + $0x98] sm:$0xff] %vm203_vm0, %v2119_v63  ;;  %v2095_v40 = vadd.f32 %v2566_v16, %v2094_v53  ;;  %v1686_v1 = vadd.f32 %v4207_v5, %v4561_v4  ;;  %v1685_v43 = vadd.f32 %v1639_v50, %v4562_v6  ;;  %vm2173_vm15 = vmor %vm2171_vm8, %vm2172_vm14 }
 0x3cb   : > { %v2570_v35 = vpop.eup %2569  ;;  %v2169_v8 = vmul.f32 %v2568_v38, %v2168_v51  ;;  %vm2156_vm13 = vweird.f32 %v4240_v23  ;;  %v2160_v14 = vand.u32 2147483647, %v4240_v23  ;;  %v2163_v60 = vor.u32 1.1754944e-38, %v2162_v30 }
 0x3cc   : > { %v2152_v36 = vmul.f32 %v2570_v35, %v4240_v23  ;;  %v2099_v47 = vsel %vm2098_vm12, %v2566_v16, %v2095_v40  ;;  %v2436_v59 = vmul.f32 -1.442695, %v1686_v1  ;;  %v2435_v24 = vmul.f32 -1.442695, %v1685_v43 }
 0x3cd   : > { %v2170_v44 = vadd.f32 %v2568_v38, %v2169_v8  ;;  %v2104_v33 = vsel %vm4254_vm7, %v2103_v29, %v2099_v47  ;;  %v1690_v58 = vadd.f32 %v1654_v21, %v4563_v52  ;;  %v1689_v26 = vadd.f32 %v1651_v2, %v4564_v19 }
 0x3ce   : > { %v2572_v5 = vpop.eup %2571  ;;  %v2153_v17 = vsub.f32 1.0, %v2152_v36  ;;  %2319 = vst.msk [vmem:[%s3929_s8 + $0x90] sm:$0xff] %vm203_vm0, %v2104_v33  ;;  %vm2157_vm1 = vweird.f32 %v2570_v35  ;;  %2575 = vpow2.f32 %v2436_v59  ;;  %v1688_v48 = vadd.f32 %v1648_v10, %v4565_v3 }
 0x3cf   : > { %v2174_v46 = vsel %vm2173_vm15, %v2568_v38, %v2170_v44  ;;  %v2137_v25 = vmul.f32 %v2572_v5, %v4245_v34  ;;  %2577 = vpow2.f32 %v2435_v24  ;;  %v2440_v22 = vmul.f32 -1.442695, %v1690_v58  ;;  %vm2158_vm2 = vmor %vm2156_vm13, %vm2157_vm1 }
 0x3d0   : > { %v2574_v15 = vpop.eup %2573  ;;  %v2179_v54 = vsel %vm4267_vm10, %v2178_v57, %v2174_v46  ;;  %v2154_v0 = vmul.f32 %v2570_v35, %v2153_v17  ;;  %v2439_v62 = vmul.f32 -1.442695, %v1689_v26  ;;  %v2147_v20 = vand.u32 2147483648, %v4245_v34 }
 0x3d1   : > { %2324 = vst.msk [vmem:[%s3929_s8 + $0xb8] sm:$0xff] %vm203_vm0, %v2179_v54  ;;  %v2138_v18 = vsub.f32 1.0, %v2137_v25  ;;  %v4299_v12 = vadd.f32 1.0, %v2574_v15  ;;  %2579 = vpow2.f32 %v2440_v22  ;;  %v1692_v41 = vadd.f32 %v1660_v49, %v4566_v7 }
 0x3d2   : > { %v2155_v50 = vadd.f32 %v2570_v35, %v2154_v0  ;;  %vm2142_vm3 = vweird.f32 %v2572_v5  ;;  %v2145_v45 = vand.u32 2147483647, %v4245_v34  ;;  %vm2161_vm4 = vcmp.eq.f32.partialorder %v2160_v14, 8.507059e+37 }
 0x3d3   : > { %v2139_v16 = vmul.f32 %v2572_v5, %v2138_v18  ;;  %2581 = vrcp.f32 %v4299_v12  ;;  %v2438_v32 = vmul.f32 -1.442695, %v1688_v48  ;;  %vm2141_vm5 = vweird.f32 %v4245_v34 }
 0x3d4   : > { %v2159_v28 = vsel %vm2158_vm2, %v2570_v35, %v2155_v50  ;;  %2583 = vpow2.f32 %v2439_v62  ;;  %v2576_v9 = vpop.eup %2575  ;;  %v2442_v38 = vmul.f32 -1.442695, %v1692_v41  ;;  %vm2143_vm6 = vmor %vm2141_vm5, %vm2142_vm3  ;;  %v2148_v39 = vor.u32 1.1754944e-38, %v2147_v20 }
 0x3d5   : > { %v2164_v27 = vsel %vm2161_vm4, %v2163_v60, %v2159_v28  ;;  %v2140_v2 = vadd.f32 %v2572_v5, %v2139_v16  ;;  %v2578_v23 = vpop.eup %2577  ;;  %v4312_v55 = vadd.f32 1.0, %v2576_v9  ;;  %2585 = vpow2.f32 %v2438_v32 }
 0x3d6   : > { %2323 = vst.msk [vmem:[%s3929_s8 + $0xb0] sm:$0xff] %vm203_vm0, %v2164_v27  ;;  %vm2146_vm7 = vcmp.eq.f32.partialorder %v2145_v45, 8.507059e+37  ;;  %v4314_v11 = vadd.f32 1.0, %v2578_v23  ;;  %2587 = vpow2.f32 %v2442_v38  ;;  %v2220_v29 = vand.u32 2147483647, %v4299_v12 }
 0x3d7   : > { %v2144_v31 = vsel %vm2143_vm6, %v2572_v5, %v2140_v2  ;;  %v2580_v37 = vpop.eup %2579  ;;  %2589 = vrcp.f32 %v4312_v55  ;;  %v1691_v30 = vadd.f32 %v1657_v13, %v4567_v56  ;;  %v2222_v51 = vand.u32 2147483648, %v4299_v12 }
 0x3d8   : > { %v2149_v42 = vsel %vm2146_vm7, %v2148_v39, %v2144_v31  ;;  %2591 = vrcp.f32 %v4314_v11  ;;  %v4324_v63 = vadd.f32 1.0, %v2580_v37  ;;  %v2205_v8 = vand.u32 2147483647, %v4312_v55 }
 0x3d9   : > { %v2582_v34 = vpop.eup %2581  ;;  %2322 = vst.msk [vmem:[%s3929_s8 + $0xa8] sm:$0xff] %vm203_vm0, %v2149_v42  ;;  %vm2216_vm8 = vweird.f32 %v4299_v12  ;;  %vm4330_vm9 = vcmp.eq.f32.partialorder %v2220_v29, 8.507059e+37  ;;  %v2441_v6 = vmul.f32 -1.442695, %v1691_v30  ;;  %v2207_v36 = vand.u32 2147483648, %v4312_v55 }
 0x3da   : > { %v2584_v61 = vpop.eup %2583  ;;  %v2212_v53 = vmul.f32 %v2582_v34, %v4299_v12  ;;  %2593 = vrcp.f32 %v4324_v63  ;;  %vm2217_vm10 = vweird.f32 %v2582_v34  ;;  %v2223_v60 = vor.u32 1.1754944e-38, %v2222_v51 }
 0x3db   : > { %v4326_v57 = vadd.f32 1.0, %v2584_v61  ;;  %v2586_v35 = vpop.eup %2585  ;;  %vm2201_vm11 = vweird.f32 %v4312_v55  ;;  %vm2186_vm14 = vweird.f32 %v4314_v11  ;;  %vm4340_vm12 = vcmp.eq.f32.partialorder %v2205_v8, 8.507059e+37  ;;  %vm2218_vm13 = vmor %vm2216_vm8, %vm2217_vm10 }
 0x3dc   : > { %v2213_v40 = vsub.f32 1.0, %v2212_v53  ;;  %v2588_v4 = vpop.eup %2587  ;;  %v2190_v24 = vand.u32 2147483647, %v4314_v11  ;;  %v2192_v33 = vand.u32 2147483648, %v4314_v11  ;;  %v4349_v17 = vadd.f32 1.0, %v2586_v35 }
 0x3dd   : > { %v2590_v43 = vpop.eup %2589  ;;  %2595 = vrcp.f32 %v4326_v57  ;;  %v2208_v58 = vor.u32 1.1754944e-38, %v2207_v36  ;;  %v4351_v26 = vadd.f32 1.0, %v2588_v4  ;;  %v2265_v62 = vand.u32 2147483647, %v4324_v63 }
 0x3de   : > { %v2214_v21 = vmul.f32 %v2582_v34, %v2213_v40  ;;  %v2592_v14 = vpop.eup %2591  ;;  %v2197_v10 = vmul.f32 %v2590_v43, %v4312_v55  ;;  %2597 = vpow2.f32 %v2441_v6  ;;  %vm2202_vm15 = vweird.f32 %v2590_v43 }
 0x3df   : > { %v2182_v59 = vmul.f32 %v2592_v14, %v4314_v11  ;;  %2599 = vrcp.f32 %v4349_v17  ;;  %vm2187_vm1 = vweird.f32 %v2592_v14  ;;  %vm4358_vm2 = vcmp.eq.f32.partialorder %v2190_v24, 8.507059e+37  ;;  %vm2203_vm3 = vmor %vm2201_vm11, %vm2202_vm15 }
 0x3e0   : > { %v2215_v47 = vadd.f32 %v2582_v34, %v2214_v21  ;;  %v2198_v5 = vsub.f32 1.0, %v2197_v10  ;;  %v2594_v46 = vpop.eup %2593  ;;  %v2193_v12 = vor.u32 1.1754944e-38, %v2192_v33  ;;  %v2267_v20 = vand.u32 2147483648, %v4324_v63  ;;  %vm2188_vm4 = vmor %vm2186_vm14, %vm2187_vm1 }
 0x3e1   : > { %v2183_v19 = vsub.f32 1.0, %v2182_v59  ;;  %v2257_v22 = vmul.f32 %v2594_v46, %v4324_v63  ;;  %2601 = vrcp.f32 %v4351_v26  ;;  %v2250_v45 = vand.u32 2147483647, %v4326_v57 }
 0x3e2   : > { %v2219_v52 = vsel %vm2218_vm13, %v2582_v34, %v2215_v47  ;;  %v2199_v49 = vmul.f32 %v2590_v43, %v2198_v5  ;;  %v2252_v28 = vand.u32 2147483648, %v4326_v57  ;;  %vm2262_vm5 = vweird.f32 %v2594_v46 }
 0x3e3   : > { %v2224_v25 = vsel %vm4330_vm9, %v2223_v60, %v2219_v52  ;;  %v2596_v15 = vpop.eup %2595  ;;  %v2184_v54 = vmul.f32 %v2592_v14, %v2183_v19  ;;  %v2258_v50 = vsub.f32 1.0, %v2257_v22  ;;  %vm2261_vm6 = vweird.f32 %v4324_v63 }
 0x3e4   : > { %2327 = vst.msk [vmem:[%s3929_s8 + $0xd0] sm:$0xff] %vm203_vm0, %v2224_v25  ;;  %v2200_v18 = vadd.f32 %v2590_v43, %v2199_v49  ;;  %v2242_v3 = vmul.f32 %v2596_v15, %v4326_v57  ;;  %v2598_v7 = vpop.eup %2597  ;;  %vm2247_vm7 = vweird.f32 %v2596_v15  ;;  %vm2246_vm8 = vweird.f32 %v4326_v57  ;;  %vm2263_vm9 = vmor %vm2261_vm6, %vm2262_vm5 }
 0x3e5   : > { %v2185_v48 = vadd.f32 %v2592_v14, %v2184_v54  ;;  %v2259_v27 = vmul.f32 %v2594_v46, %v2258_v50  ;;  %v2600_v2 = vpop.eup %2599  ;;  %v1819_v13 = vadd.f32 1.0, %v2598_v7  ;;  %vm2266_vm10 = vcmp.eq.f32.partialorder %v2265_v62, 8.507059e+37  ;;  %vm2248_vm14 = vmor %vm2246_vm8, %vm2247_vm7 }
 0x3e6   : > { %v2204_v41 = vsel %vm2203_vm3, %v2590_v43, %v2200_v18  ;;  %v2243_v16 = vsub.f32 1.0, %v2242_v3  ;;  %v2227_v55 = vmul.f32 %v2600_v2, %v4349_v17  ;;  %v2268_v31 = vor.u32 1.1754944e-38, %v2267_v20 }
 0x3e7   : > { %v2209_v32 = vsel %vm4340_vm12, %v2208_v58, %v2204_v41  ;;  %v2189_v9 = vsel %vm2188_vm4, %v2592_v14, %v2185_v48  ;;  %v2260_v39 = vadd.f32 %v2594_v46, %v2259_v27  ;;  %vm2251_vm11 = vcmp.eq.f32.partialorder %v2250_v45, 8.507059e+37  ;;  %v2602_v37 = vpop.eup %2601 }
 0x3e8   : > { %2326 = vst.msk [vmem:[%s3929_s8 + $0xc8] sm:$0xff] %vm203_vm0, %v2209_v32  ;;  %v2194_v38 = vsel %vm4358_vm2, %v2193_v12, %v2189_v9  ;;  %v2244_v23 = vmul.f32 %v2596_v15, %v2243_v16  ;;  %v2253_v34 = vor.u32 1.1754944e-38, %v2252_v28  ;;  %v2228_v29 = vsub.f32 1.0, %v2227_v55 }
 0x3e9   : > { %2325 = vst.msk [vmem:[%s3929_s8 + $0xc0] sm:$0xff] %vm203_vm0, %v2194_v38  ;;  %v2264_v42 = vsel %vm2263_vm9, %v2594_v46, %v2260_v39  ;;  %2603 = vrcp.f32 %v1819_v13  ;;  %v2237_v61 = vand.u32 2147483648, %v4349_v17  ;;  %v2287_v53 = vmul.f32 %v2602_v37, %v4351_v26 }
 0x3ea   : > { %v2245_v11 = vadd.f32 %v2596_v15, %v2244_v23  ;;  %v2269_v56 = vsel %vm2266_vm10, %v2268_v31, %v2264_v42  ;;  %v2229_v63 = vmul.f32 %v2600_v2, %v2228_v29  ;;  %vm2232_vm12 = vweird.f32 %v2600_v2 }
 0x3eb   : > { %2330 = vst.msk [vmem:[%s3929_s8 + $0xe8] sm:$0xff] %vm203_vm0, %v2269_v56  ;;  %v2235_v57 = vand.u32 2147483647, %v4349_v17  ;;  %v2288_v35 = vsub.f32 1.0, %v2287_v53  ;;  %vm2231_vm13 = vweird.f32 %v4349_v17  ;;  %v2297_v8 = vand.u32 2147483648, %v4351_v26 }
 0x3ec   : > { %v2249_v30 = vsel %vm2248_vm14, %v2596_v15, %v2245_v11  ;;  %v2230_v40 = vadd.f32 %v2600_v2, %v2229_v63  ;;  %vm2233_vm15 = vmor %vm2231_vm13, %vm2232_vm12  ;;  %v2238_v4 = vor.u32 1.1754944e-38, %v2237_v61  ;;  %vm2292_vm1 = vweird.f32 %v2602_v37 }
 0x3ed   : > { %v2254_v51 = vsel %vm2251_vm11, %v2253_v34, %v2249_v30  ;;  %v2289_v1 = vmul.f32 %v2602_v37, %v2288_v35  ;;  %v2295_v6 = vand.u32 2147483647, %v4351_v26  ;;  %vm2236_vm2 = vcmp.eq.f32.partialorder %v2235_v57, 8.507059e+37 }
 0x3ee   : > { %2329 = vst.msk [vmem:[%s3929_s8 + $0xe0] sm:$0xff] %vm203_vm0, %v2254_v51  ;;  %v2234_v21 = vsel %vm2233_vm15, %v2600_v2, %v2230_v40  ;;  %vm2291_vm3 = vweird.f32 %v4351_v26  ;;  %v2298_v10 = vor.u32 1.1754944e-38, %v2297_v8  ;;  %v2282_v24 = vand.u32 2147483648, %v1819_v13 }
 0x3ef   : > { %v2604_v43 = vpop.eup %2603  ;;  %v2239_v36 = vsel %vm2236_vm2, %v2238_v4, %v2234_v21  ;;  %v2290_v14 = vadd.f32 %v2602_v37, %v2289_v1  ;;  %vm2293_vm4 = vmor %vm2291_vm3, %vm2292_vm1  ;;  %vm2296_vm5 = vcmp.eq.f32.partialorder %v2295_v6, 8.507059e+37  ;;  %v2280_v33 = vand.u32 2147483647, %v1819_v13 }
 0x3f0   : > { %v2272_v60 = vmul.f32 %v2604_v43, %v1819_v13  ;;  %2328 = vst.msk [vmem:[%s3929_s8 + $0xd8] sm:$0xff] %vm203_vm0, %v2239_v36  ;;  %vm2277_vm6 = vweird.f32 %v2604_v43  ;;  %vm2276_vm7 = vweird.f32 %v1819_v13  ;;  %v2283_v52 = vor.u32 1.1754944e-38, %v2282_v24 }
 0x3f1   : > { %v2294_v47 = vsel %vm2293_vm4, %v2602_v37, %v2290_v14  ;;  %vm2278_vm8 = vmor %vm2276_vm7, %vm2277_vm6  ;;  %vm2281_vm9 = vcmp.eq.f32.partialorder %v2280_v33, 8.507059e+37 }
 0x3f2   : > { %v2273_v44 = vsub.f32 1.0, %v2272_v60  ;;  %v2299_v59 = vsel %vm2296_vm5, %v2298_v10, %v2294_v47 }
 0x3f3   : > { %2332 = vst.msk [vmem:[%s3929_s8 + $0xf8] sm:$0xff] %vm203_vm0, %v2299_v59 }
 0x3f4   : > { %v2274_v5 = vmul.f32 %v2604_v43, %v2273_v44 }
 0x3f6   : > { %v2275_v17 = vadd.f32 %v2604_v43, %v2274_v5 }
 0x3f8   : > { %v2279_v58 = vsel %vm2278_vm8, %v2604_v43, %v2275_v17 }
 0x3f9   : > { %v2284_v19 = vsel %vm2281_vm9, %v2283_v52, %v2279_v58 }
 0x3fa   : > { %2331 = vst.msk [vmem:[%s3929_s8 + $0xf0] sm:$0xff] %vm203_vm0, %v2284_v19 }
 0x3fb PF: > { %s13_s14 = sadd.s32 1, %s2627_s14   ;;  %s4574_s12 = smov %s2623_s13 }
 0x3fc   : > { %p10_p5 = scmp.ge.s32.totalorder %s13_s14, 4   ;;  %s4575_s13 = smov %s4577_s15 }
 0x3fe   :  { %12 = sbr.rel (!%p10_p5) target bundleno = 2 (0x2), region = 70 }

</bundles_post_ra>
